<compile_context>
chip_gen: v6e
topology: v6e:2x2x1
jax: 0.10.0
libtpu: 0.0.40
codegen_flags: <defaults>
</compile_context>

<pallas_src>
import functools

import jax
import jax.numpy as jnp
import numpy as np
from jax.experimental import pallas as pl
from jax.experimental.pallas import tpu as pltpu


# ----------------------------------------------------------------------------
# Pallas kernel: one grid step == Tt timesteps of the 2-layer LSTM recurrence.
# ----------------------------------------------------------------------------
def _lstm2_kernel(g0_ref, whh0_ref, wih1_ref, whh1_ref, bl1_ref, out_ref, state):
    # g0_ref : (Tt, 4, B, H)  precomputed layer-0 gate inputs (x-side + bias)
    # whh0_ref, wih1_ref, whh1_ref : (4, H, H) gate-major recurrent weights
    # bl1_ref : (4, 1, H)      layer-1 combined bias
    # out_ref : (Tt, B, H)     layer-1 hidden states per timestep
    # state   : (4, B, H)      [h0, c0, h1, c1] carried across grid steps
    Tt = g0_ref.shape[0]

    @pl.when(pl.program_id(0) == 0)
    def _init():
        state[...] = jnp.zeros(state.shape, state.dtype)

    def cell(gate_in, whh_ref, h, c):
        # gate_in(k) -> (B, H) non-recurrent contribution for gate k (i,f,g,o)
        def pre(k):
            return gate_in(k) + jnp.dot(h, whh_ref[k],
                                        preferred_element_type=jnp.float32)
        i_g = jax.nn.sigmoid(pre(0))
        f_g = jax.nn.sigmoid(pre(1))
        g_g = jnp.tanh(pre(2))
        o_g = jax.nn.sigmoid(pre(3))
        c_new = f_g * c + i_g * g_g
        h_new = o_g * jnp.tanh(c_new)
        return h_new, c_new

    def step(t, carry):
        h0, c0, h1, c1 = carry
        g0t = g0_ref[t]  # (4, B, H)
        # layer 0: x-side already folded into g0t
        h0, c0 = cell(lambda k: g0t[k], whh0_ref, h0, c0)
        # layer 1: input projection of h0 done per-gate (tiny, MXU-pipelined)
        h1, c1 = cell(
            lambda k: jnp.dot(h0, wih1_ref[k],
                              preferred_element_type=jnp.float32) + bl1_ref[k],
            whh1_ref, h1, c1)
        out_ref[t] = h1
        return (h0, c0, h1, c1)

    init = (state[0], state[1], state[2], state[3])
    h0, c0, h1, c1 = jax.lax.fori_loop(0, Tt, step, init, unroll=True)
    state[0] = h0
    state[1] = c0
    state[2] = h1
    state[3] = c1


def lstm2_pallas(g0, whh0g, wih1g, whh1g, bl1g, time_block):
    """g0: (Tp, 4, B, H) f32, Tp % time_block == 0. Returns (Tp, B, H) f32."""
    Tp, _, B, H = g0.shape
    assert Tp % time_block == 0
    weights = (whh0g, wih1g, whh1g, bl1g)

    def full_spec(arr):
        nd = arr.ndim
        return pl.BlockSpec(arr.shape, lambda tb, _nd=nd: (0,) * _nd)

    grid_spec = pltpu.PrefetchScalarGridSpec(
        num_scalar_prefetch=0,
        grid=(Tp // time_block,),
        in_specs=[pl.BlockSpec((time_block, 4, B, H), lambda tb: (tb, 0, 0, 0))]
                 + [full_spec(w) for w in weights],
        out_specs=pl.BlockSpec((time_block, B, H), lambda tb: (tb, 0, 0)),
        scratch_shapes=[pltpu.VMEM((4, B, H), jnp.float32)],
    )
    return pl.pallas_call(
        _lstm2_kernel,
        out_shape=jax.ShapeDtypeStruct((Tp, B, H), jnp.float32),
        grid_spec=grid_spec,
        compiler_params=pltpu.CompilerParams(
            dimension_semantics=("arbitrary",)),  # sequential: carries h/c
    )(g0, *weights)


# ----------------------------------------------------------------------------
# Parameters: PyTorch layouts + deterministic uniform init, plus the
# kernel-friendly (transposed / gate-major) views.
# ----------------------------------------------------------------------------
def make_params(key, n_input, n_hidden, n_output):
    H = n_hidden

    def uni(k, shape, fan):
        bound = 1.0 / np.sqrt(fan)
        return jax.random.uniform(k, shape, jnp.float32, -bound, bound)

    ks = jax.random.split(key, 12)
    return dict(
        w1=uni(ks[0], (H, n_input), n_input), b1=uni(ks[1], (H,), n_input),
        wih0=uni(ks[2], (4 * H, H), H), whh0=uni(ks[3], (4 * H, H), H),
        bih0=uni(ks[4], (4 * H,), H), bhh0=uni(ks[5], (4 * H,), H),
        wih1=uni(ks[6], (4 * H, H), H), whh1=uni(ks[7], (4 * H, H), H),
        bih1=uni(ks[8], (4 * H,), H), bhh1=uni(ks[9], (4 * H,), H),
        w2=uni(ks[10], (n_output, H), H), b2=uni(ks[11], (n_output,), H),
    )


def prep_params(p, H):
    def gate_major(w):
        # PyTorch (4H, H_in) -> (4, H_in, H) so that  x @ out[k] == x @ w[kH:(k+1)H].T
        return jnp.transpose(w.reshape(4, H, -1), (0, 2, 1))

    return dict(
        w1t=p["w1"].T, b1=p["b1"][None, :],
        wih0t=p["wih0"].T,                       # (H, 4H) hoisted precompute
        bl0=(p["bih0"] + p["bhh0"])[None, :],    # (1, 4H)
        whh0g=gate_major(p["whh0"]),             # (4, H, H)
        wih1g=gate_major(p["wih1"]),             # (4, H, H)
        whh1g=gate_major(p["whh1"]),             # (4, H, H)
        bl1g=(p["bih1"] + p["bhh1"]).reshape(4, 1, H),
        w2t=p["w2"].T, b2=p["b2"][None, :],
    )


# ----------------------------------------------------------------------------
# Full forward: hoisted batched matmuls outside, Pallas recurrence inside.
# ----------------------------------------------------------------------------
@functools.partial(jax.jit, static_argnums=(2, 3))
def _rnn_padded(x_pad, kp, H, Tt):
    Tp, Bp, _ = x_pad.shape
    # linear1 + ReLU (dropout is identity in inference mode)
    a = jax.nn.relu(x_pad @ kp["w1t"] + kp["b1"])          # (Tp, Bp, H)
    # TODO(synk): nn.Dropout(0.2) is stochastic in training mode; eval-mode
    # identity here (pltpu.prng_* masking would be needed for training parity).
    # layer-0 LSTM input projection + combined bias, hoisted out of the kernel
    g0 = a @ kp["wih0t"] + kp["bl0"]                        # (Tp, Bp, 4H)
    g0 = g0.reshape(Tp, Bp, 4, H).transpose(0, 2, 1, 3)     # (Tp, 4, Bp, H)
    # sequential 2-layer LSTM recurrence (Pallas)
    h1 = lstm2_pallas(g0, kp["whh0g"], kp["wih1g"], kp["whh1g"], kp["bl1g"], Tt)
    # linear2 hoisted: one lane-dense batched matmul over all timesteps
    return h1 @ kp["w2t"] + kp["b2"]                        # (Tp, Bp, n_output)


def rnn_forward(xs, params, n_hidden, time_block=16):
    H = n_hidden
    kp = prep_params(params, H)
    lengths = [int(x.shape[0]) for x in xs]
    T, Bn = max(lengths), len(xs)
    n_input = xs[0].shape[1]

    # Pad batch to a multiple of 8 sublanes and time to a multiple of the
    # in-kernel time block. Padding sits at the end, so it never affects the
    # valid outputs of a forward-only recurrence (pack_padded_sequence parity).
    Bpad = max(8, ((Bn + 7) // 8) * 8)
    Tt = min(time_block, T)
    Tpad = ((T + Tt - 1) // Tt) * Tt

    x_np = np.zeros((Tpad, Bpad, n_input), np.float32)
    for i, x in enumerate(xs):
        x_np[: x.shape[0], i] = np.asarray(x)   # pad_sequence: (T, B, n_input)
    x_pad = jnp.asarray(x_np)

    out = _rnn_padded(x_pad, kp, H, Tt)          # (Tpad, Bpad, n_output)
    return [out[:l, i] for i, l in enumerate(lengths)], x_pad, out


# ----------------------------------------------------------------------------
# Pure-JAX reference (PyTorch-layout weights) for the correctness check.
# ----------------------------------------------------------------------------
def rnn_reference(x_pad, p, H):
    a = jax.nn.relu(x_pad @ p["w1"].T + p["b1"])

    def lstm_layer(inp, wih, whh, b):
        B = inp.shape[1]

        def step(carry, xt):
            h, c = carry
            g = xt @ wih.T + h @ whh.T + b
            i = jax.nn.sigmoid(g[:, :H])
            f = jax.nn.sigmoid(g[:, H:2 * H])
            gg = jnp.tanh(g[:, 2 * H:3 * H])
            o = jax.nn.sigmoid(g[:, 3 * H:])
            c = f * c + i * gg
            h = o * jnp.tanh(c)
            return (h, c), h

        init = (jnp.zeros((B, H), jnp.float32), jnp.zeros((B, H), jnp.float32))
        _, hs = jax.lax.scan(step, init, inp)
        return hs

    h0 = lstm_layer(a, p["wih0"], p["whh0"], p["bih0"] + p["bhh0"])
    h1 = lstm_layer(h0, p["wih1"], p["whh1"], p["bih1"] + p["bhh1"])
    return h1 @ p["w2"].T + p["b2"]


if __name__ == "__main__":
    n_input, n_hidden, n_output = 16, 32, 8
    lengths = [8, 5, 7]  # variable-length sequences, like pack_padded_sequence

    key = jax.random.PRNGKey(0)
    pkey, *xkeys = jax.random.split(key, 1 + len(lengths))
    params = make_params(pkey, n_input, n_hidden, n_output)
    xs = [jax.random.normal(k, (l, n_input), jnp.float32)
          for k, l in zip(xkeys, lengths)]

    outs, x_pad, out_full = rnn_forward(xs, params, n_hidden)
    outs = [jax.block_until_ready(o) for o in outs]

    # Correctness check against a pure-JAX reference on the same padded tensor.
    ref_full = jax.block_until_ready(rnn_reference(x_pad, params, n_hidden))
    for i, l in enumerate(lengths):
        np.testing.assert_allclose(np.asarray(outs[i]),
                                   np.asarray(ref_full[:l, i]),
                                   rtol=1e-4, atol=1e-4)
        assert outs[i].shape == (l, n_output)

    print("KERNEL_OK")
</pallas_src>

<mosaic_0001>
module attributes {stable_mosaic.version = 11 : i64} {
  func.func @_lstm2_kernel(%arg0: i32, %arg1: memref<8x4x8x32xf32, #tpu.memory_space<vmem>>, %arg2: memref<4x32x32xf32, #tpu.memory_space<vmem>>, %arg3: memref<4x32x32xf32, #tpu.memory_space<vmem>>, %arg4: memref<4x32x32xf32, #tpu.memory_space<vmem>>, %arg5: memref<4x1x32xf32, #tpu.memory_space<vmem>>, %arg6: memref<8x8x32xf32, #tpu.memory_space<vmem>>, %arg7: memref<4x8x32xf32, #tpu.memory_space<vmem>>) attributes {dimension_semantics = [#tpu.dimension_semantics<arbitrary>], iteration_bounds = array<i64: 1>, scalar_prefetch = 0 : i64, scratch_operands = 1 : i64, tpu.core_type = #tpu.core_type<tc>, window_params = [{transform_indices = @transform_0, window_bounds = array<i64: 8, 4, 8, 32>}, {pipeline_mode = #tpu.pipeline_mode<synchronous>, transform_indices = @transform_1, window_bounds = array<i64: 4, 32, 32>}, {pipeline_mode = #tpu.pipeline_mode<synchronous>, transform_indices = @transform_2, window_bounds = array<i64: 4, 32, 32>}, {pipeline_mode = #tpu.pipeline_mode<synchronous>, transform_indices = @transform_3, window_bounds = array<i64: 4, 32, 32>}, {pipeline_mode = #tpu.pipeline_mode<synchronous>, transform_indices = @transform_4, window_bounds = array<i64: 4, 1, 32>}, {transform_indices = @transform_5, window_bounds = array<i64: 8, 8, 32>}]} {
    %c0_i32 = arith.constant 0 : i32
    %0 = arith.cmpi eq, %arg0, %c0_i32 : i32
    %1 = arith.extui %0 : i1 to i32
    %c0_i32_0 = arith.constant 0 : i32
    %2 = arith.cmpi ne, %1, %c0_i32_0 : i32
    scf.if %2 {
      %cst_589 = arith.constant 0.000000e+00 : f32
      %959 = vector.broadcast %cst_589 : f32 to vector<4x8x32xf32>
      %c0_590 = arith.constant 0 : index
      %c0_591 = arith.constant 0 : index
      %c0_592 = arith.constant 0 : index
      %960 = vector.load %arg7[%c0_590, %c0_591, %c0_592] : memref<4x8x32xf32, #tpu.memory_space<vmem>>, vector<4x8x32xf32>
      tpu.vector_store %arg7[%c0_590, %c0_591, %c0_592], %959 {strides = array<i32>} : memref<4x8x32xf32, #tpu.memory_space<vmem>>, vector<4x8x32xf32>,
    } else {
    }
    %c0 = arith.constant 0 : index
    %c0_1 = arith.constant 0 : index
    %c0_2 = arith.constant 0 : index
    %3 = vector.load %arg7[%c0, %c0_1, %c0_2] : memref<4x8x32xf32, #tpu.memory_space<vmem>>, vector<1x8x32xf32>
    %4 = vector.shape_cast %3 : vector<1x8x32xf32> to vector<8x32xf32>
    %c1 = arith.constant 1 : index
    %c0_3 = arith.constant 0 : index
    %c0_4 = arith.constant 0 : index
    %5 = vector.load %arg7[%c1, %c0_3, %c0_4] : memref<4x8x32xf32, #tpu.memory_space<vmem>>, vector<1x8x32xf32>
    %6 = vector.shape_cast %5 : vector<1x8x32xf32> to vector<8x32xf32>
    %c2 = arith.constant 2 : index
    %c0_5 = arith.constant 0 : index
    %c0_6 = arith.constant 0 : index
    %7 = vector.load %arg7[%c2, %c0_5, %c0_6] : memref<4x8x32xf32, #tpu.memory_space<vmem>>, vector<1x8x32xf32>
    %8 = vector.shape_cast %7 : vector<1x8x32xf32> to vector<8x32xf32>
    %c3 = arith.constant 3 : index
    %c0_7 = arith.constant 0 : index
    %c0_8 = arith.constant 0 : index
    %9 = vector.load %arg7[%c3, %c0_7, %c0_8] : memref<4x8x32xf32, #tpu.memory_space<vmem>>, vector<1x8x32xf32>
    %10 = vector.shape_cast %9 : vector<1x8x32xf32> to vector<8x32xf32>
    %c0_i32_9 = arith.constant 0 : i32
    %11 = arith.index_cast %c0_i32_9 : i32 to index
    %c0_10 = arith.constant 0 : index
    %c0_11 = arith.constant 0 : index
    %c0_12 = arith.constant 0 : index
    %12 = vector.load %arg1[%11, %c0_10, %c0_11, %c0_12] : memref<8x4x8x32xf32, #tpu.memory_space<vmem>>, vector<1x4x8x32xf32>
    %13 = vector.shape_cast %12 : vector<1x4x8x32xf32> to vector<4x8x32xf32>
    %14 = vector.extract_strided_slice %13 {offsets = [0, 0, 0], sizes = [1, 8, 32], strides = [1, 1, 1]} : vector<4x8x32xf32> to vector<1x8x32xf32>
    %15 = vector.shape_cast %14 : vector<1x8x32xf32> to vector<8x32xf32>
    %c0_13 = arith.constant 0 : index
    %c0_14 = arith.constant 0 : index
    %c0_15 = arith.constant 0 : index
    %16 = vector.load %arg2[%c0_13, %c0_14, %c0_15] : memref<4x32x32xf32, #tpu.memory_space<vmem>>, vector<1x32x32xf32>
    %17 = vector.shape_cast %16 : vector<1x32x32xf32> to vector<32x32xf32>
    %cst = arith.constant dense<0.000000e+00> : vector<8x32xf32>
    %18 = tpu.matmul %4, %17, %cst {dimension_numbers = #tpu.dot_dimension_numbers<[1], [0], [0], [1], [0, 0, 1, 1], [], []>} : vector<8x32xf32>, vector<32x32xf32>, vector<8x32xf32> -> vector<8x32xf32>
    %19 = arith.addf %15, %18 : vector<8x32xf32>
    %20 = arith.negf %19 : vector<8x32xf32>
    %21 = math.exp %20 : vector<8x32xf32>
    %cst_16 = arith.constant 1.000000e+00 : f32
    %22 = vector.broadcast %cst_16 : f32 to vector<8x32xf32>
    %23 = arith.addf %22, %21 : vector<8x32xf32>
    %24 = arith.divf %22, %23 : vector<8x32xf32>
    %25 = vector.extract_strided_slice %13 {offsets = [1, 0, 0], sizes = [1, 8, 32], strides = [1, 1, 1]} : vector<4x8x32xf32> to vector<1x8x32xf32>
    %26 = vector.shape_cast %25 : vector<1x8x32xf32> to vector<8x32xf32>
    %c1_17 = arith.constant 1 : index
    %c0_18 = arith.constant 0 : index
    %c0_19 = arith.constant 0 : index
    %27 = vector.load %arg2[%c1_17, %c0_18, %c0_19] : memref<4x32x32xf32, #tpu.memory_space<vmem>>, vector<1x32x32xf32>
    %28 = vector.shape_cast %27 : vector<1x32x32xf32> to vector<32x32xf32>
    %cst_20 = arith.constant dense<0.000000e+00> : vector<8x32xf32>
    %29 = tpu.matmul %4, %28, %cst_20 {dimension_numbers = #tpu.dot_dimension_numbers<[1], [0], [0], [1], [0, 0, 1, 1], [], []>} : vector<8x32xf32>, vector<32x32xf32>, vector<8x32xf32> -> vector<8x32xf32>
    %30 = arith.addf %26, %29 : vector<8x32xf32>
    %31 = arith.negf %30 : vector<8x32xf32>
    %32 = math.exp %31 : vector<8x32xf32>
    %cst_21 = arith.constant 1.000000e+00 : f32
    %33 = vector.broadcast %cst_21 : f32 to vector<8x32xf32>
    %34 = arith.addf %33, %32 : vector<8x32xf32>
    %35 = arith.divf %33, %34 : vector<8x32xf32>
    %36 = vector.extract_strided_slice %13 {offsets = [2, 0, 0], sizes = [1, 8, 32], strides = [1, 1, 1]} : vector<4x8x32xf32> to vector<1x8x32xf32>
    %37 = vector.shape_cast %36 : vector<1x8x32xf32> to vector<8x32xf32>
    %c2_22 = arith.constant 2 : index
    %c0_23 = arith.constant 0 : index
    %c0_24 = arith.constant 0 : index
    %38 = vector.load %arg2[%c2_22, %c0_23, %c0_24] : memref<4x32x32xf32, #tpu.memory_space<vmem>>, vector<1x32x32xf32>
    %39 = vector.shape_cast %38 : vector<1x32x32xf32> to vector<32x32xf32>
    %cst_25 = arith.constant dense<0.000000e+00> : vector<8x32xf32>
    %40 = tpu.matmul %4, %39, %cst_25 {dimension_numbers = #tpu.dot_dimension_numbers<[1], [0], [0], [1], [0, 0, 1, 1], [], []>} : vector<8x32xf32>, vector<32x32xf32>, vector<8x32xf32> -> vector<8x32xf32>
    %41 = arith.addf %37, %40 : vector<8x32xf32>
    %42 = math.tanh %41 : vector<8x32xf32>
    %43 = vector.extract_strided_slice %13 {offsets = [3, 0, 0], sizes = [1, 8, 32], strides = [1, 1, 1]} : vector<4x8x32xf32> to vector<1x8x32xf32>
    %44 = vector.shape_cast %43 : vector<1x8x32xf32> to vector<8x32xf32>
    %c3_26 = arith.constant 3 : index
    %c0_27 = arith.constant 0 : index
    %c0_28 = arith.constant 0 : index
    %45 = vector.load %arg2[%c3_26, %c0_27, %c0_28] : memref<4x32x32xf32, #tpu.memory_space<vmem>>, vector<1x32x32xf32>
    %46 = vector.shape_cast %45 : vector<1x32x32xf32> to vector<32x32xf32>
    %cst_29 = arith.constant dense<0.000000e+00> : vector<8x32xf32>
    %47 = tpu.matmul %4, %46, %cst_29 {dimension_numbers = #tpu.dot_dimension_numbers<[1], [0], [0], [1], [0, 0, 1, 1], [], []>} : vector<8x32xf32>, vector<32x32xf32>, vector<8x32xf32> -> vector<8x32xf32>
    %48 = arith.addf %44, %47 : vector<8x32xf32>
    %49 = arith.negf %48 : vector<8x32xf32>
    %50 = math.exp %49 : vector<8x32xf32>
    %cst_30 = arith.constant 1.000000e+00 : f32
    %51 = vector.broadcast %cst_30 : f32 to vector<8x32xf32>
    %52 = arith.addf %51, %50 : vector<8x32xf32>
    %53 = arith.divf %51, %52 : vector<8x32xf32>
    %54 = arith.mulf %35, %6 : vector<8x32xf32>
    %55 = arith.mulf %24, %42 : vector<8x32xf32>
    %56 = arith.addf %54, %55 : vector<8x32xf32>
    %57 = math.tanh %56 : vector<8x32xf32>
    %58 = arith.mulf %53, %57 : vector<8x32xf32>
    %c0_31 = arith.constant 0 : index
    %c0_32 = arith.constant 0 : index
    %c0_33 = arith.constant 0 : index
    %59 = vector.load %arg3[%c0_31, %c0_32, %c0_33] : memref<4x32x32xf32, #tpu.memory_space<vmem>>, vector<1x32x32xf32>
    %60 = vector.shape_cast %59 : vector<1x32x32xf32> to vector<32x32xf32>
    %cst_34 = arith.constant dense<0.000000e+00> : vector<8x32xf32>
    %61 = tpu.matmul %58, %60, %cst_34 {dimension_numbers = #tpu.dot_dimension_numbers<[1], [0], [0], [1], [0, 0, 1, 1], [], []>} : vector<8x32xf32>, vector<32x32xf32>, vector<8x32xf32> -> vector<8x32xf32>
    %c0_35 = arith.constant 0 : index
    %c0_36 = arith.constant 0 : index
    %c0_37 = arith.constant 0 : index
    %62 = vector.load %arg5[%c0_35, %c0_36, %c0_37] : memref<4x1x32xf32, #tpu.memory_space<vmem>>, vector<1x1x32xf32>
    %63 = vector.shape_cast %62 : vector<1x1x32xf32> to vector<1x32xf32>
    %64 = vector.broadcast %63 : vector<1x32xf32> to vector<8x32xf32>
    %65 = arith.addf %61, %64 : vector<8x32xf32>
    %c0_38 = arith.constant 0 : index
    %c0_39 = arith.constant 0 : index
    %c0_40 = arith.constant 0 : index
    %66 = vector.load %arg4[%c0_38, %c0_39, %c0_40] : memref<4x32x32xf32, #tpu.memory_space<vmem>>, vector<1x32x32xf32>
    %67 = vector.shape_cast %66 : vector<1x32x32xf32> to vector<32x32xf32>
    %cst_41 = arith.constant dense<0.000000e+00> : vector<8x32xf32>
    %68 = tpu.matmul %8, %67, %cst_41 {dimension_numbers = #tpu.dot_dimension_numbers<[1], [0], [0], [1], [0, 0, 1, 1], [], []>} : vector<8x32xf32>, vector<32x32xf32>, vector<8x32xf32> -> vector<8x32xf32>
    %69 = arith.addf %65, %68 : vector<8x32xf32>
    %70 = arith.negf %69 : vector<8x32xf32>
    %71 = math.exp %70 : vector<8x32xf32>
    %cst_42 = arith.constant 1.000000e+00 : f32
    %72 = vector.broadcast %cst_42 : f32 to vector<8x32xf32>
    %73 = arith.addf %72, %71 : vector<8x32xf32>
    %74 = arith.divf %72, %73 : vector<8x32xf32>
    %c1_43 = arith.constant 1 : index
    %c0_44 = arith.constant 0 : index
    %c0_45 = arith.constant 0 : index
    %75 = vector.load %arg3[%c1_43, %c0_44, %c0_45] : memref<4x32x32xf32, #tpu.memory_space<vmem>>, vector<1x32x32xf32>
    %76 = vector.shape_cast %75 : vector<1x32x32xf32> to vector<32x32xf32>
    %cst_46 = arith.constant dense<0.000000e+00> : vector<8x32xf32>
    %77 = tpu.matmul %58, %76, %cst_46 {dimension_numbers = #tpu.dot_dimension_numbers<[1], [0], [0], [1], [0, 0, 1, 1], [], []>} : vector<8x32xf32>, vector<32x32xf32>, vector<8x32xf32> -> vector<8x32xf32>
    %c1_47 = arith.constant 1 : index
    %c0_48 = arith.constant 0 : index
    %c0_49 = arith.constant 0 : index
    %78 = vector.load %arg5[%c1_47, %c0_48, %c0_49] : memref<4x1x32xf32, #tpu.memory_space<vmem>>, vector<1x1x32xf32>
    %79 = vector.shape_cast %78 : vector<1x1x32xf32> to vector<1x32xf32>
    %80 = vector.broadcast %79 : vector<1x32xf32> to vector<8x32xf32>
    %81 = arith.addf %77, %80 : vector<8x32xf32>
    %c1_50 = arith.constant 1 : index
    %c0_51 = arith.constant 0 : index
    %c0_52 = arith.constant 0 : index
    %82 = vector.load %arg4[%c1_50, %c0_51, %c0_52] : memref<4x32x32xf32, #tpu.memory_space<vmem>>, vector<1x32x32xf32>
    %83 = vector.shape_cast %82 : vector<1x32x32xf32> to vector<32x32xf32>
    %cst_53 = arith.constant dense<0.000000e+00> : vector<8x32xf32>
    %84 = tpu.matmul %8, %83, %cst_53 {dimension_numbers = #tpu.dot_dimension_numbers<[1], [0], [0], [1], [0, 0, 1, 1], [], []>} : vector<8x32xf32>, vector<32x32xf32>, vector<8x32xf32> -> vector<8x32xf32>
    %85 = arith.addf %81, %84 : vector<8x32xf32>
    %86 = arith.negf %85 : vector<8x32xf32>
    %87 = math.exp %86 : vector<8x32xf32>
    %cst_54 = arith.constant 1.000000e+00 : f32
    %88 = vector.broadcast %cst_54 : f32 to vector<8x32xf32>
    %89 = arith.addf %88, %87 : vector<8x32xf32>
    %90 = arith.divf %88, %89 : vector<8x32xf32>
    %c2_55 = arith.constant 2 : index
    %c0_56 = arith.constant 0 : index
    %c0_57 = arith.constant 0 : index
    %91 = vector.load %arg3[%c2_55, %c0_56, %c0_57] : memref<4x32x32xf32, #tpu.memory_space<vmem>>, vector<1x32x32xf32>
    %92 = vector.shape_cast %91 : vector<1x32x32xf32> to vector<32x32xf32>
    %cst_58 = arith.constant dense<0.000000e+00> : vector<8x32xf32>
    %93 = tpu.matmul %58, %92, %cst_58 {dimension_numbers = #tpu.dot_dimension_numbers<[1], [0], [0], [1], [0, 0, 1, 1], [], []>} : vector<8x32xf32>, vector<32x32xf32>, vector<8x32xf32> -> vector<8x32xf32>
    %c2_59 = arith.constant 2 : index
    %c0_60 = arith.constant 0 : index
    %c0_61 = arith.constant 0 : index
    %94 = vector.load %arg5[%c2_59, %c0_60, %c0_61] : memref<4x1x32xf32, #tpu.memory_space<vmem>>, vector<1x1x32xf32>
    %95 = vector.shape_cast %94 : vector<1x1x32xf32> to vector<1x32xf32>
    %96 = vector.broadcast %95 : vector<1x32xf32> to vector<8x32xf32>
    %97 = arith.addf %93, %96 : vector<8x32xf32>
    %c2_62 = arith.constant 2 : index
    %c0_63 = arith.constant 0 : index
    %c0_64 = arith.constant 0 : index
    %98 = vector.load %arg4[%c2_62, %c0_63, %c0_64] : memref<4x32x32xf32, #tpu.memory_space<vmem>>, vector<1x32x32xf32>
    %99 = vector.shape_cast %98 : vector<1x32x32xf32> to vector<32x32xf32>
    %cst_65 = arith.constant dense<0.000000e+00> : vector<8x32xf32>
    %100 = tpu.matmul %8, %99, %cst_65 {dimension_numbers = #tpu.dot_dimension_numbers<[1], [0], [0], [1], [0, 0, 1, 1], [], []>} : vector<8x32xf32>, vector<32x32xf32>, vector<8x32xf32> -> vector<8x32xf32>
    %101 = arith.addf %97, %100 : vector<8x32xf32>
    %102 = math.tanh %101 : vector<8x32xf32>
    %c3_66 = arith.constant 3 : index
    %c0_67 = arith.constant 0 : index
    %c0_68 = arith.constant 0 : index
    %103 = vector.load %arg3[%c3_66, %c0_67, %c0_68] : memref<4x32x32xf32, #tpu.memory_space<vmem>>, vector<1x32x32xf32>
    %104 = vector.shape_cast %103 : vector<1x32x32xf32> to vector<32x32xf32>
    %cst_69 = arith.constant dense<0.000000e+00> : vector<8x32xf32>
    %105 = tpu.matmul %58, %104, %cst_69 {dimension_numbers = #tpu.dot_dimension_numbers<[1], [0], [0], [1], [0, 0, 1, 1], [], []>} : vector<8x32xf32>, vector<32x32xf32>, vector<8x32xf32> -> vector<8x32xf32>
    %c3_70 = arith.constant 3 : index
    %c0_71 = arith.constant 0 : index
    %c0_72 = arith.constant 0 : index
    %106 = vector.load %arg5[%c3_70, %c0_71, %c0_72] : memref<4x1x32xf32, #tpu.memory_space<vmem>>, vector<1x1x32xf32>
    %107 = vector.shape_cast %106 : vector<1x1x32xf32> to vector<1x32xf32>
    %108 = vector.broadcast %107 : vector<1x32xf32> to vector<8x32xf32>
    %109 = arith.addf %105, %108 : vector<8x32xf32>
    %c3_73 = arith.constant 3 : index
    %c0_74 = arith.constant 0 : index
    %c0_75 = arith.constant 0 : index
    %110 = vector.load %arg4[%c3_73, %c0_74, %c0_75] : memref<4x32x32xf32, #tpu.memory_space<vmem>>, vector<1x32x32xf32>
    %111 = vector.shape_cast %110 : vector<1x32x32xf32> to vector<32x32xf32>
    %cst_76 = arith.constant dense<0.000000e+00> : vector<8x32xf32>
    %112 = tpu.matmul %8, %111, %cst_76 {dimension_numbers = #tpu.dot_dimension_numbers<[1], [0], [0], [1], [0, 0, 1, 1], [], []>} : vector<8x32xf32>, vector<32x32xf32>, vector<8x32xf32> -> vector<8x32xf32>
    %113 = arith.addf %109, %112 : vector<8x32xf32>
    %114 = arith.negf %113 : vector<8x32xf32>
    %115 = math.exp %114 : vector<8x32xf32>
    %cst_77 = arith.constant 1.000000e+00 : f32
    %116 = vector.broadcast %cst_77 : f32 to vector<8x32xf32>
    %117 = arith.addf %116, %115 : vector<8x32xf32>
    %118 = arith.divf %116, %117 : vector<8x32xf32>
    %119 = arith.mulf %90, %10 : vector<8x32xf32>
    %120 = arith.mulf %74, %102 : vector<8x32xf32>
    %121 = arith.addf %119, %120 : vector<8x32xf32>
    %122 = math.tanh %121 : vector<8x32xf32>
    %123 = arith.mulf %118, %122 : vector<8x32xf32>
    %124 = arith.index_cast %c0_i32_9 : i32 to index
    %c0_78 = arith.constant 0 : index
    %c0_79 = arith.constant 0 : index
    %125 = vector.load %arg6[%124, %c0_78, %c0_79] : memref<8x8x32xf32, #tpu.memory_space<vmem>>, vector<1x8x32xf32>
    %126 = vector.shape_cast %125 : vector<1x8x32xf32> to vector<8x32xf32>
    %127 = vector.shape_cast %123 : vector<8x32xf32> to vector<1x8x32xf32>
    tpu.vector_store %arg6[%124, %c0_78, %c0_79], %127 {strides = array<i32>} : memref<8x8x32xf32, #tpu.memory_space<vmem>>, vector<1x8x32xf32>,
    %c1_i32 = arith.constant 1 : i32
    %128 = arith.index_cast %c1_i32 : i32 to index
    %c0_80 = arith.constant 0 : index
    %c0_81 = arith.constant 0 : index
    %c0_82 = arith.constant 0 : index
    %129 = vector.load %arg1[%128, %c0_80, %c0_81, %c0_82] : memref<8x4x8x32xf32, #tpu.memory_space<vmem>>, vector<1x4x8x32xf32>
    %130 = vector.shape_cast %129 : vector<1x4x8x32xf32> to vector<4x8x32xf32>
    %131 = vector.extract_strided_slice %130 {offsets = [0, 0, 0], sizes = [1, 8, 32], strides = [1, 1, 1]} : vector<4x8x32xf32> to vector<1x8x32xf32>
    %132 = vector.shape_cast %131 : vector<1x8x32xf32> to vector<8x32xf32>
    %c0_83 = arith.constant 0 : index
    %c0_84 = arith.constant 0 : index
    %c0_85 = arith.constant 0 : index
    %133 = vector.load %arg2[%c0_83, %c0_84, %c0_85] : memref<4x32x32xf32, #tpu.memory_space<vmem>>, vector<1x32x32xf32>
    %134 = vector.shape_cast %133 : vector<1x32x32xf32> to vector<32x32xf32>
    %cst_86 = arith.constant dense<0.000000e+00> : vector<8x32xf32>
    %135 = tpu.matmul %58, %134, %cst_86 {dimension_numbers = #tpu.dot_dimension_numbers<[1], [0], [0], [1], [0, 0, 1, 1], [], []>} : vector<8x32xf32>, vector<32x32xf32>, vector<8x32xf32> -> vector<8x32xf32>
    %136 = arith.addf %132, %135 : vector<8x32xf32>
    %137 = arith.negf %136 : vector<8x32xf32>
    %138 = math.exp %137 : vector<8x32xf32>
    %cst_87 = arith.constant 1.000000e+00 : f32
    %139 = vector.broadcast %cst_87 : f32 to vector<8x32xf32>
    %140 = arith.addf %139, %138 : vector<8x32xf32>
    %141 = arith.divf %139, %140 : vector<8x32xf32>
    %142 = vector.extract_strided_slice %130 {offsets = [1, 0, 0], sizes = [1, 8, 32], strides = [1, 1, 1]} : vector<4x8x32xf32> to vector<1x8x32xf32>
    %143 = vector.shape_cast %142 : vector<1x8x32xf32> to vector<8x32xf32>
    %c1_88 = arith.constant 1 : index
    %c0_89 = arith.constant 0 : index
    %c0_90 = arith.constant 0 : index
    %144 = vector.load %arg2[%c1_88, %c0_89, %c0_90] : memref<4x32x32xf32, #tpu.memory_space<vmem>>, vector<1x32x32xf32>
    %145 = vector.shape_cast %144 : vector<1x32x32xf32> to vector<32x32xf32>
    %cst_91 = arith.constant dense<0.000000e+00> : vector<8x32xf32>
    %146 = tpu.matmul %58, %145, %cst_91 {dimension_numbers = #tpu.dot_dimension_numbers<[1], [0], [0], [1], [0, 0, 1, 1], [], []>} : vector<8x32xf32>, vector<32x32xf32>, vector<8x32xf32> -> vector<8x32xf32>
    %147 = arith.addf %143, %146 : vector<8x32xf32>
    %148 = arith.negf %147 : vector<8x32xf32>
    %149 = math.exp %148 : vector<8x32xf32>
    %cst_92 = arith.constant 1.000000e+00 : f32
    %150 = vector.broadcast %cst_92 : f32 to vector<8x32xf32>
    %151 = arith.addf %150, %149 : vector<8x32xf32>
    %152 = arith.divf %150, %151 : vector<8x32xf32>
    %153 = vector.extract_strided_slice %130 {offsets = [2, 0, 0], sizes = [1, 8, 32], strides = [1, 1, 1]} : vector<4x8x32xf32> to vector<1x8x32xf32>
    %154 = vector.shape_cast %153 : vector<1x8x32xf32> to vector<8x32xf32>
    %c2_93 = arith.constant 2 : index
    %c0_94 = arith.constant 0 : index
    %c0_95 = arith.constant 0 : index
    %155 = vector.load %arg2[%c2_93, %c0_94, %c0_95] : memref<4x32x32xf32, #tpu.memory_space<vmem>>, vector<1x32x32xf32>
    %156 = vector.shape_cast %155 : vector<1x32x32xf32> to vector<32x32xf32>
    %cst_96 = arith.constant dense<0.000000e+00> : vector<8x32xf32>
    %157 = tpu.matmul %58, %156, %cst_96 {dimension_numbers = #tpu.dot_dimension_numbers<[1], [0], [0], [1], [0, 0, 1, 1], [], []>} : vector<8x32xf32>, vector<32x32xf32>, vector<8x32xf32> -> vector<8x32xf32>
    %158 = arith.addf %154, %157 : vector<8x32xf32>
    %159 = math.tanh %158 : vector<8x32xf32>
    %160 = vector.extract_strided_slice %130 {offsets = [3, 0, 0], sizes = [1, 8, 32], strides = [1, 1, 1]} : vector<4x8x32xf32> to vector<1x8x32xf32>
    %161 = vector.shape_cast %160 : vector<1x8x32xf32> to vector<8x32xf32>
    %c3_97 = arith.constant 3 : index
    %c0_98 = arith.constant 0 : index
    %c0_99 = arith.constant 0 : index
    %162 = vector.load %arg2[%c3_97, %c0_98, %c0_99] : memref<4x32x32xf32, #tpu.memory_space<vmem>>, vector<1x32x32xf32>
    %163 = vector.shape_cast %162 : vector<1x32x32xf32> to vector<32x32xf32>
    %cst_100 = arith.constant dense<0.000000e+00> : vector<8x32xf32>
    %164 = tpu.matmul %58, %163, %cst_100 {dimension_numbers = #tpu.dot_dimension_numbers<[1], [0], [0], [1], [0, 0, 1, 1], [], []>} : vector<8x32xf32>, vector<32x32xf32>, vector<8x32xf32> -> vector<8x32xf32>
    %165 = arith.addf %161, %164 : vector<8x32xf32>
    %166 = arith.negf %165 : vector<8x32xf32>
    %167 = math.exp %166 : vector<8x32xf32>
    %cst_101 = arith.constant 1.000000e+00 : f32
    %168 = vector.broadcast %cst_101 : f32 to vector<8x32xf32>
    %169 = arith.addf %168, %167 : vector<8x32xf32>
    %170 = arith.divf %168, %169 : vector<8x32xf32>
    %171 = arith.mulf %152, %56 : vector<8x32xf32>
    %172 = arith.mulf %141, %159 : vector<8x32xf32>
    %173 = arith.addf %171, %172 : vector<8x32xf32>
    %174 = math.tanh %173 : vector<8x32xf32>
    %175 = arith.mulf %170, %174 : vector<8x32xf32>
    %c0_102 = arith.constant 0 : index
    %c0_103 = arith.constant 0 : index
    %c0_104 = arith.constant 0 : index
    %176 = vector.load %arg3[%c0_102, %c0_103, %c0_104] : memref<4x32x32xf32, #tpu.memory_space<vmem>>, vector<1x32x32xf32>
    %177 = vector.shape_cast %176 : vector<1x32x32xf32> to vector<32x32xf32>
    %cst_105 = arith.constant dense<0.000000e+00> : vector<8x32xf32>
    %178 = tpu.matmul %175, %177, %cst_105 {dimension_numbers = #tpu.dot_dimension_numbers<[1], [0], [0], [1], [0, 0, 1, 1], [], []>} : vector<8x32xf32>, vector<32x32xf32>, vector<8x32xf32> -> vector<8x32xf32>
    %c0_106 = arith.constant 0 : index
    %c0_107 = arith.constant 0 : index
    %c0_108 = arith.constant 0 : index
    %179 = vector.load %arg5[%c0_106, %c0_107, %c0_108] : memref<4x1x32xf32, #tpu.memory_space<vmem>>, vector<1x1x32xf32>
    %180 = vector.shape_cast %179 : vector<1x1x32xf32> to vector<1x32xf32>
    %181 = vector.broadcast %180 : vector<1x32xf32> to vector<8x32xf32>
    %182 = arith.addf %178, %181 : vector<8x32xf32>
    %c0_109 = arith.constant 0 : index
    %c0_110 = arith.constant 0 : index
    %c0_111 = arith.constant 0 : index
    %183 = vector.load %arg4[%c0_109, %c0_110, %c0_111] : memref<4x32x32xf32, #tpu.memory_space<vmem>>, vector<1x32x32xf32>
    %184 = vector.shape_cast %183 : vector<1x32x32xf32> to vector<32x32xf32>
    %cst_112 = arith.constant dense<0.000000e+00> : vector<8x32xf32>
    %185 = tpu.matmul %123, %184, %cst_112 {dimension_numbers = #tpu.dot_dimension_numbers<[1], [0], [0], [1], [0, 0, 1, 1], [], []>} : vector<8x32xf32>, vector<32x32xf32>, vector<8x32xf32> -> vector<8x32xf32>
    %186 = arith.addf %182, %185 : vector<8x32xf32>
    %187 = arith.negf %186 : vector<8x32xf32>
    %188 = math.exp %187 : vector<8x32xf32>
    %cst_113 = arith.constant 1.000000e+00 : f32
    %189 = vector.broadcast %cst_113 : f32 to vector<8x32xf32>
    %190 = arith.addf %189, %188 : vector<8x32xf32>
    %191 = arith.divf %189, %190 : vector<8x32xf32>
    %c1_114 = arith.constant 1 : index
    %c0_115 = arith.constant 0 : index
    %c0_116 = arith.constant 0 : index
    %192 = vector.load %arg3[%c1_114, %c0_115, %c0_116] : memref<4x32x32xf32, #tpu.memory_space<vmem>>, vector<1x32x32xf32>
    %193 = vector.shape_cast %192 : vector<1x32x32xf32> to vector<32x32xf32>
    %cst_117 = arith.constant dense<0.000000e+00> : vector<8x32xf32>
    %194 = tpu.matmul %175, %193, %cst_117 {dimension_numbers = #tpu.dot_dimension_numbers<[1], [0], [0], [1], [0, 0, 1, 1], [], []>} : vector<8x32xf32>, vector<32x32xf32>, vector<8x32xf32> -> vector<8x32xf32>
    %c1_118 = arith.constant 1 : index
    %c0_119 = arith.constant 0 : index
    %c0_120 = arith.constant 0 : index
    %195 = vector.load %arg5[%c1_118, %c0_119, %c0_120] : memref<4x1x32xf32, #tpu.memory_space<vmem>>, vector<1x1x32xf32>
    %196 = vector.shape_cast %195 : vector<1x1x32xf32> to vector<1x32xf32>
    %197 = vector.broadcast %196 : vector<1x32xf32> to vector<8x32xf32>
    %198 = arith.addf %194, %197 : vector<8x32xf32>
    %c1_121 = arith.constant 1 : index
    %c0_122 = arith.constant 0 : index
    %c0_123 = arith.constant 0 : index
    %199 = vector.load %arg4[%c1_121, %c0_122, %c0_123] : memref<4x32x32xf32, #tpu.memory_space<vmem>>, vector<1x32x32xf32>
    %200 = vector.shape_cast %199 : vector<1x32x32xf32> to vector<32x32xf32>
    %cst_124 = arith.constant dense<0.000000e+00> : vector<8x32xf32>
    %201 = tpu.matmul %123, %200, %cst_124 {dimension_numbers = #tpu.dot_dimension_numbers<[1], [0], [0], [1], [0, 0, 1, 1], [], []>} : vector<8x32xf32>, vector<32x32xf32>, vector<8x32xf32> -> vector<8x32xf32>
    %202 = arith.addf %198, %201 : vector<8x32xf32>
    %203 = arith.negf %202 : vector<8x32xf32>
    %204 = math.exp %203 : vector<8x32xf32>
    %cst_125 = arith.constant 1.000000e+00 : f32
    %205 = vector.broadcast %cst_125 : f32 to vector<8x32xf32>
    %206 = arith.addf %205, %204 : vector<8x32xf32>
    %207 = arith.divf %205, %206 : vector<8x32xf32>
    %c2_126 = arith.constant 2 : index
    %c0_127 = arith.constant 0 : index
    %c0_128 = arith.constant 0 : index
    %208 = vector.load %arg3[%c2_126, %c0_127, %c0_128] : memref<4x32x32xf32, #tpu.memory_space<vmem>>, vector<1x32x32xf32>
    %209 = vector.shape_cast %208 : vector<1x32x32xf32> to vector<32x32xf32>
    %cst_129 = arith.constant dense<0.000000e+00> : vector<8x32xf32>
    %210 = tpu.matmul %175, %209, %cst_129 {dimension_numbers = #tpu.dot_dimension_numbers<[1], [0], [0], [1], [0, 0, 1, 1], [], []>} : vector<8x32xf32>, vector<32x32xf32>, vector<8x32xf32> -> vector<8x32xf32>
    %c2_130 = arith.constant 2 : index
    %c0_131 = arith.constant 0 : index
    %c0_132 = arith.constant 0 : index
    %211 = vector.load %arg5[%c2_130, %c0_131, %c0_132] : memref<4x1x32xf32, #tpu.memory_space<vmem>>, vector<1x1x32xf32>
    %212 = vector.shape_cast %211 : vector<1x1x32xf32> to vector<1x32xf32>
    %213 = vector.broadcast %212 : vector<1x32xf32> to vector<8x32xf32>
    %214 = arith.addf %210, %213 : vector<8x32xf32>
    %c2_133 = arith.constant 2 : index
    %c0_134 = arith.constant 0 : index
    %c0_135 = arith.constant 0 : index
    %215 = vector.load %arg4[%c2_133, %c0_134, %c0_135] : memref<4x32x32xf32, #tpu.memory_space<vmem>>, vector<1x32x32xf32>
    %216 = vector.shape_cast %215 : vector<1x32x32xf32> to vector<32x32xf32>
    %cst_136 = arith.constant dense<0.000000e+00> : vector<8x32xf32>
    %217 = tpu.matmul %123, %216, %cst_136 {dimension_numbers = #tpu.dot_dimension_numbers<[1], [0], [0], [1], [0, 0, 1, 1], [], []>} : vector<8x32xf32>, vector<32x32xf32>, vector<8x32xf32> -> vector<8x32xf32>
    %218 = arith.addf %214, %217 : vector<8x32xf32>
    %219 = math.tanh %218 : vector<8x32xf32>
    %c3_137 = arith.constant 3 : index
    %c0_138 = arith.constant 0 : index
    %c0_139 = arith.constant 0 : index
    %220 = vector.load %arg3[%c3_137, %c0_138, %c0_139] : memref<4x32x32xf32, #tpu.memory_space<vmem>>, vector<1x32x32xf32>
    %221 = vector.shape_cast %220 : vector<1x32x32xf32> to vector<32x32xf32>
    %cst_140 = arith.constant dense<0.000000e+00> : vector<8x32xf32>
    %222 = tpu.matmul %175, %221, %cst_140 {dimension_numbers = #tpu.dot_dimension_numbers<[1], [0], [0], [1], [0, 0, 1, 1], [], []>} : vector<8x32xf32>, vector<32x32xf32>, vector<8x32xf32> -> vector<8x32xf32>
    %c3_141 = arith.constant 3 : index
    %c0_142 = arith.constant 0 : index
    %c0_143 = arith.constant 0 : index
    %223 = vector.load %arg5[%c3_141, %c0_142, %c0_143] : memref<4x1x32xf32, #tpu.memory_space<vmem>>, vector<1x1x32xf32>
    %224 = vector.shape_cast %223 : vector<1x1x32xf32> to vector<1x32xf32>
    %225 = vector.broadcast %224 : vector<1x32xf32> to vector<8x32xf32>
    %226 = arith.addf %222, %225 : vector<8x32xf32>
    %c3_144 = arith.constant 3 : index
    %c0_145 = arith.constant 0 : index
    %c0_146 = arith.constant 0 : index
    %227 = vector.load %arg4[%c3_144, %c0_145, %c0_146] : memref<4x32x32xf32, #tpu.memory_space<vmem>>, vector<1x32x32xf32>
    %228 = vector.shape_cast %227 : vector<1x32x32xf32> to vector<32x32xf32>
    %cst_147 = arith.constant dense<0.000000e+00> : vector<8x32xf32>
    %229 = tpu.matmul %123, %228, %cst_147 {dimension_numbers = #tpu.dot_dimension_numbers<[1], [0], [0], [1], [0, 0, 1, 1], [], []>} : vector<8x32xf32>, vector<32x32xf32>, vector<8x32xf32> -> vector<8x32xf32>
    %230 = arith.addf %226, %229 : vector<8x32xf32>
    %231 = arith.negf %230 : vector<8x32xf32>
    %232 = math.exp %231 : vector<8x32xf32>
    %cst_148 = arith.constant 1.000000e+00 : f32
    %233 = vector.broadcast %cst_148 : f32 to vector<8x32xf32>
    %234 = arith.addf %233, %232 : vector<8x32xf32>
    %235 = arith.divf %233, %234 : vector<8x32xf32>
    %236 = arith.mulf %207, %121 : vector<8x32xf32>
    %237 = arith.mulf %191, %219 : vector<8x32xf32>
    %238 = arith.addf %236, %237 : vector<8x32xf32>
    %239 = math.tanh %238 : vector<8x32xf32>
    %240 = arith.mulf %235, %239 : vector<8x32xf32>
    %241 = arith.index_cast %c1_i32 : i32 to index
    %c0_149 = arith.constant 0 : index
    %c0_150 = arith.constant 0 : index
    %242 = vector.load %arg6[%241, %c0_149, %c0_150] : memref<8x8x32xf32, #tpu.memory_space<vmem>>, vector<1x8x32xf32>
    %243 = vector.shape_cast %242 : vector<1x8x32xf32> to vector<8x32xf32>
    %244 = vector.shape_cast %240 : vector<8x32xf32> to vector<1x8x32xf32>
    tpu.vector_store %arg6[%241, %c0_149, %c0_150], %244 {strides = array<i32>} : memref<8x8x32xf32, #tpu.memory_space<vmem>>, vector<1x8x32xf32>,
    %c2_i32 = arith.constant 2 : i32
    %245 = arith.index_cast %c2_i32 : i32 to index
    %c0_151 = arith.constant 0 : index
    %c0_152 = arith.constant 0 : index
    %c0_153 = arith.constant 0 : index
    %246 = vector.load %arg1[%245, %c0_151, %c0_152, %c0_153] : memref<8x4x8x32xf32, #tpu.memory_space<vmem>>, vector<1x4x8x32xf32>
    %247 = vector.shape_cast %246 : vector<1x4x8x32xf32> to vector<4x8x32xf32>
    %248 = vector.extract_strided_slice %247 {offsets = [0, 0, 0], sizes = [1, 8, 32], strides = [1, 1, 1]} : vector<4x8x32xf32> to vector<1x8x32xf32>
    %249 = vector.shape_cast %248 : vector<1x8x32xf32> to vector<8x32xf32>
    %c0_154 = arith.constant 0 : index
    %c0_155 = arith.constant 0 : index
    %c0_156 = arith.constant 0 : index
    %250 = vector.load %arg2[%c0_154, %c0_155, %c0_156] : memref<4x32x32xf32, #tpu.memory_space<vmem>>, vector<1x32x32xf32>
    %251 = vector.shape_cast %250 : vector<1x32x32xf32> to vector<32x32xf32>
    %cst_157 = arith.constant dense<0.000000e+00> : vector<8x32xf32>
    %252 = tpu.matmul %175, %251, %cst_157 {dimension_numbers = #tpu.dot_dimension_numbers<[1], [0], [0], [1], [0, 0, 1, 1], [], []>} : vector<8x32xf32>, vector<32x32xf32>, vector<8x32xf32> -> vector<8x32xf32>
    %253 = arith.addf %249, %252 : vector<8x32xf32>
    %254 = arith.negf %253 : vector<8x32xf32>
    %255 = math.exp %254 : vector<8x32xf32>
    %cst_158 = arith.constant 1.000000e+00 : f32
    %256 = vector.broadcast %cst_158 : f32 to vector<8x32xf32>
    %257 = arith.addf %256, %255 : vector<8x32xf32>
    %258 = arith.divf %256, %257 : vector<8x32xf32>
    %259 = vector.extract_strided_slice %247 {offsets = [1, 0, 0], sizes = [1, 8, 32], strides = [1, 1, 1]} : vector<4x8x32xf32> to vector<1x8x32xf32>
    %260 = vector.shape_cast %259 : vector<1x8x32xf32> to vector<8x32xf32>
    %c1_159 = arith.constant 1 : index
    %c0_160 = arith.constant 0 : index
    %c0_161 = arith.constant 0 : index
    %261 = vector.load %arg2[%c1_159, %c0_160, %c0_161] : memref<4x32x32xf32, #tpu.memory_space<vmem>>, vector<1x32x32xf32>
    %262 = vector.shape_cast %261 : vector<1x32x32xf32> to vector<32x32xf32>
    %cst_162 = arith.constant dense<0.000000e+00> : vector<8x32xf32>
    %263 = tpu.matmul %175, %262, %cst_162 {dimension_numbers = #tpu.dot_dimension_numbers<[1], [0], [0], [1], [0, 0, 1, 1], [], []>} : vector<8x32xf32>, vector<32x32xf32>, vector<8x32xf32> -> vector<8x32xf32>
    %264 = arith.addf %260, %263 : vector<8x32xf32>
    %265 = arith.negf %264 : vector<8x32xf32>
    %266 = math.exp %265 : vector<8x32xf32>
    %cst_163 = arith.constant 1.000000e+00 : f32
    %267 = vector.broadcast %cst_163 : f32 to vector<8x32xf32>
    %268 = arith.addf %267, %266 : vector<8x32xf32>
    %269 = arith.divf %267, %268 : vector<8x32xf32>
    %270 = vector.extract_strided_slice %247 {offsets = [2, 0, 0], sizes = [1, 8, 32], strides = [1, 1, 1]} : vector<4x8x32xf32> to vector<1x8x32xf32>
    %271 = vector.shape_cast %270 : vector<1x8x32xf32> to vector<8x32xf32>
    %c2_164 = arith.constant 2 : index
    %c0_165 = arith.constant 0 : index
    %c0_166 = arith.constant 0 : index
    %272 = vector.load %arg2[%c2_164, %c0_165, %c0_166] : memref<4x32x32xf32, #tpu.memory_space<vmem>>, vector<1x32x32xf32>
    %273 = vector.shape_cast %272 : vector<1x32x32xf32> to vector<32x32xf32>
    %cst_167 = arith.constant dense<0.000000e+00> : vector<8x32xf32>
    %274 = tpu.matmul %175, %273, %cst_167 {dimension_numbers = #tpu.dot_dimension_numbers<[1], [0], [0], [1], [0, 0, 1, 1], [], []>} : vector<8x32xf32>, vector<32x32xf32>, vector<8x32xf32> -> vector<8x32xf32>
    %275 = arith.addf %271, %274 : vector<8x32xf32>
    %276 = math.tanh %275 : vector<8x32xf32>
    %277 = vector.extract_strided_slice %247 {offsets = [3, 0, 0], sizes = [1, 8, 32], strides = [1, 1, 1]} : vector<4x8x32xf32> to vector<1x8x32xf32>
    %278 = vector.shape_cast %277 : vector<1x8x32xf32> to vector<8x32xf32>
    %c3_168 = arith.constant 3 : index
    %c0_169 = arith.constant 0 : index
    %c0_170 = arith.constant 0 : index
    %279 = vector.load %arg2[%c3_168, %c0_169, %c0_170] : memref<4x32x32xf32, #tpu.memory_space<vmem>>, vector<1x32x32xf32>
    %280 = vector.shape_cast %279 : vector<1x32x32xf32> to vector<32x32xf32>
    %cst_171 = arith.constant dense<0.000000e+00> : vector<8x32xf32>
    %281 = tpu.matmul %175, %280, %cst_171 {dimension_numbers = #tpu.dot_dimension_numbers<[1], [0], [0], [1], [0, 0, 1, 1], [], []>} : vector<8x32xf32>, vector<32x32xf32>, vector<8x32xf32> -> vector<8x32xf32>
    %282 = arith.addf %278, %281 : vector<8x32xf32>
    %283 = arith.negf %282 : vector<8x32xf32>
    %284 = math.exp %283 : vector<8x32xf32>
    %cst_172 = arith.constant 1.000000e+00 : f32
    %285 = vector.broadcast %cst_172 : f32 to vector<8x32xf32>
    %286 = arith.addf %285, %284 : vector<8x32xf32>
    %287 = arith.divf %285, %286 : vector<8x32xf32>
    %288 = arith.mulf %269, %173 : vector<8x32xf32>
    %289 = arith.mulf %258, %276 : vector<8x32xf32>
    %290 = arith.addf %288, %289 : vector<8x32xf32>
    %291 = math.tanh %290 : vector<8x32xf32>
    %292 = arith.mulf %287, %291 : vector<8x32xf32>
    %c0_173 = arith.constant 0 : index
    %c0_174 = arith.constant 0 : index
    %c0_175 = arith.constant 0 : index
    %293 = vector.load %arg3[%c0_173, %c0_174, %c0_175] : memref<4x32x32xf32, #tpu.memory_space<vmem>>, vector<1x32x32xf32>
    %294 = vector.shape_cast %293 : vector<1x32x32xf32> to vector<32x32xf32>
    %cst_176 = arith.constant dense<0.000000e+00> : vector<8x32xf32>
    %295 = tpu.matmul %292, %294, %cst_176 {dimension_numbers = #tpu.dot_dimension_numbers<[1], [0], [0], [1], [0, 0, 1, 1], [], []>} : vector<8x32xf32>, vector<32x32xf32>, vector<8x32xf32> -> vector<8x32xf32>
    %c0_177 = arith.constant 0 : index
    %c0_178 = arith.constant 0 : index
    %c0_179 = arith.constant 0 : index
    %296 = vector.load %arg5[%c0_177, %c0_178, %c0_179] : memref<4x1x32xf32, #tpu.memory_space<vmem>>, vector<1x1x32xf32>
    %297 = vector.shape_cast %296 : vector<1x1x32xf32> to vector<1x32xf32>
    %298 = vector.broadcast %297 : vector<1x32xf32> to vector<8x32xf32>
    %299 = arith.addf %295, %298 : vector<8x32xf32>
    %c0_180 = arith.constant 0 : index
    %c0_181 = arith.constant 0 : index
    %c0_182 = arith.constant 0 : index
    %300 = vector.load %arg4[%c0_180, %c0_181, %c0_182] : memref<4x32x32xf32, #tpu.memory_space<vmem>>, vector<1x32x32xf32>
    %301 = vector.shape_cast %300 : vector<1x32x32xf32> to vector<32x32xf32>
    %cst_183 = arith.constant dense<0.000000e+00> : vector<8x32xf32>
    %302 = tpu.matmul %240, %301, %cst_183 {dimension_numbers = #tpu.dot_dimension_numbers<[1], [0], [0], [1], [0, 0, 1, 1], [], []>} : vector<8x32xf32>, vector<32x32xf32>, vector<8x32xf32> -> vector<8x32xf32>
    %303 = arith.addf %299, %302 : vector<8x32xf32>
    %304 = arith.negf %303 : vector<8x32xf32>
    %305 = math.exp %304 : vector<8x32xf32>
    %cst_184 = arith.constant 1.000000e+00 : f32
    %306 = vector.broadcast %cst_184 : f32 to vector<8x32xf32>
    %307 = arith.addf %306, %305 : vector<8x32xf32>
    %308 = arith.divf %306, %307 : vector<8x32xf32>
    %c1_185 = arith.constant 1 : index
    %c0_186 = arith.constant 0 : index
    %c0_187 = arith.constant 0 : index
    %309 = vector.load %arg3[%c1_185, %c0_186, %c0_187] : memref<4x32x32xf32, #tpu.memory_space<vmem>>, vector<1x32x32xf32>
    %310 = vector.shape_cast %309 : vector<1x32x32xf32> to vector<32x32xf32>
    %cst_188 = arith.constant dense<0.000000e+00> : vector<8x32xf32>
    %311 = tpu.matmul %292, %310, %cst_188 {dimension_numbers = #tpu.dot_dimension_numbers<[1], [0], [0], [1], [0, 0, 1, 1], [], []>} : vector<8x32xf32>, vector<32x32xf32>, vector<8x32xf32> -> vector<8x32xf32>
    %c1_189 = arith.constant 1 : index
    %c0_190 = arith.constant 0 : index
    %c0_191 = arith.constant 0 : index
    %312 = vector.load %arg5[%c1_189, %c0_190, %c0_191] : memref<4x1x32xf32, #tpu.memory_space<vmem>>, vector<1x1x32xf32>
    %313 = vector.shape_cast %312 : vector<1x1x32xf32> to vector<1x32xf32>
    %314 = vector.broadcast %313 : vector<1x32xf32> to vector<8x32xf32>
    %315 = arith.addf %311, %314 : vector<8x32xf32>
    %c1_192 = arith.constant 1 : index
    %c0_193 = arith.constant 0 : index
    %c0_194 = arith.constant 0 : index
    %316 = vector.load %arg4[%c1_192, %c0_193, %c0_194] : memref<4x32x32xf32, #tpu.memory_space<vmem>>, vector<1x32x32xf32>
    %317 = vector.shape_cast %316 : vector<1x32x32xf32> to vector<32x32xf32>
    %cst_195 = arith.constant dense<0.000000e+00> : vector<8x32xf32>
    %318 = tpu.matmul %240, %317, %cst_195 {dimension_numbers = #tpu.dot_dimension_numbers<[1], [0], [0], [1], [0, 0, 1, 1], [], []>} : vector<8x32xf32>, vector<32x32xf32>, vector<8x32xf32> -> vector<8x32xf32>
    %319 = arith.addf %315, %318 : vector<8x32xf32>
    %320 = arith.negf %319 : vector<8x32xf32>
    %321 = math.exp %320 : vector<8x32xf32>
    %cst_196 = arith.constant 1.000000e+00 : f32
    %322 = vector.broadcast %cst_196 : f32 to vector<8x32xf32>
    %323 = arith.addf %322, %321 : vector<8x32xf32>
    %324 = arith.divf %322, %323 : vector<8x32xf32>
    %c2_197 = arith.constant 2 : index
    %c0_198 = arith.constant 0 : index
    %c0_199 = arith.constant 0 : index
    %325 = vector.load %arg3[%c2_197, %c0_198, %c0_199] : memref<4x32x32xf32, #tpu.memory_space<vmem>>, vector<1x32x32xf32>
    %326 = vector.shape_cast %325 : vector<1x32x32xf32> to vector<32x32xf32>
    %cst_200 = arith.constant dense<0.000000e+00> : vector<8x32xf32>
    %327 = tpu.matmul %292, %326, %cst_200 {dimension_numbers = #tpu.dot_dimension_numbers<[1], [0], [0], [1], [0, 0, 1, 1], [], []>} : vector<8x32xf32>, vector<32x32xf32>, vector<8x32xf32> -> vector<8x32xf32>
    %c2_201 = arith.constant 2 : index
    %c0_202 = arith.constant 0 : index
    %c0_203 = arith.constant 0 : index
    %328 = vector.load %arg5[%c2_201, %c0_202, %c0_203] : memref<4x1x32xf32, #tpu.memory_space<vmem>>, vector<1x1x32xf32>
    %329 = vector.shape_cast %328 : vector<1x1x32xf32> to vector<1x32xf32>
    %330 = vector.broadcast %329 : vector<1x32xf32> to vector<8x32xf32>
    %331 = arith.addf %327, %330 : vector<8x32xf32>
    %c2_204 = arith.constant 2 : index
    %c0_205 = arith.constant 0 : index
    %c0_206 = arith.constant 0 : index
    %332 = vector.load %arg4[%c2_204, %c0_205, %c0_206] : memref<4x32x32xf32, #tpu.memory_space<vmem>>, vector<1x32x32xf32>
    %333 = vector.shape_cast %332 : vector<1x32x32xf32> to vector<32x32xf32>
    %cst_207 = arith.constant dense<0.000000e+00> : vector<8x32xf32>
    %334 = tpu.matmul %240, %333, %cst_207 {dimension_numbers = #tpu.dot_dimension_numbers<[1], [0], [0], [1], [0, 0, 1, 1], [], []>} : vector<8x32xf32>, vector<32x32xf32>, vector<8x32xf32> -> vector<8x32xf32>
    %335 = arith.addf %331, %334 : vector<8x32xf32>
    %336 = math.tanh %335 : vector<8x32xf32>
    %c3_208 = arith.constant 3 : index
    %c0_209 = arith.constant 0 : index
    %c0_210 = arith.constant 0 : index
    %337 = vector.load %arg3[%c3_208, %c0_209, %c0_210] : memref<4x32x32xf32, #tpu.memory_space<vmem>>, vector<1x32x32xf32>
    %338 = vector.shape_cast %337 : vector<1x32x32xf32> to vector<32x32xf32>
    %cst_211 = arith.constant dense<0.000000e+00> : vector<8x32xf32>
    %339 = tpu.matmul %292, %338, %cst_211 {dimension_numbers = #tpu.dot_dimension_numbers<[1], [0], [0], [1], [0, 0, 1, 1], [], []>} : vector<8x32xf32>, vector<32x32xf32>, vector<8x32xf32> -> vector<8x32xf32>
    %c3_212 = arith.constant 3 : index
    %c0_213 = arith.constant 0 : index
    %c0_214 = arith.constant 0 : index
    %340 = vector.load %arg5[%c3_212, %c0_213, %c0_214] : memref<4x1x32xf32, #tpu.memory_space<vmem>>, vector<1x1x32xf32>
    %341 = vector.shape_cast %340 : vector<1x1x32xf32> to vector<1x32xf32>
    %342 = vector.broadcast %341 : vector<1x32xf32> to vector<8x32xf32>
    %343 = arith.addf %339, %342 : vector<8x32xf32>
    %c3_215 = arith.constant 3 : index
    %c0_216 = arith.constant 0 : index
    %c0_217 = arith.constant 0 : index
    %344 = vector.load %arg4[%c3_215, %c0_216, %c0_217] : memref<4x32x32xf32, #tpu.memory_space<vmem>>, vector<1x32x32xf32>
    %345 = vector.shape_cast %344 : vector<1x32x32xf32> to vector<32x32xf32>
    %cst_218 = arith.constant dense<0.000000e+00> : vector<8x32xf32>
    %346 = tpu.matmul %240, %345, %cst_218 {dimension_numbers = #tpu.dot_dimension_numbers<[1], [0], [0], [1], [0, 0, 1, 1], [], []>} : vector<8x32xf32>, vector<32x32xf32>, vector<8x32xf32> -> vector<8x32xf32>
    %347 = arith.addf %343, %346 : vector<8x32xf32>
    %348 = arith.negf %347 : vector<8x32xf32>
    %349 = math.exp %348 : vector<8x32xf32>
    %cst_219 = arith.constant 1.000000e+00 : f32
    %350 = vector.broadcast %cst_219 : f32 to vector<8x32xf32>
    %351 = arith.addf %350, %349 : vector<8x32xf32>
    %352 = arith.divf %350, %351 : vector<8x32xf32>
    %353 = arith.mulf %324, %238 : vector<8x32xf32>
    %354 = arith.mulf %308, %336 : vector<8x32xf32>
    %355 = arith.addf %353, %354 : vector<8x32xf32>
    %356 = math.tanh %355 : vector<8x32xf32>
    %357 = arith.mulf %352, %356 : vector<8x32xf32>
    %358 = arith.index_cast %c2_i32 : i32 to index
    %c0_220 = arith.constant 0 : index
    %c0_221 = arith.constant 0 : index
    %359 = vector.load %arg6[%358, %c0_220, %c0_221] : memref<8x8x32xf32, #tpu.memory_space<vmem>>, vector<1x8x32xf32>
    %360 = vector.shape_cast %359 : vector<1x8x32xf32> to vector<8x32xf32>
    %361 = vector.shape_cast %357 : vector<8x32xf32> to vector<1x8x32xf32>
    tpu.vector_store %arg6[%358, %c0_220, %c0_221], %361 {strides = array<i32>} : memref<8x8x32xf32, #tpu.memory_space<vmem>>, vector<1x8x32xf32>,
    %c3_i32 = arith.constant 3 : i32
    %362 = arith.index_cast %c3_i32 : i32 to index
    %c0_222 = arith.constant 0 : index
    %c0_223 = arith.constant 0 : index
    %c0_224 = arith.constant 0 : index
    %363 = vector.load %arg1[%362, %c0_222, %c0_223, %c0_224] : memref<8x4x8x32xf32, #tpu.memory_space<vmem>>, vector<1x4x8x32xf32>
    %364 = vector.shape_cast %363 : vector<1x4x8x32xf32> to vector<4x8x32xf32>
    %365 = vector.extract_strided_slice %364 {offsets = [0, 0, 0], sizes = [1, 8, 32], strides = [1, 1, 1]} : vector<4x8x32xf32> to vector<1x8x32xf32>
    %366 = vector.shape_cast %365 : vector<1x8x32xf32> to vector<8x32xf32>
    %c0_225 = arith.constant 0 : index
    %c0_226 = arith.constant 0 : index
    %c0_227 = arith.constant 0 : index
    %367 = vector.load %arg2[%c0_225, %c0_226, %c0_227] : memref<4x32x32xf32, #tpu.memory_space<vmem>>, vector<1x32x32xf32>
    %368 = vector.shape_cast %367 : vector<1x32x32xf32> to vector<32x32xf32>
    %cst_228 = arith.constant dense<0.000000e+00> : vector<8x32xf32>
    %369 = tpu.matmul %292, %368, %cst_228 {dimension_numbers = #tpu.dot_dimension_numbers<[1], [0], [0], [1], [0, 0, 1, 1], [], []>} : vector<8x32xf32>, vector<32x32xf32>, vector<8x32xf32> -> vector<8x32xf32>
    %370 = arith.addf %366, %369 : vector<8x32xf32>
    %371 = arith.negf %370 : vector<8x32xf32>
    %372 = math.exp %371 : vector<8x32xf32>
    %cst_229 = arith.constant 1.000000e+00 : f32
    %373 = vector.broadcast %cst_229 : f32 to vector<8x32xf32>
    %374 = arith.addf %373, %372 : vector<8x32xf32>
    %375 = arith.divf %373, %374 : vector<8x32xf32>
    %376 = vector.extract_strided_slice %364 {offsets = [1, 0, 0], sizes = [1, 8, 32], strides = [1, 1, 1]} : vector<4x8x32xf32> to vector<1x8x32xf32>
    %377 = vector.shape_cast %376 : vector<1x8x32xf32> to vector<8x32xf32>
    %c1_230 = arith.constant 1 : index
    %c0_231 = arith.constant 0 : index
    %c0_232 = arith.constant 0 : index
    %378 = vector.load %arg2[%c1_230, %c0_231, %c0_232] : memref<4x32x32xf32, #tpu.memory_space<vmem>>, vector<1x32x32xf32>
    %379 = vector.shape_cast %378 : vector<1x32x32xf32> to vector<32x32xf32>
    %cst_233 = arith.constant dense<0.000000e+00> : vector<8x32xf32>
    %380 = tpu.matmul %292, %379, %cst_233 {dimension_numbers = #tpu.dot_dimension_numbers<[1], [0], [0], [1], [0, 0, 1, 1], [], []>} : vector<8x32xf32>, vector<32x32xf32>, vector<8x32xf32> -> vector<8x32xf32>
    %381 = arith.addf %377, %380 : vector<8x32xf32>
    %382 = arith.negf %381 : vector<8x32xf32>
    %383 = math.exp %382 : vector<8x32xf32>
    %cst_234 = arith.constant 1.000000e+00 : f32
    %384 = vector.broadcast %cst_234 : f32 to vector<8x32xf32>
    %385 = arith.addf %384, %383 : vector<8x32xf32>
    %386 = arith.divf %384, %385 : vector<8x32xf32>
    %387 = vector.extract_strided_slice %364 {offsets = [2, 0, 0], sizes = [1, 8, 32], strides = [1, 1, 1]} : vector<4x8x32xf32> to vector<1x8x32xf32>
    %388 = vector.shape_cast %387 : vector<1x8x32xf32> to vector<8x32xf32>
    %c2_235 = arith.constant 2 : index
    %c0_236 = arith.constant 0 : index
    %c0_237 = arith.constant 0 : index
    %389 = vector.load %arg2[%c2_235, %c0_236, %c0_237] : memref<4x32x32xf32, #tpu.memory_space<vmem>>, vector<1x32x32xf32>
    %390 = vector.shape_cast %389 : vector<1x32x32xf32> to vector<32x32xf32>
    %cst_238 = arith.constant dense<0.000000e+00> : vector<8x32xf32>
    %391 = tpu.matmul %292, %390, %cst_238 {dimension_numbers = #tpu.dot_dimension_numbers<[1], [0], [0], [1], [0, 0, 1, 1], [], []>} : vector<8x32xf32>, vector<32x32xf32>, vector<8x32xf32> -> vector<8x32xf32>
    %392 = arith.addf %388, %391 : vector<8x32xf32>
    %393 = math.tanh %392 : vector<8x32xf32>
    %394 = vector.extract_strided_slice %364 {offsets = [3, 0, 0], sizes = [1, 8, 32], strides = [1, 1, 1]} : vector<4x8x32xf32> to vector<1x8x32xf32>
    %395 = vector.shape_cast %394 : vector<1x8x32xf32> to vector<8x32xf32>
    %c3_239 = arith.constant 3 : index
    %c0_240 = arith.constant 0 : index
    %c0_241 = arith.constant 0 : index
    %396 = vector.load %arg2[%c3_239, %c0_240, %c0_241] : memref<4x32x32xf32, #tpu.memory_space<vmem>>, vector<1x32x32xf32>
    %397 = vector.shape_cast %396 : vector<1x32x32xf32> to vector<32x32xf32>
    %cst_242 = arith.constant dense<0.000000e+00> : vector<8x32xf32>
    %398 = tpu.matmul %292, %397, %cst_242 {dimension_numbers = #tpu.dot_dimension_numbers<[1], [0], [0], [1], [0, 0, 1, 1], [], []>} : vector<8x32xf32>, vector<32x32xf32>, vector<8x32xf32> -> vector<8x32xf32>
    %399 = arith.addf %395, %398 : vector<8x32xf32>
    %400 = arith.negf %399 : vector<8x32xf32>
    %401 = math.exp %400 : vector<8x32xf32>
    %cst_243 = arith.constant 1.000000e+00 : f32
    %402 = vector.broadcast %cst_243 : f32 to vector<8x32xf32>
    %403 = arith.addf %402, %401 : vector<8x32xf32>
    %404 = arith.divf %402, %403 : vector<8x32xf32>
    %405 = arith.mulf %386, %290 : vector<8x32xf32>
    %406 = arith.mulf %375, %393 : vector<8x32xf32>
    %407 = arith.addf %405, %406 : vector<8x32xf32>
    %408 = math.tanh %407 : vector<8x32xf32>
    %409 = arith.mulf %404, %408 : vector<8x32xf32>
    %c0_244 = arith.constant 0 : index
    %c0_245 = arith.constant 0 : index
    %c0_246 = arith.constant 0 : index
    %410 = vector.load %arg3[%c0_244, %c0_245, %c0_246] : memref<4x32x32xf32, #tpu.memory_space<vmem>>, vector<1x32x32xf32>
    %411 = vector.shape_cast %410 : vector<1x32x32xf32> to vector<32x32xf32>
    %cst_247 = arith.constant dense<0.000000e+00> : vector<8x32xf32>
    %412 = tpu.matmul %409, %411, %cst_247 {dimension_numbers = #tpu.dot_dimension_numbers<[1], [0], [0], [1], [0, 0, 1, 1], [], []>} : vector<8x32xf32>, vector<32x32xf32>, vector<8x32xf32> -> vector<8x32xf32>
    %c0_248 = arith.constant 0 : index
    %c0_249 = arith.constant 0 : index
    %c0_250 = arith.constant 0 : index
    %413 = vector.load %arg5[%c0_248, %c0_249, %c0_250] : memref<4x1x32xf32, #tpu.memory_space<vmem>>, vector<1x1x32xf32>
    %414 = vector.shape_cast %413 : vector<1x1x32xf32> to vector<1x32xf32>
    %415 = vector.broadcast %414 : vector<1x32xf32> to vector<8x32xf32>
    %416 = arith.addf %412, %415 : vector<8x32xf32>
    %c0_251 = arith.constant 0 : index
    %c0_252 = arith.constant 0 : index
    %c0_253 = arith.constant 0 : index
    %417 = vector.load %arg4[%c0_251, %c0_252, %c0_253] : memref<4x32x32xf32, #tpu.memory_space<vmem>>, vector<1x32x32xf32>
    %418 = vector.shape_cast %417 : vector<1x32x32xf32> to vector<32x32xf32>
    %cst_254 = arith.constant dense<0.000000e+00> : vector<8x32xf32>
    %419 = tpu.matmul %357, %418, %cst_254 {dimension_numbers = #tpu.dot_dimension_numbers<[1], [0], [0], [1], [0, 0, 1, 1], [], []>} : vector<8x32xf32>, vector<32x32xf32>, vector<8x32xf32> -> vector<8x32xf32>
    %420 = arith.addf %416, %419 : vector<8x32xf32>
    %421 = arith.negf %420 : vector<8x32xf32>
    %422 = math.exp %421 : vector<8x32xf32>
    %cst_255 = arith.constant 1.000000e+00 : f32
    %423 = vector.broadcast %cst_255 : f32 to vector<8x32xf32>
    %424 = arith.addf %423, %422 : vector<8x32xf32>
    %425 = arith.divf %423, %424 : vector<8x32xf32>
    %c1_256 = arith.constant 1 : index
    %c0_257 = arith.constant 0 : index
    %c0_258 = arith.constant 0 : index
    %426 = vector.load %arg3[%c1_256, %c0_257, %c0_258] : memref<4x32x32xf32, #tpu.memory_space<vmem>>, vector<1x32x32xf32>
    %427 = vector.shape_cast %426 : vector<1x32x32xf32> to vector<32x32xf32>
    %cst_259 = arith.constant dense<0.000000e+00> : vector<8x32xf32>
    %428 = tpu.matmul %409, %427, %cst_259 {dimension_numbers = #tpu.dot_dimension_numbers<[1], [0], [0], [1], [0, 0, 1, 1], [], []>} : vector<8x32xf32>, vector<32x32xf32>, vector<8x32xf32> -> vector<8x32xf32>
    %c1_260 = arith.constant 1 : index
    %c0_261 = arith.constant 0 : index
    %c0_262 = arith.constant 0 : index
    %429 = vector.load %arg5[%c1_260, %c0_261, %c0_262] : memref<4x1x32xf32, #tpu.memory_space<vmem>>, vector<1x1x32xf32>
    %430 = vector.shape_cast %429 : vector<1x1x32xf32> to vector<1x32xf32>
    %431 = vector.broadcast %430 : vector<1x32xf32> to vector<8x32xf32>
    %432 = arith.addf %428, %431 : vector<8x32xf32>
    %c1_263 = arith.constant 1 : index
    %c0_264 = arith.constant 0 : index
    %c0_265 = arith.constant 0 : index
    %433 = vector.load %arg4[%c1_263, %c0_264, %c0_265] : memref<4x32x32xf32, #tpu.memory_space<vmem>>, vector<1x32x32xf32>
    %434 = vector.shape_cast %433 : vector<1x32x32xf32> to vector<32x32xf32>
    %cst_266 = arith.constant dense<0.000000e+00> : vector<8x32xf32>
    %435 = tpu.matmul %357, %434, %cst_266 {dimension_numbers = #tpu.dot_dimension_numbers<[1], [0], [0], [1], [0, 0, 1, 1], [], []>} : vector<8x32xf32>, vector<32x32xf32>, vector<8x32xf32> -> vector<8x32xf32>
    %436 = arith.addf %432, %435 : vector<8x32xf32>
    %437 = arith.negf %436 : vector<8x32xf32>
    %438 = math.exp %437 : vector<8x32xf32>
    %cst_267 = arith.constant 1.000000e+00 : f32
    %439 = vector.broadcast %cst_267 : f32 to vector<8x32xf32>
    %440 = arith.addf %439, %438 : vector<8x32xf32>
    %441 = arith.divf %439, %440 : vector<8x32xf32>
    %c2_268 = arith.constant 2 : index
    %c0_269 = arith.constant 0 : index
    %c0_270 = arith.constant 0 : index
    %442 = vector.load %arg3[%c2_268, %c0_269, %c0_270] : memref<4x32x32xf32, #tpu.memory_space<vmem>>, vector<1x32x32xf32>
    %443 = vector.shape_cast %442 : vector<1x32x32xf32> to vector<32x32xf32>
    %cst_271 = arith.constant dense<0.000000e+00> : vector<8x32xf32>
    %444 = tpu.matmul %409, %443, %cst_271 {dimension_numbers = #tpu.dot_dimension_numbers<[1], [0], [0], [1], [0, 0, 1, 1], [], []>} : vector<8x32xf32>, vector<32x32xf32>, vector<8x32xf32> -> vector<8x32xf32>
    %c2_272 = arith.constant 2 : index
    %c0_273 = arith.constant 0 : index
    %c0_274 = arith.constant 0 : index
    %445 = vector.load %arg5[%c2_272, %c0_273, %c0_274] : memref<4x1x32xf32, #tpu.memory_space<vmem>>, vector<1x1x32xf32>
    %446 = vector.shape_cast %445 : vector<1x1x32xf32> to vector<1x32xf32>
    %447 = vector.broadcast %446 : vector<1x32xf32> to vector<8x32xf32>
    %448 = arith.addf %444, %447 : vector<8x32xf32>
    %c2_275 = arith.constant 2 : index
    %c0_276 = arith.constant 0 : index
    %c0_277 = arith.constant 0 : index
    %449 = vector.load %arg4[%c2_275, %c0_276, %c0_277] : memref<4x32x32xf32, #tpu.memory_space<vmem>>, vector<1x32x32xf32>
    %450 = vector.shape_cast %449 : vector<1x32x32xf32> to vector<32x32xf32>
    %cst_278 = arith.constant dense<0.000000e+00> : vector<8x32xf32>
    %451 = tpu.matmul %357, %450, %cst_278 {dimension_numbers = #tpu.dot_dimension_numbers<[1], [0], [0], [1], [0, 0, 1, 1], [], []>} : vector<8x32xf32>, vector<32x32xf32>, vector<8x32xf32> -> vector<8x32xf32>
    %452 = arith.addf %448, %451 : vector<8x32xf32>
    %453 = math.tanh %452 : vector<8x32xf32>
    %c3_279 = arith.constant 3 : index
    %c0_280 = arith.constant 0 : index
    %c0_281 = arith.constant 0 : index
    %454 = vector.load %arg3[%c3_279, %c0_280, %c0_281] : memref<4x32x32xf32, #tpu.memory_space<vmem>>, vector<1x32x32xf32>
    %455 = vector.shape_cast %454 : vector<1x32x32xf32> to vector<32x32xf32>
    %cst_282 = arith.constant dense<0.000000e+00> : vector<8x32xf32>
    %456 = tpu.matmul %409, %455, %cst_282 {dimension_numbers = #tpu.dot_dimension_numbers<[1], [0], [0], [1], [0, 0, 1, 1], [], []>} : vector<8x32xf32>, vector<32x32xf32>, vector<8x32xf32> -> vector<8x32xf32>
    %c3_283 = arith.constant 3 : index
    %c0_284 = arith.constant 0 : index
    %c0_285 = arith.constant 0 : index
    %457 = vector.load %arg5[%c3_283, %c0_284, %c0_285] : memref<4x1x32xf32, #tpu.memory_space<vmem>>, vector<1x1x32xf32>
    %458 = vector.shape_cast %457 : vector<1x1x32xf32> to vector<1x32xf32>
    %459 = vector.broadcast %458 : vector<1x32xf32> to vector<8x32xf32>
    %460 = arith.addf %456, %459 : vector<8x32xf32>
    %c3_286 = arith.constant 3 : index
    %c0_287 = arith.constant 0 : index
    %c0_288 = arith.constant 0 : index
    %461 = vector.load %arg4[%c3_286, %c0_287, %c0_288] : memref<4x32x32xf32, #tpu.memory_space<vmem>>, vector<1x32x32xf32>
    %462 = vector.shape_cast %461 : vector<1x32x32xf32> to vector<32x32xf32>
    %cst_289 = arith.constant dense<0.000000e+00> : vector<8x32xf32>
    %463 = tpu.matmul %357, %462, %cst_289 {dimension_numbers = #tpu.dot_dimension_numbers<[1], [0], [0], [1], [0, 0, 1, 1], [], []>} : vector<8x32xf32>, vector<32x32xf32>, vector<8x32xf32> -> vector<8x32xf32>
    %464 = arith.addf %460, %463 : vector<8x32xf32>
    %465 = arith.negf %464 : vector<8x32xf32>
    %466 = math.exp %465 : vector<8x32xf32>
    %cst_290 = arith.constant 1.000000e+00 : f32
    %467 = vector.broadcast %cst_290 : f32 to vector<8x32xf32>
    %468 = arith.addf %467, %466 : vector<8x32xf32>
    %469 = arith.divf %467, %468 : vector<8x32xf32>
    %470 = arith.mulf %441, %355 : vector<8x32xf32>
    %471 = arith.mulf %425, %453 : vector<8x32xf32>
    %472 = arith.addf %470, %471 : vector<8x32xf32>
    %473 = math.tanh %472 : vector<8x32xf32>
    %474 = arith.mulf %469, %473 : vector<8x32xf32>
    %475 = arith.index_cast %c3_i32 : i32 to index
    %c0_291 = arith.constant 0 : index
    %c0_292 = arith.constant 0 : index
    %476 = vector.load %arg6[%475, %c0_291, %c0_292] : memref<8x8x32xf32, #tpu.memory_space<vmem>>, vector<1x8x32xf32>
    %477 = vector.shape_cast %476 : vector<1x8x32xf32> to vector<8x32xf32>
    %478 = vector.shape_cast %474 : vector<8x32xf32> to vector<1x8x32xf32>
    tpu.vector_store %arg6[%475, %c0_291, %c0_292], %478 {strides = array<i32>} : memref<8x8x32xf32, #tpu.memory_space<vmem>>, vector<1x8x32xf32>,
    %c4_i32 = arith.constant 4 : i32
    %479 = arith.index_cast %c4_i32 : i32 to index
    %c0_293 = arith.constant 0 : index
    %c0_294 = arith.constant 0 : index
    %c0_295 = arith.constant 0 : index
    %480 = vector.load %arg1[%479, %c0_293, %c0_294, %c0_295] : memref<8x4x8x32xf32, #tpu.memory_space<vmem>>, vector<1x4x8x32xf32>
    %481 = vector.shape_cast %480 : vector<1x4x8x32xf32> to vector<4x8x32xf32>
    %482 = vector.extract_strided_slice %481 {offsets = [0, 0, 0], sizes = [1, 8, 32], strides = [1, 1, 1]} : vector<4x8x32xf32> to vector<1x8x32xf32>
    %483 = vector.shape_cast %482 : vector<1x8x32xf32> to vector<8x32xf32>
    %c0_296 = arith.constant 0 : index
    %c0_297 = arith.constant 0 : index
    %c0_298 = arith.constant 0 : index
    %484 = vector.load %arg2[%c0_296, %c0_297, %c0_298] : memref<4x32x32xf32, #tpu.memory_space<vmem>>, vector<1x32x32xf32>
    %485 = vector.shape_cast %484 : vector<1x32x32xf32> to vector<32x32xf32>
    %cst_299 = arith.constant dense<0.000000e+00> : vector<8x32xf32>
    %486 = tpu.matmul %409, %485, %cst_299 {dimension_numbers = #tpu.dot_dimension_numbers<[1], [0], [0], [1], [0, 0, 1, 1], [], []>} : vector<8x32xf32>, vector<32x32xf32>, vector<8x32xf32> -> vector<8x32xf32>
    %487 = arith.addf %483, %486 : vector<8x32xf32>
    %488 = arith.negf %487 : vector<8x32xf32>
    %489 = math.exp %488 : vector<8x32xf32>
    %cst_300 = arith.constant 1.000000e+00 : f32
    %490 = vector.broadcast %cst_300 : f32 to vector<8x32xf32>
    %491 = arith.addf %490, %489 : vector<8x32xf32>
    %492 = arith.divf %490, %491 : vector<8x32xf32>
    %493 = vector.extract_strided_slice %481 {offsets = [1, 0, 0], sizes = [1, 8, 32], strides = [1, 1, 1]} : vector<4x8x32xf32> to vector<1x8x32xf32>
    %494 = vector.shape_cast %493 : vector<1x8x32xf32> to vector<8x32xf32>
    %c1_301 = arith.constant 1 : index
    %c0_302 = arith.constant 0 : index
    %c0_303 = arith.constant 0 : index
    %495 = vector.load %arg2[%c1_301, %c0_302, %c0_303] : memref<4x32x32xf32, #tpu.memory_space<vmem>>, vector<1x32x32xf32>
    %496 = vector.shape_cast %495 : vector<1x32x32xf32> to vector<32x32xf32>
    %cst_304 = arith.constant dense<0.000000e+00> : vector<8x32xf32>
    %497 = tpu.matmul %409, %496, %cst_304 {dimension_numbers = #tpu.dot_dimension_numbers<[1], [0], [0], [1], [0, 0, 1, 1], [], []>} : vector<8x32xf32>, vector<32x32xf32>, vector<8x32xf32> -> vector<8x32xf32>
    %498 = arith.addf %494, %497 : vector<8x32xf32>
    %499 = arith.negf %498 : vector<8x32xf32>
    %500 = math.exp %499 : vector<8x32xf32>
    %cst_305 = arith.constant 1.000000e+00 : f32
    %501 = vector.broadcast %cst_305 : f32 to vector<8x32xf32>
    %502 = arith.addf %501, %500 : vector<8x32xf32>
    %503 = arith.divf %501, %502 : vector<8x32xf32>
    %504 = vector.extract_strided_slice %481 {offsets = [2, 0, 0], sizes = [1, 8, 32], strides = [1, 1, 1]} : vector<4x8x32xf32> to vector<1x8x32xf32>
    %505 = vector.shape_cast %504 : vector<1x8x32xf32> to vector<8x32xf32>
    %c2_306 = arith.constant 2 : index
    %c0_307 = arith.constant 0 : index
    %c0_308 = arith.constant 0 : index
    %506 = vector.load %arg2[%c2_306, %c0_307, %c0_308] : memref<4x32x32xf32, #tpu.memory_space<vmem>>, vector<1x32x32xf32>
    %507 = vector.shape_cast %506 : vector<1x32x32xf32> to vector<32x32xf32>
    %cst_309 = arith.constant dense<0.000000e+00> : vector<8x32xf32>
    %508 = tpu.matmul %409, %507, %cst_309 {dimension_numbers = #tpu.dot_dimension_numbers<[1], [0], [0], [1], [0, 0, 1, 1], [], []>} : vector<8x32xf32>, vector<32x32xf32>, vector<8x32xf32> -> vector<8x32xf32>
    %509 = arith.addf %505, %508 : vector<8x32xf32>
    %510 = math.tanh %509 : vector<8x32xf32>
    %511 = vector.extract_strided_slice %481 {offsets = [3, 0, 0], sizes = [1, 8, 32], strides = [1, 1, 1]} : vector<4x8x32xf32> to vector<1x8x32xf32>
    %512 = vector.shape_cast %511 : vector<1x8x32xf32> to vector<8x32xf32>
    %c3_310 = arith.constant 3 : index
    %c0_311 = arith.constant 0 : index
    %c0_312 = arith.constant 0 : index
    %513 = vector.load %arg2[%c3_310, %c0_311, %c0_312] : memref<4x32x32xf32, #tpu.memory_space<vmem>>, vector<1x32x32xf32>
    %514 = vector.shape_cast %513 : vector<1x32x32xf32> to vector<32x32xf32>
    %cst_313 = arith.constant dense<0.000000e+00> : vector<8x32xf32>
    %515 = tpu.matmul %409, %514, %cst_313 {dimension_numbers = #tpu.dot_dimension_numbers<[1], [0], [0], [1], [0, 0, 1, 1], [], []>} : vector<8x32xf32>, vector<32x32xf32>, vector<8x32xf32> -> vector<8x32xf32>
    %516 = arith.addf %512, %515 : vector<8x32xf32>
    %517 = arith.negf %516 : vector<8x32xf32>
    %518 = math.exp %517 : vector<8x32xf32>
    %cst_314 = arith.constant 1.000000e+00 : f32
    %519 = vector.broadcast %cst_314 : f32 to vector<8x32xf32>
    %520 = arith.addf %519, %518 : vector<8x32xf32>
    %521 = arith.divf %519, %520 : vector<8x32xf32>
    %522 = arith.mulf %503, %407 : vector<8x32xf32>
    %523 = arith.mulf %492, %510 : vector<8x32xf32>
    %524 = arith.addf %522, %523 : vector<8x32xf32>
    %525 = math.tanh %524 : vector<8x32xf32>
    %526 = arith.mulf %521, %525 : vector<8x32xf32>
    %c0_315 = arith.constant 0 : index
    %c0_316 = arith.constant 0 : index
    %c0_317 = arith.constant 0 : index
    %527 = vector.load %arg3[%c0_315, %c0_316, %c0_317] : memref<4x32x32xf32, #tpu.memory_space<vmem>>, vector<1x32x32xf32>
    %528 = vector.shape_cast %527 : vector<1x32x32xf32> to vector<32x32xf32>
    %cst_318 = arith.constant dense<0.000000e+00> : vector<8x32xf32>
    %529 = tpu.matmul %526, %528, %cst_318 {dimension_numbers = #tpu.dot_dimension_numbers<[1], [0], [0], [1], [0, 0, 1, 1], [], []>} : vector<8x32xf32>, vector<32x32xf32>, vector<8x32xf32> -> vector<8x32xf32>
    %c0_319 = arith.constant 0 : index
    %c0_320 = arith.constant 0 : index
    %c0_321 = arith.constant 0 : index
    %530 = vector.load %arg5[%c0_319, %c0_320, %c0_321] : memref<4x1x32xf32, #tpu.memory_space<vmem>>, vector<1x1x32xf32>
    %531 = vector.shape_cast %530 : vector<1x1x32xf32> to vector<1x32xf32>
    %532 = vector.broadcast %531 : vector<1x32xf32> to vector<8x32xf32>
    %533 = arith.addf %529, %532 : vector<8x32xf32>
    %c0_322 = arith.constant 0 : index
    %c0_323 = arith.constant 0 : index
    %c0_324 = arith.constant 0 : index
    %534 = vector.load %arg4[%c0_322, %c0_323, %c0_324] : memref<4x32x32xf32, #tpu.memory_space<vmem>>, vector<1x32x32xf32>
    %535 = vector.shape_cast %534 : vector<1x32x32xf32> to vector<32x32xf32>
    %cst_325 = arith.constant dense<0.000000e+00> : vector<8x32xf32>
    %536 = tpu.matmul %474, %535, %cst_325 {dimension_numbers = #tpu.dot_dimension_numbers<[1], [0], [0], [1], [0, 0, 1, 1], [], []>} : vector<8x32xf32>, vector<32x32xf32>, vector<8x32xf32> -> vector<8x32xf32>
    %537 = arith.addf %533, %536 : vector<8x32xf32>
    %538 = arith.negf %537 : vector<8x32xf32>
    %539 = math.exp %538 : vector<8x32xf32>
    %cst_326 = arith.constant 1.000000e+00 : f32
    %540 = vector.broadcast %cst_326 : f32 to vector<8x32xf32>
    %541 = arith.addf %540, %539 : vector<8x32xf32>
    %542 = arith.divf %540, %541 : vector<8x32xf32>
    %c1_327 = arith.constant 1 : index
    %c0_328 = arith.constant 0 : index
    %c0_329 = arith.constant 0 : index
    %543 = vector.load %arg3[%c1_327, %c0_328, %c0_329] : memref<4x32x32xf32, #tpu.memory_space<vmem>>, vector<1x32x32xf32>
    %544 = vector.shape_cast %543 : vector<1x32x32xf32> to vector<32x32xf32>
    %cst_330 = arith.constant dense<0.000000e+00> : vector<8x32xf32>
    %545 = tpu.matmul %526, %544, %cst_330 {dimension_numbers = #tpu.dot_dimension_numbers<[1], [0], [0], [1], [0, 0, 1, 1], [], []>} : vector<8x32xf32>, vector<32x32xf32>, vector<8x32xf32> -> vector<8x32xf32>
    %c1_331 = arith.constant 1 : index
    %c0_332 = arith.constant 0 : index
    %c0_333 = arith.constant 0 : index
    %546 = vector.load %arg5[%c1_331, %c0_332, %c0_333] : memref<4x1x32xf32, #tpu.memory_space<vmem>>, vector<1x1x32xf32>
    %547 = vector.shape_cast %546 : vector<1x1x32xf32> to vector<1x32xf32>
    %548 = vector.broadcast %547 : vector<1x32xf32> to vector<8x32xf32>
    %549 = arith.addf %545, %548 : vector<8x32xf32>
    %c1_334 = arith.constant 1 : index
    %c0_335 = arith.constant 0 : index
    %c0_336 = arith.constant 0 : index
    %550 = vector.load %arg4[%c1_334, %c0_335, %c0_336] : memref<4x32x32xf32, #tpu.memory_space<vmem>>, vector<1x32x32xf32>
    %551 = vector.shape_cast %550 : vector<1x32x32xf32> to vector<32x32xf32>
    %cst_337 = arith.constant dense<0.000000e+00> : vector<8x32xf32>
    %552 = tpu.matmul %474, %551, %cst_337 {dimension_numbers = #tpu.dot_dimension_numbers<[1], [0], [0], [1], [0, 0, 1, 1], [], []>} : vector<8x32xf32>, vector<32x32xf32>, vector<8x32xf32> -> vector<8x32xf32>
    %553 = arith.addf %549, %552 : vector<8x32xf32>
    %554 = arith.negf %553 : vector<8x32xf32>
    %555 = math.exp %554 : vector<8x32xf32>
    %cst_338 = arith.constant 1.000000e+00 : f32
    %556 = vector.broadcast %cst_338 : f32 to vector<8x32xf32>
    %557 = arith.addf %556, %555 : vector<8x32xf32>
    %558 = arith.divf %556, %557 : vector<8x32xf32>
    %c2_339 = arith.constant 2 : index
    %c0_340 = arith.constant 0 : index
    %c0_341 = arith.constant 0 : index
    %559 = vector.load %arg3[%c2_339, %c0_340, %c0_341] : memref<4x32x32xf32, #tpu.memory_space<vmem>>, vector<1x32x32xf32>
    %560 = vector.shape_cast %559 : vector<1x32x32xf32> to vector<32x32xf32>
    %cst_342 = arith.constant dense<0.000000e+00> : vector<8x32xf32>
    %561 = tpu.matmul %526, %560, %cst_342 {dimension_numbers = #tpu.dot_dimension_numbers<[1], [0], [0], [1], [0, 0, 1, 1], [], []>} : vector<8x32xf32>, vector<32x32xf32>, vector<8x32xf32> -> vector<8x32xf32>
    %c2_343 = arith.constant 2 : index
    %c0_344 = arith.constant 0 : index
    %c0_345 = arith.constant 0 : index
    %562 = vector.load %arg5[%c2_343, %c0_344, %c0_345] : memref<4x1x32xf32, #tpu.memory_space<vmem>>, vector<1x1x32xf32>
    %563 = vector.shape_cast %562 : vector<1x1x32xf32> to vector<1x32xf32>
    %564 = vector.broadcast %563 : vector<1x32xf32> to vector<8x32xf32>
    %565 = arith.addf %561, %564 : vector<8x32xf32>
    %c2_346 = arith.constant 2 : index
    %c0_347 = arith.constant 0 : index
    %c0_348 = arith.constant 0 : index
    %566 = vector.load %arg4[%c2_346, %c0_347, %c0_348] : memref<4x32x32xf32, #tpu.memory_space<vmem>>, vector<1x32x32xf32>
    %567 = vector.shape_cast %566 : vector<1x32x32xf32> to vector<32x32xf32>
    %cst_349 = arith.constant dense<0.000000e+00> : vector<8x32xf32>
    %568 = tpu.matmul %474, %567, %cst_349 {dimension_numbers = #tpu.dot_dimension_numbers<[1], [0], [0], [1], [0, 0, 1, 1], [], []>} : vector<8x32xf32>, vector<32x32xf32>, vector<8x32xf32> -> vector<8x32xf32>
    %569 = arith.addf %565, %568 : vector<8x32xf32>
    %570 = math.tanh %569 : vector<8x32xf32>
    %c3_350 = arith.constant 3 : index
    %c0_351 = arith.constant 0 : index
    %c0_352 = arith.constant 0 : index
    %571 = vector.load %arg3[%c3_350, %c0_351, %c0_352] : memref<4x32x32xf32, #tpu.memory_space<vmem>>, vector<1x32x32xf32>
    %572 = vector.shape_cast %571 : vector<1x32x32xf32> to vector<32x32xf32>
    %cst_353 = arith.constant dense<0.000000e+00> : vector<8x32xf32>
    %573 = tpu.matmul %526, %572, %cst_353 {dimension_numbers = #tpu.dot_dimension_numbers<[1], [0], [0], [1], [0, 0, 1, 1], [], []>} : vector<8x32xf32>, vector<32x32xf32>, vector<8x32xf32> -> vector<8x32xf32>
    %c3_354 = arith.constant 3 : index
    %c0_355 = arith.constant 0 : index
    %c0_356 = arith.constant 0 : index
    %574 = vector.load %arg5[%c3_354, %c0_355, %c0_356] : memref<4x1x32xf32, #tpu.memory_space<vmem>>, vector<1x1x32xf32>
    %575 = vector.shape_cast %574 : vector<1x1x32xf32> to vector<1x32xf32>
    %576 = vector.broadcast %575 : vector<1x32xf32> to vector<8x32xf32>
    %577 = arith.addf %573, %576 : vector<8x32xf32>
    %c3_357 = arith.constant 3 : index
    %c0_358 = arith.constant 0 : index
    %c0_359 = arith.constant 0 : index
    %578 = vector.load %arg4[%c3_357, %c0_358, %c0_359] : memref<4x32x32xf32, #tpu.memory_space<vmem>>, vector<1x32x32xf32>
    %579 = vector.shape_cast %578 : vector<1x32x32xf32> to vector<32x32xf32>
    %cst_360 = arith.constant dense<0.000000e+00> : vector<8x32xf32>
    %580 = tpu.matmul %474, %579, %cst_360 {dimension_numbers = #tpu.dot_dimension_numbers<[1], [0], [0], [1], [0, 0, 1, 1], [], []>} : vector<8x32xf32>, vector<32x32xf32>, vector<8x32xf32> -> vector<8x32xf32>
    %581 = arith.addf %577, %580 : vector<8x32xf32>
    %582 = arith.negf %581 : vector<8x32xf32>
    %583 = math.exp %582 : vector<8x32xf32>
    %cst_361 = arith.constant 1.000000e+00 : f32
    %584 = vector.broadcast %cst_361 : f32 to vector<8x32xf32>
    %585 = arith.addf %584, %583 : vector<8x32xf32>
    %586 = arith.divf %584, %585 : vector<8x32xf32>
    %587 = arith.mulf %558, %472 : vector<8x32xf32>
    %588 = arith.mulf %542, %570 : vector<8x32xf32>
    %589 = arith.addf %587, %588 : vector<8x32xf32>
    %590 = math.tanh %589 : vector<8x32xf32>
    %591 = arith.mulf %586, %590 : vector<8x32xf32>
    %592 = arith.index_cast %c4_i32 : i32 to index
    %c0_362 = arith.constant 0 : index
    %c0_363 = arith.constant 0 : index
    %593 = vector.load %arg6[%592, %c0_362, %c0_363] : memref<8x8x32xf32, #tpu.memory_space<vmem>>, vector<1x8x32xf32>
    %594 = vector.shape_cast %593 : vector<1x8x32xf32> to vector<8x32xf32>
    %595 = vector.shape_cast %591 : vector<8x32xf32> to vector<1x8x32xf32>
    tpu.vector_store %arg6[%592, %c0_362, %c0_363], %595 {strides = array<i32>} : memref<8x8x32xf32, #tpu.memory_space<vmem>>, vector<1x8x32xf32>,
    %c5_i32 = arith.constant 5 : i32
    %596 = arith.index_cast %c5_i32 : i32 to index
    %c0_364 = arith.constant 0 : index
    %c0_365 = arith.constant 0 : index
    %c0_366 = arith.constant 0 : index
    %597 = vector.load %arg1[%596, %c0_364, %c0_365, %c0_366] : memref<8x4x8x32xf32, #tpu.memory_space<vmem>>, vector<1x4x8x32xf32>
    %598 = vector.shape_cast %597 : vector<1x4x8x32xf32> to vector<4x8x32xf32>
    %599 = vector.extract_strided_slice %598 {offsets = [0, 0, 0], sizes = [1, 8, 32], strides = [1, 1, 1]} : vector<4x8x32xf32> to vector<1x8x32xf32>
    %600 = vector.shape_cast %599 : vector<1x8x32xf32> to vector<8x32xf32>
    %c0_367 = arith.constant 0 : index
    %c0_368 = arith.constant 0 : index
    %c0_369 = arith.constant 0 : index
    %601 = vector.load %arg2[%c0_367, %c0_368, %c0_369] : memref<4x32x32xf32, #tpu.memory_space<vmem>>, vector<1x32x32xf32>
    %602 = vector.shape_cast %601 : vector<1x32x32xf32> to vector<32x32xf32>
    %cst_370 = arith.constant dense<0.000000e+00> : vector<8x32xf32>
    %603 = tpu.matmul %526, %602, %cst_370 {dimension_numbers = #tpu.dot_dimension_numbers<[1], [0], [0], [1], [0, 0, 1, 1], [], []>} : vector<8x32xf32>, vector<32x32xf32>, vector<8x32xf32> -> vector<8x32xf32>
    %604 = arith.addf %600, %603 : vector<8x32xf32>
    %605 = arith.negf %604 : vector<8x32xf32>
    %606 = math.exp %605 : vector<8x32xf32>
    %cst_371 = arith.constant 1.000000e+00 : f32
    %607 = vector.broadcast %cst_371 : f32 to vector<8x32xf32>
    %608 = arith.addf %607, %606 : vector<8x32xf32>
    %609 = arith.divf %607, %608 : vector<8x32xf32>
    %610 = vector.extract_strided_slice %598 {offsets = [1, 0, 0], sizes = [1, 8, 32], strides = [1, 1, 1]} : vector<4x8x32xf32> to vector<1x8x32xf32>
    %611 = vector.shape_cast %610 : vector<1x8x32xf32> to vector<8x32xf32>
    %c1_372 = arith.constant 1 : index
    %c0_373 = arith.constant 0 : index
    %c0_374 = arith.constant 0 : index
    %612 = vector.load %arg2[%c1_372, %c0_373, %c0_374] : memref<4x32x32xf32, #tpu.memory_space<vmem>>, vector<1x32x32xf32>
    %613 = vector.shape_cast %612 : vector<1x32x32xf32> to vector<32x32xf32>
    %cst_375 = arith.constant dense<0.000000e+00> : vector<8x32xf32>
    %614 = tpu.matmul %526, %613, %cst_375 {dimension_numbers = #tpu.dot_dimension_numbers<[1], [0], [0], [1], [0, 0, 1, 1], [], []>} : vector<8x32xf32>, vector<32x32xf32>, vector<8x32xf32> -> vector<8x32xf32>
    %615 = arith.addf %611, %614 : vector<8x32xf32>
    %616 = arith.negf %615 : vector<8x32xf32>
    %617 = math.exp %616 : vector<8x32xf32>
    %cst_376 = arith.constant 1.000000e+00 : f32
    %618 = vector.broadcast %cst_376 : f32 to vector<8x32xf32>
    %619 = arith.addf %618, %617 : vector<8x32xf32>
    %620 = arith.divf %618, %619 : vector<8x32xf32>
    %621 = vector.extract_strided_slice %598 {offsets = [2, 0, 0], sizes = [1, 8, 32], strides = [1, 1, 1]} : vector<4x8x32xf32> to vector<1x8x32xf32>
    %622 = vector.shape_cast %621 : vector<1x8x32xf32> to vector<8x32xf32>
    %c2_377 = arith.constant 2 : index
    %c0_378 = arith.constant 0 : index
    %c0_379 = arith.constant 0 : index
    %623 = vector.load %arg2[%c2_377, %c0_378, %c0_379] : memref<4x32x32xf32, #tpu.memory_space<vmem>>, vector<1x32x32xf32>
    %624 = vector.shape_cast %623 : vector<1x32x32xf32> to vector<32x32xf32>
    %cst_380 = arith.constant dense<0.000000e+00> : vector<8x32xf32>
    %625 = tpu.matmul %526, %624, %cst_380 {dimension_numbers = #tpu.dot_dimension_numbers<[1], [0], [0], [1], [0, 0, 1, 1], [], []>} : vector<8x32xf32>, vector<32x32xf32>, vector<8x32xf32> -> vector<8x32xf32>
    %626 = arith.addf %622, %625 : vector<8x32xf32>
    %627 = math.tanh %626 : vector<8x32xf32>
    %628 = vector.extract_strided_slice %598 {offsets = [3, 0, 0], sizes = [1, 8, 32], strides = [1, 1, 1]} : vector<4x8x32xf32> to vector<1x8x32xf32>
    %629 = vector.shape_cast %628 : vector<1x8x32xf32> to vector<8x32xf32>
    %c3_381 = arith.constant 3 : index
    %c0_382 = arith.constant 0 : index
    %c0_383 = arith.constant 0 : index
    %630 = vector.load %arg2[%c3_381, %c0_382, %c0_383] : memref<4x32x32xf32, #tpu.memory_space<vmem>>, vector<1x32x32xf32>
    %631 = vector.shape_cast %630 : vector<1x32x32xf32> to vector<32x32xf32>
    %cst_384 = arith.constant dense<0.000000e+00> : vector<8x32xf32>
    %632 = tpu.matmul %526, %631, %cst_384 {dimension_numbers = #tpu.dot_dimension_numbers<[1], [0], [0], [1], [0, 0, 1, 1], [], []>} : vector<8x32xf32>, vector<32x32xf32>, vector<8x32xf32> -> vector<8x32xf32>
    %633 = arith.addf %629, %632 : vector<8x32xf32>
    %634 = arith.negf %633 : vector<8x32xf32>
    %635 = math.exp %634 : vector<8x32xf32>
    %cst_385 = arith.constant 1.000000e+00 : f32
    %636 = vector.broadcast %cst_385 : f32 to vector<8x32xf32>
    %637 = arith.addf %636, %635 : vector<8x32xf32>
    %638 = arith.divf %636, %637 : vector<8x32xf32>
    %639 = arith.mulf %620, %524 : vector<8x32xf32>
    %640 = arith.mulf %609, %627 : vector<8x32xf32>
    %641 = arith.addf %639, %640 : vector<8x32xf32>
    %642 = math.tanh %641 : vector<8x32xf32>
    %643 = arith.mulf %638, %642 : vector<8x32xf32>
    %c0_386 = arith.constant 0 : index
    %c0_387 = arith.constant 0 : index
    %c0_388 = arith.constant 0 : index
    %644 = vector.load %arg3[%c0_386, %c0_387, %c0_388] : memref<4x32x32xf32, #tpu.memory_space<vmem>>, vector<1x32x32xf32>
    %645 = vector.shape_cast %644 : vector<1x32x32xf32> to vector<32x32xf32>
    %cst_389 = arith.constant dense<0.000000e+00> : vector<8x32xf32>
    %646 = tpu.matmul %643, %645, %cst_389 {dimension_numbers = #tpu.dot_dimension_numbers<[1], [0], [0], [1], [0, 0, 1, 1], [], []>} : vector<8x32xf32>, vector<32x32xf32>, vector<8x32xf32> -> vector<8x32xf32>
    %c0_390 = arith.constant 0 : index
    %c0_391 = arith.constant 0 : index
    %c0_392 = arith.constant 0 : index
    %647 = vector.load %arg5[%c0_390, %c0_391, %c0_392] : memref<4x1x32xf32, #tpu.memory_space<vmem>>, vector<1x1x32xf32>
    %648 = vector.shape_cast %647 : vector<1x1x32xf32> to vector<1x32xf32>
    %649 = vector.broadcast %648 : vector<1x32xf32> to vector<8x32xf32>
    %650 = arith.addf %646, %649 : vector<8x32xf32>
    %c0_393 = arith.constant 0 : index
    %c0_394 = arith.constant 0 : index
    %c0_395 = arith.constant 0 : index
    %651 = vector.load %arg4[%c0_393, %c0_394, %c0_395] : memref<4x32x32xf32, #tpu.memory_space<vmem>>, vector<1x32x32xf32>
    %652 = vector.shape_cast %651 : vector<1x32x32xf32> to vector<32x32xf32>
    %cst_396 = arith.constant dense<0.000000e+00> : vector<8x32xf32>
    %653 = tpu.matmul %591, %652, %cst_396 {dimension_numbers = #tpu.dot_dimension_numbers<[1], [0], [0], [1], [0, 0, 1, 1], [], []>} : vector<8x32xf32>, vector<32x32xf32>, vector<8x32xf32> -> vector<8x32xf32>
    %654 = arith.addf %650, %653 : vector<8x32xf32>
    %655 = arith.negf %654 : vector<8x32xf32>
    %656 = math.exp %655 : vector<8x32xf32>
    %cst_397 = arith.constant 1.000000e+00 : f32
    %657 = vector.broadcast %cst_397 : f32 to vector<8x32xf32>
    %658 = arith.addf %657, %656 : vector<8x32xf32>
    %659 = arith.divf %657, %658 : vector<8x32xf32>
    %c1_398 = arith.constant 1 : index
    %c0_399 = arith.constant 0 : index
    %c0_400 = arith.constant 0 : index
    %660 = vector.load %arg3[%c1_398, %c0_399, %c0_400] : memref<4x32x32xf32, #tpu.memory_space<vmem>>, vector<1x32x32xf32>
    %661 = vector.shape_cast %660 : vector<1x32x32xf32> to vector<32x32xf32>
    %cst_401 = arith.constant dense<0.000000e+00> : vector<8x32xf32>
    %662 = tpu.matmul %643, %661, %cst_401 {dimension_numbers = #tpu.dot_dimension_numbers<[1], [0], [0], [1], [0, 0, 1, 1], [], []>} : vector<8x32xf32>, vector<32x32xf32>, vector<8x32xf32> -> vector<8x32xf32>
    %c1_402 = arith.constant 1 : index
    %c0_403 = arith.constant 0 : index
    %c0_404 = arith.constant 0 : index
    %663 = vector.load %arg5[%c1_402, %c0_403, %c0_404] : memref<4x1x32xf32, #tpu.memory_space<vmem>>, vector<1x1x32xf32>
    %664 = vector.shape_cast %663 : vector<1x1x32xf32> to vector<1x32xf32>
    %665 = vector.broadcast %664 : vector<1x32xf32> to vector<8x32xf32>
    %666 = arith.addf %662, %665 : vector<8x32xf32>
    %c1_405 = arith.constant 1 : index
    %c0_406 = arith.constant 0 : index
    %c0_407 = arith.constant 0 : index
    %667 = vector.load %arg4[%c1_405, %c0_406, %c0_407] : memref<4x32x32xf32, #tpu.memory_space<vmem>>, vector<1x32x32xf32>
    %668 = vector.shape_cast %667 : vector<1x32x32xf32> to vector<32x32xf32>
    %cst_408 = arith.constant dense<0.000000e+00> : vector<8x32xf32>
    %669 = tpu.matmul %591, %668, %cst_408 {dimension_numbers = #tpu.dot_dimension_numbers<[1], [0], [0], [1], [0, 0, 1, 1], [], []>} : vector<8x32xf32>, vector<32x32xf32>, vector<8x32xf32> -> vector<8x32xf32>
    %670 = arith.addf %666, %669 : vector<8x32xf32>
    %671 = arith.negf %670 : vector<8x32xf32>
    %672 = math.exp %671 : vector<8x32xf32>
    %cst_409 = arith.constant 1.000000e+00 : f32
    %673 = vector.broadcast %cst_409 : f32 to vector<8x32xf32>
    %674 = arith.addf %673, %672 : vector<8x32xf32>
    %675 = arith.divf %673, %674 : vector<8x32xf32>
    %c2_410 = arith.constant 2 : index
    %c0_411 = arith.constant 0 : index
    %c0_412 = arith.constant 0 : index
    %676 = vector.load %arg3[%c2_410, %c0_411, %c0_412] : memref<4x32x32xf32, #tpu.memory_space<vmem>>, vector<1x32x32xf32>
    %677 = vector.shape_cast %676 : vector<1x32x32xf32> to vector<32x32xf32>
    %cst_413 = arith.constant dense<0.000000e+00> : vector<8x32xf32>
    %678 = tpu.matmul %643, %677, %cst_413 {dimension_numbers = #tpu.dot_dimension_numbers<[1], [0], [0], [1], [0, 0, 1, 1], [], []>} : vector<8x32xf32>, vector<32x32xf32>, vector<8x32xf32> -> vector<8x32xf32>
    %c2_414 = arith.constant 2 : index
    %c0_415 = arith.constant 0 : index
    %c0_416 = arith.constant 0 : index
    %679 = vector.load %arg5[%c2_414, %c0_415, %c0_416] : memref<4x1x32xf32, #tpu.memory_space<vmem>>, vector<1x1x32xf32>
    %680 = vector.shape_cast %679 : vector<1x1x32xf32> to vector<1x32xf32>
    %681 = vector.broadcast %680 : vector<1x32xf32> to vector<8x32xf32>
    %682 = arith.addf %678, %681 : vector<8x32xf32>
    %c2_417 = arith.constant 2 : index
    %c0_418 = arith.constant 0 : index
    %c0_419 = arith.constant 0 : index
    %683 = vector.load %arg4[%c2_417, %c0_418, %c0_419] : memref<4x32x32xf32, #tpu.memory_space<vmem>>, vector<1x32x32xf32>
    %684 = vector.shape_cast %683 : vector<1x32x32xf32> to vector<32x32xf32>
    %cst_420 = arith.constant dense<0.000000e+00> : vector<8x32xf32>
    %685 = tpu.matmul %591, %684, %cst_420 {dimension_numbers = #tpu.dot_dimension_numbers<[1], [0], [0], [1], [0, 0, 1, 1], [], []>} : vector<8x32xf32>, vector<32x32xf32>, vector<8x32xf32> -> vector<8x32xf32>
    %686 = arith.addf %682, %685 : vector<8x32xf32>
    %687 = math.tanh %686 : vector<8x32xf32>
    %c3_421 = arith.constant 3 : index
    %c0_422 = arith.constant 0 : index
    %c0_423 = arith.constant 0 : index
    %688 = vector.load %arg3[%c3_421, %c0_422, %c0_423] : memref<4x32x32xf32, #tpu.memory_space<vmem>>, vector<1x32x32xf32>
    %689 = vector.shape_cast %688 : vector<1x32x32xf32> to vector<32x32xf32>
    %cst_424 = arith.constant dense<0.000000e+00> : vector<8x32xf32>
    %690 = tpu.matmul %643, %689, %cst_424 {dimension_numbers = #tpu.dot_dimension_numbers<[1], [0], [0], [1], [0, 0, 1, 1], [], []>} : vector<8x32xf32>, vector<32x32xf32>, vector<8x32xf32> -> vector<8x32xf32>
    %c3_425 = arith.constant 3 : index
    %c0_426 = arith.constant 0 : index
    %c0_427 = arith.constant 0 : index
    %691 = vector.load %arg5[%c3_425, %c0_426, %c0_427] : memref<4x1x32xf32, #tpu.memory_space<vmem>>, vector<1x1x32xf32>
    %692 = vector.shape_cast %691 : vector<1x1x32xf32> to vector<1x32xf32>
    %693 = vector.broadcast %692 : vector<1x32xf32> to vector<8x32xf32>
    %694 = arith.addf %690, %693 : vector<8x32xf32>
    %c3_428 = arith.constant 3 : index
    %c0_429 = arith.constant 0 : index
    %c0_430 = arith.constant 0 : index
    %695 = vector.load %arg4[%c3_428, %c0_429, %c0_430] : memref<4x32x32xf32, #tpu.memory_space<vmem>>, vector<1x32x32xf32>
    %696 = vector.shape_cast %695 : vector<1x32x32xf32> to vector<32x32xf32>
    %cst_431 = arith.constant dense<0.000000e+00> : vector<8x32xf32>
    %697 = tpu.matmul %591, %696, %cst_431 {dimension_numbers = #tpu.dot_dimension_numbers<[1], [0], [0], [1], [0, 0, 1, 1], [], []>} : vector<8x32xf32>, vector<32x32xf32>, vector<8x32xf32> -> vector<8x32xf32>
    %698 = arith.addf %694, %697 : vector<8x32xf32>
    %699 = arith.negf %698 : vector<8x32xf32>
    %700 = math.exp %699 : vector<8x32xf32>
    %cst_432 = arith.constant 1.000000e+00 : f32
    %701 = vector.broadcast %cst_432 : f32 to vector<8x32xf32>
    %702 = arith.addf %701, %700 : vector<8x32xf32>
    %703 = arith.divf %701, %702 : vector<8x32xf32>
    %704 = arith.mulf %675, %589 : vector<8x32xf32>
    %705 = arith.mulf %659, %687 : vector<8x32xf32>
    %706 = arith.addf %704, %705 : vector<8x32xf32>
    %707 = math.tanh %706 : vector<8x32xf32>
    %708 = arith.mulf %703, %707 : vector<8x32xf32>
    %709 = arith.index_cast %c5_i32 : i32 to index
    %c0_433 = arith.constant 0 : index
    %c0_434 = arith.constant 0 : index
    %710 = vector.load %arg6[%709, %c0_433, %c0_434] : memref<8x8x32xf32, #tpu.memory_space<vmem>>, vector<1x8x32xf32>
    %711 = vector.shape_cast %710 : vector<1x8x32xf32> to vector<8x32xf32>
    %712 = vector.shape_cast %708 : vector<8x32xf32> to vector<1x8x32xf32>
    tpu.vector_store %arg6[%709, %c0_433, %c0_434], %712 {strides = array<i32>} : memref<8x8x32xf32, #tpu.memory_space<vmem>>, vector<1x8x32xf32>,
    %c6_i32 = arith.constant 6 : i32
    %713 = arith.index_cast %c6_i32 : i32 to index
    %c0_435 = arith.constant 0 : index
    %c0_436 = arith.constant 0 : index
    %c0_437 = arith.constant 0 : index
    %714 = vector.load %arg1[%713, %c0_435, %c0_436, %c0_437] : memref<8x4x8x32xf32, #tpu.memory_space<vmem>>, vector<1x4x8x32xf32>
    %715 = vector.shape_cast %714 : vector<1x4x8x32xf32> to vector<4x8x32xf32>
    %716 = vector.extract_strided_slice %715 {offsets = [0, 0, 0], sizes = [1, 8, 32], strides = [1, 1, 1]} : vector<4x8x32xf32> to vector<1x8x32xf32>
    %717 = vector.shape_cast %716 : vector<1x8x32xf32> to vector<8x32xf32>
    %c0_438 = arith.constant 0 : index
    %c0_439 = arith.constant 0 : index
    %c0_440 = arith.constant 0 : index
    %718 = vector.load %arg2[%c0_438, %c0_439, %c0_440] : memref<4x32x32xf32, #tpu.memory_space<vmem>>, vector<1x32x32xf32>
    %719 = vector.shape_cast %718 : vector<1x32x32xf32> to vector<32x32xf32>
    %cst_441 = arith.constant dense<0.000000e+00> : vector<8x32xf32>
    %720 = tpu.matmul %643, %719, %cst_441 {dimension_numbers = #tpu.dot_dimension_numbers<[1], [0], [0], [1], [0, 0, 1, 1], [], []>} : vector<8x32xf32>, vector<32x32xf32>, vector<8x32xf32> -> vector<8x32xf32>
    %721 = arith.addf %717, %720 : vector<8x32xf32>
    %722 = arith.negf %721 : vector<8x32xf32>
    %723 = math.exp %722 : vector<8x32xf32>
    %cst_442 = arith.constant 1.000000e+00 : f32
    %724 = vector.broadcast %cst_442 : f32 to vector<8x32xf32>
    %725 = arith.addf %724, %723 : vector<8x32xf32>
    %726 = arith.divf %724, %725 : vector<8x32xf32>
    %727 = vector.extract_strided_slice %715 {offsets = [1, 0, 0], sizes = [1, 8, 32], strides = [1, 1, 1]} : vector<4x8x32xf32> to vector<1x8x32xf32>
    %728 = vector.shape_cast %727 : vector<1x8x32xf32> to vector<8x32xf32>
    %c1_443 = arith.constant 1 : index
    %c0_444 = arith.constant 0 : index
    %c0_445 = arith.constant 0 : index
    %729 = vector.load %arg2[%c1_443, %c0_444, %c0_445] : memref<4x32x32xf32, #tpu.memory_space<vmem>>, vector<1x32x32xf32>
    %730 = vector.shape_cast %729 : vector<1x32x32xf32> to vector<32x32xf32>
    %cst_446 = arith.constant dense<0.000000e+00> : vector<8x32xf32>
    %731 = tpu.matmul %643, %730, %cst_446 {dimension_numbers = #tpu.dot_dimension_numbers<[1], [0], [0], [1], [0, 0, 1, 1], [], []>} : vector<8x32xf32>, vector<32x32xf32>, vector<8x32xf32> -> vector<8x32xf32>
    %732 = arith.addf %728, %731 : vector<8x32xf32>
    %733 = arith.negf %732 : vector<8x32xf32>
    %734 = math.exp %733 : vector<8x32xf32>
    %cst_447 = arith.constant 1.000000e+00 : f32
    %735 = vector.broadcast %cst_447 : f32 to vector<8x32xf32>
    %736 = arith.addf %735, %734 : vector<8x32xf32>
    %737 = arith.divf %735, %736 : vector<8x32xf32>
    %738 = vector.extract_strided_slice %715 {offsets = [2, 0, 0], sizes = [1, 8, 32], strides = [1, 1, 1]} : vector<4x8x32xf32> to vector<1x8x32xf32>
    %739 = vector.shape_cast %738 : vector<1x8x32xf32> to vector<8x32xf32>
    %c2_448 = arith.constant 2 : index
    %c0_449 = arith.constant 0 : index
    %c0_450 = arith.constant 0 : index
    %740 = vector.load %arg2[%c2_448, %c0_449, %c0_450] : memref<4x32x32xf32, #tpu.memory_space<vmem>>, vector<1x32x32xf32>
    %741 = vector.shape_cast %740 : vector<1x32x32xf32> to vector<32x32xf32>
    %cst_451 = arith.constant dense<0.000000e+00> : vector<8x32xf32>
    %742 = tpu.matmul %643, %741, %cst_451 {dimension_numbers = #tpu.dot_dimension_numbers<[1], [0], [0], [1], [0, 0, 1, 1], [], []>} : vector<8x32xf32>, vector<32x32xf32>, vector<8x32xf32> -> vector<8x32xf32>
    %743 = arith.addf %739, %742 : vector<8x32xf32>
    %744 = math.tanh %743 : vector<8x32xf32>
    %745 = vector.extract_strided_slice %715 {offsets = [3, 0, 0], sizes = [1, 8, 32], strides = [1, 1, 1]} : vector<4x8x32xf32> to vector<1x8x32xf32>
    %746 = vector.shape_cast %745 : vector<1x8x32xf32> to vector<8x32xf32>
    %c3_452 = arith.constant 3 : index
    %c0_453 = arith.constant 0 : index
    %c0_454 = arith.constant 0 : index
    %747 = vector.load %arg2[%c3_452, %c0_453, %c0_454] : memref<4x32x32xf32, #tpu.memory_space<vmem>>, vector<1x32x32xf32>
    %748 = vector.shape_cast %747 : vector<1x32x32xf32> to vector<32x32xf32>
    %cst_455 = arith.constant dense<0.000000e+00> : vector<8x32xf32>
    %749 = tpu.matmul %643, %748, %cst_455 {dimension_numbers = #tpu.dot_dimension_numbers<[1], [0], [0], [1], [0, 0, 1, 1], [], []>} : vector<8x32xf32>, vector<32x32xf32>, vector<8x32xf32> -> vector<8x32xf32>
    %750 = arith.addf %746, %749 : vector<8x32xf32>
    %751 = arith.negf %750 : vector<8x32xf32>
    %752 = math.exp %751 : vector<8x32xf32>
    %cst_456 = arith.constant 1.000000e+00 : f32
    %753 = vector.broadcast %cst_456 : f32 to vector<8x32xf32>
    %754 = arith.addf %753, %752 : vector<8x32xf32>
    %755 = arith.divf %753, %754 : vector<8x32xf32>
    %756 = arith.mulf %737, %641 : vector<8x32xf32>
    %757 = arith.mulf %726, %744 : vector<8x32xf32>
    %758 = arith.addf %756, %757 : vector<8x32xf32>
    %759 = math.tanh %758 : vector<8x32xf32>
    %760 = arith.mulf %755, %759 : vector<8x32xf32>
    %c0_457 = arith.constant 0 : index
    %c0_458 = arith.constant 0 : index
    %c0_459 = arith.constant 0 : index
    %761 = vector.load %arg3[%c0_457, %c0_458, %c0_459] : memref<4x32x32xf32, #tpu.memory_space<vmem>>, vector<1x32x32xf32>
    %762 = vector.shape_cast %761 : vector<1x32x32xf32> to vector<32x32xf32>
    %cst_460 = arith.constant dense<0.000000e+00> : vector<8x32xf32>
    %763 = tpu.matmul %760, %762, %cst_460 {dimension_numbers = #tpu.dot_dimension_numbers<[1], [0], [0], [1], [0, 0, 1, 1], [], []>} : vector<8x32xf32>, vector<32x32xf32>, vector<8x32xf32> -> vector<8x32xf32>
    %c0_461 = arith.constant 0 : index
    %c0_462 = arith.constant 0 : index
    %c0_463 = arith.constant 0 : index
    %764 = vector.load %arg5[%c0_461, %c0_462, %c0_463] : memref<4x1x32xf32, #tpu.memory_space<vmem>>, vector<1x1x32xf32>
    %765 = vector.shape_cast %764 : vector<1x1x32xf32> to vector<1x32xf32>
    %766 = vector.broadcast %765 : vector<1x32xf32> to vector<8x32xf32>
    %767 = arith.addf %763, %766 : vector<8x32xf32>
    %c0_464 = arith.constant 0 : index
    %c0_465 = arith.constant 0 : index
    %c0_466 = arith.constant 0 : index
    %768 = vector.load %arg4[%c0_464, %c0_465, %c0_466] : memref<4x32x32xf32, #tpu.memory_space<vmem>>, vector<1x32x32xf32>
    %769 = vector.shape_cast %768 : vector<1x32x32xf32> to vector<32x32xf32>
    %cst_467 = arith.constant dense<0.000000e+00> : vector<8x32xf32>
    %770 = tpu.matmul %708, %769, %cst_467 {dimension_numbers = #tpu.dot_dimension_numbers<[1], [0], [0], [1], [0, 0, 1, 1], [], []>} : vector<8x32xf32>, vector<32x32xf32>, vector<8x32xf32> -> vector<8x32xf32>
    %771 = arith.addf %767, %770 : vector<8x32xf32>
    %772 = arith.negf %771 : vector<8x32xf32>
    %773 = math.exp %772 : vector<8x32xf32>
    %cst_468 = arith.constant 1.000000e+00 : f32
    %774 = vector.broadcast %cst_468 : f32 to vector<8x32xf32>
    %775 = arith.addf %774, %773 : vector<8x32xf32>
    %776 = arith.divf %774, %775 : vector<8x32xf32>
    %c1_469 = arith.constant 1 : index
    %c0_470 = arith.constant 0 : index
    %c0_471 = arith.constant 0 : index
    %777 = vector.load %arg3[%c1_469, %c0_470, %c0_471] : memref<4x32x32xf32, #tpu.memory_space<vmem>>, vector<1x32x32xf32>
    %778 = vector.shape_cast %777 : vector<1x32x32xf32> to vector<32x32xf32>
    %cst_472 = arith.constant dense<0.000000e+00> : vector<8x32xf32>
    %779 = tpu.matmul %760, %778, %cst_472 {dimension_numbers = #tpu.dot_dimension_numbers<[1], [0], [0], [1], [0, 0, 1, 1], [], []>} : vector<8x32xf32>, vector<32x32xf32>, vector<8x32xf32> -> vector<8x32xf32>
    %c1_473 = arith.constant 1 : index
    %c0_474 = arith.constant 0 : index
    %c0_475 = arith.constant 0 : index
    %780 = vector.load %arg5[%c1_473, %c0_474, %c0_475] : memref<4x1x32xf32, #tpu.memory_space<vmem>>, vector<1x1x32xf32>
    %781 = vector.shape_cast %780 : vector<1x1x32xf32> to vector<1x32xf32>
    %782 = vector.broadcast %781 : vector<1x32xf32> to vector<8x32xf32>
    %783 = arith.addf %779, %782 : vector<8x32xf32>
    %c1_476 = arith.constant 1 : index
    %c0_477 = arith.constant 0 : index
    %c0_478 = arith.constant 0 : index
    %784 = vector.load %arg4[%c1_476, %c0_477, %c0_478] : memref<4x32x32xf32, #tpu.memory_space<vmem>>, vector<1x32x32xf32>
    %785 = vector.shape_cast %784 : vector<1x32x32xf32> to vector<32x32xf32>
    %cst_479 = arith.constant dense<0.000000e+00> : vector<8x32xf32>
    %786 = tpu.matmul %708, %785, %cst_479 {dimension_numbers = #tpu.dot_dimension_numbers<[1], [0], [0], [1], [0, 0, 1, 1], [], []>} : vector<8x32xf32>, vector<32x32xf32>, vector<8x32xf32> -> vector<8x32xf32>
    %787 = arith.addf %783, %786 : vector<8x32xf32>
    %788 = arith.negf %787 : vector<8x32xf32>
    %789 = math.exp %788 : vector<8x32xf32>
    %cst_480 = arith.constant 1.000000e+00 : f32
    %790 = vector.broadcast %cst_480 : f32 to vector<8x32xf32>
    %791 = arith.addf %790, %789 : vector<8x32xf32>
    %792 = arith.divf %790, %791 : vector<8x32xf32>
    %c2_481 = arith.constant 2 : index
    %c0_482 = arith.constant 0 : index
    %c0_483 = arith.constant 0 : index
    %793 = vector.load %arg3[%c2_481, %c0_482, %c0_483] : memref<4x32x32xf32, #tpu.memory_space<vmem>>, vector<1x32x32xf32>
    %794 = vector.shape_cast %793 : vector<1x32x32xf32> to vector<32x32xf32>
    %cst_484 = arith.constant dense<0.000000e+00> : vector<8x32xf32>
    %795 = tpu.matmul %760, %794, %cst_484 {dimension_numbers = #tpu.dot_dimension_numbers<[1], [0], [0], [1], [0, 0, 1, 1], [], []>} : vector<8x32xf32>, vector<32x32xf32>, vector<8x32xf32> -> vector<8x32xf32>
    %c2_485 = arith.constant 2 : index
    %c0_486 = arith.constant 0 : index
    %c0_487 = arith.constant 0 : index
    %796 = vector.load %arg5[%c2_485, %c0_486, %c0_487] : memref<4x1x32xf32, #tpu.memory_space<vmem>>, vector<1x1x32xf32>
    %797 = vector.shape_cast %796 : vector<1x1x32xf32> to vector<1x32xf32>
    %798 = vector.broadcast %797 : vector<1x32xf32> to vector<8x32xf32>
    %799 = arith.addf %795, %798 : vector<8x32xf32>
    %c2_488 = arith.constant 2 : index
    %c0_489 = arith.constant 0 : index
    %c0_490 = arith.constant 0 : index
    %800 = vector.load %arg4[%c2_488, %c0_489, %c0_490] : memref<4x32x32xf32, #tpu.memory_space<vmem>>, vector<1x32x32xf32>
    %801 = vector.shape_cast %800 : vector<1x32x32xf32> to vector<32x32xf32>
    %cst_491 = arith.constant dense<0.000000e+00> : vector<8x32xf32>
    %802 = tpu.matmul %708, %801, %cst_491 {dimension_numbers = #tpu.dot_dimension_numbers<[1], [0], [0], [1], [0, 0, 1, 1], [], []>} : vector<8x32xf32>, vector<32x32xf32>, vector<8x32xf32> -> vector<8x32xf32>
    %803 = arith.addf %799, %802 : vector<8x32xf32>
    %804 = math.tanh %803 : vector<8x32xf32>
    %c3_492 = arith.constant 3 : index
    %c0_493 = arith.constant 0 : index
    %c0_494 = arith.constant 0 : index
    %805 = vector.load %arg3[%c3_492, %c0_493, %c0_494] : memref<4x32x32xf32, #tpu.memory_space<vmem>>, vector<1x32x32xf32>
    %806 = vector.shape_cast %805 : vector<1x32x32xf32> to vector<32x32xf32>
    %cst_495 = arith.constant dense<0.000000e+00> : vector<8x32xf32>
    %807 = tpu.matmul %760, %806, %cst_495 {dimension_numbers = #tpu.dot_dimension_numbers<[1], [0], [0], [1], [0, 0, 1, 1], [], []>} : vector<8x32xf32>, vector<32x32xf32>, vector<8x32xf32> -> vector<8x32xf32>
    %c3_496 = arith.constant 3 : index
    %c0_497 = arith.constant 0 : index
    %c0_498 = arith.constant 0 : index
    %808 = vector.load %arg5[%c3_496, %c0_497, %c0_498] : memref<4x1x32xf32, #tpu.memory_space<vmem>>, vector<1x1x32xf32>
    %809 = vector.shape_cast %808 : vector<1x1x32xf32> to vector<1x32xf32>
    %810 = vector.broadcast %809 : vector<1x32xf32> to vector<8x32xf32>
    %811 = arith.addf %807, %810 : vector<8x32xf32>
    %c3_499 = arith.constant 3 : index
    %c0_500 = arith.constant 0 : index
    %c0_501 = arith.constant 0 : index
    %812 = vector.load %arg4[%c3_499, %c0_500, %c0_501] : memref<4x32x32xf32, #tpu.memory_space<vmem>>, vector<1x32x32xf32>
    %813 = vector.shape_cast %812 : vector<1x32x32xf32> to vector<32x32xf32>
    %cst_502 = arith.constant dense<0.000000e+00> : vector<8x32xf32>
    %814 = tpu.matmul %708, %813, %cst_502 {dimension_numbers = #tpu.dot_dimension_numbers<[1], [0], [0], [1], [0, 0, 1, 1], [], []>} : vector<8x32xf32>, vector<32x32xf32>, vector<8x32xf32> -> vector<8x32xf32>
    %815 = arith.addf %811, %814 : vector<8x32xf32>
    %816 = arith.negf %815 : vector<8x32xf32>
    %817 = math.exp %816 : vector<8x32xf32>
    %cst_503 = arith.constant 1.000000e+00 : f32
    %818 = vector.broadcast %cst_503 : f32 to vector<8x32xf32>
    %819 = arith.addf %818, %817 : vector<8x32xf32>
    %820 = arith.divf %818, %819 : vector<8x32xf32>
    %821 = arith.mulf %792, %706 : vector<8x32xf32>
    %822 = arith.mulf %776, %804 : vector<8x32xf32>
    %823 = arith.addf %821, %822 : vector<8x32xf32>
    %824 = math.tanh %823 : vector<8x32xf32>
    %825 = arith.mulf %820, %824 : vector<8x32xf32>
    %826 = arith.index_cast %c6_i32 : i32 to index
    %c0_504 = arith.constant 0 : index
    %c0_505 = arith.constant 0 : index
    %827 = vector.load %arg6[%826, %c0_504, %c0_505] : memref<8x8x32xf32, #tpu.memory_space<vmem>>, vector<1x8x32xf32>
    %828 = vector.shape_cast %827 : vector<1x8x32xf32> to vector<8x32xf32>
    %829 = vector.shape_cast %825 : vector<8x32xf32> to vector<1x8x32xf32>
    tpu.vector_store %arg6[%826, %c0_504, %c0_505], %829 {strides = array<i32>} : memref<8x8x32xf32, #tpu.memory_space<vmem>>, vector<1x8x32xf32>,
    %c7_i32 = arith.constant 7 : i32
    %830 = arith.index_cast %c7_i32 : i32 to index
    %c0_506 = arith.constant 0 : index
    %c0_507 = arith.constant 0 : index
    %c0_508 = arith.constant 0 : index
    %831 = vector.load %arg1[%830, %c0_506, %c0_507, %c0_508] : memref<8x4x8x32xf32, #tpu.memory_space<vmem>>, vector<1x4x8x32xf32>
    %832 = vector.shape_cast %831 : vector<1x4x8x32xf32> to vector<4x8x32xf32>
    %833 = vector.extract_strided_slice %832 {offsets = [0, 0, 0], sizes = [1, 8, 32], strides = [1, 1, 1]} : vector<4x8x32xf32> to vector<1x8x32xf32>
    %834 = vector.shape_cast %833 : vector<1x8x32xf32> to vector<8x32xf32>
    %c0_509 = arith.constant 0 : index
    %c0_510 = arith.constant 0 : index
    %c0_511 = arith.constant 0 : index
    %835 = vector.load %arg2[%c0_509, %c0_510, %c0_511] : memref<4x32x32xf32, #tpu.memory_space<vmem>>, vector<1x32x32xf32>
    %836 = vector.shape_cast %835 : vector<1x32x32xf32> to vector<32x32xf32>
    %cst_512 = arith.constant dense<0.000000e+00> : vector<8x32xf32>
    %837 = tpu.matmul %760, %836, %cst_512 {dimension_numbers = #tpu.dot_dimension_numbers<[1], [0], [0], [1], [0, 0, 1, 1], [], []>} : vector<8x32xf32>, vector<32x32xf32>, vector<8x32xf32> -> vector<8x32xf32>
    %838 = arith.addf %834, %837 : vector<8x32xf32>
    %839 = arith.negf %838 : vector<8x32xf32>
    %840 = math.exp %839 : vector<8x32xf32>
    %cst_513 = arith.constant 1.000000e+00 : f32
    %841 = vector.broadcast %cst_513 : f32 to vector<8x32xf32>
    %842 = arith.addf %841, %840 : vector<8x32xf32>
    %843 = arith.divf %841, %842 : vector<8x32xf32>
    %844 = vector.extract_strided_slice %832 {offsets = [1, 0, 0], sizes = [1, 8, 32], strides = [1, 1, 1]} : vector<4x8x32xf32> to vector<1x8x32xf32>
    %845 = vector.shape_cast %844 : vector<1x8x32xf32> to vector<8x32xf32>
    %c1_514 = arith.constant 1 : index
    %c0_515 = arith.constant 0 : index
    %c0_516 = arith.constant 0 : index
    %846 = vector.load %arg2[%c1_514, %c0_515, %c0_516] : memref<4x32x32xf32, #tpu.memory_space<vmem>>, vector<1x32x32xf32>
    %847 = vector.shape_cast %846 : vector<1x32x32xf32> to vector<32x32xf32>
    %cst_517 = arith.constant dense<0.000000e+00> : vector<8x32xf32>
    %848 = tpu.matmul %760, %847, %cst_517 {dimension_numbers = #tpu.dot_dimension_numbers<[1], [0], [0], [1], [0, 0, 1, 1], [], []>} : vector<8x32xf32>, vector<32x32xf32>, vector<8x32xf32> -> vector<8x32xf32>
    %849 = arith.addf %845, %848 : vector<8x32xf32>
    %850 = arith.negf %849 : vector<8x32xf32>
    %851 = math.exp %850 : vector<8x32xf32>
    %cst_518 = arith.constant 1.000000e+00 : f32
    %852 = vector.broadcast %cst_518 : f32 to vector<8x32xf32>
    %853 = arith.addf %852, %851 : vector<8x32xf32>
    %854 = arith.divf %852, %853 : vector<8x32xf32>
    %855 = vector.extract_strided_slice %832 {offsets = [2, 0, 0], sizes = [1, 8, 32], strides = [1, 1, 1]} : vector<4x8x32xf32> to vector<1x8x32xf32>
    %856 = vector.shape_cast %855 : vector<1x8x32xf32> to vector<8x32xf32>
    %c2_519 = arith.constant 2 : index
    %c0_520 = arith.constant 0 : index
    %c0_521 = arith.constant 0 : index
    %857 = vector.load %arg2[%c2_519, %c0_520, %c0_521] : memref<4x32x32xf32, #tpu.memory_space<vmem>>, vector<1x32x32xf32>
    %858 = vector.shape_cast %857 : vector<1x32x32xf32> to vector<32x32xf32>
    %cst_522 = arith.constant dense<0.000000e+00> : vector<8x32xf32>
    %859 = tpu.matmul %760, %858, %cst_522 {dimension_numbers = #tpu.dot_dimension_numbers<[1], [0], [0], [1], [0, 0, 1, 1], [], []>} : vector<8x32xf32>, vector<32x32xf32>, vector<8x32xf32> -> vector<8x32xf32>
    %860 = arith.addf %856, %859 : vector<8x32xf32>
    %861 = math.tanh %860 : vector<8x32xf32>
    %862 = vector.extract_strided_slice %832 {offsets = [3, 0, 0], sizes = [1, 8, 32], strides = [1, 1, 1]} : vector<4x8x32xf32> to vector<1x8x32xf32>
    %863 = vector.shape_cast %862 : vector<1x8x32xf32> to vector<8x32xf32>
    %c3_523 = arith.constant 3 : index
    %c0_524 = arith.constant 0 : index
    %c0_525 = arith.constant 0 : index
    %864 = vector.load %arg2[%c3_523, %c0_524, %c0_525] : memref<4x32x32xf32, #tpu.memory_space<vmem>>, vector<1x32x32xf32>
    %865 = vector.shape_cast %864 : vector<1x32x32xf32> to vector<32x32xf32>
    %cst_526 = arith.constant dense<0.000000e+00> : vector<8x32xf32>
    %866 = tpu.matmul %760, %865, %cst_526 {dimension_numbers = #tpu.dot_dimension_numbers<[1], [0], [0], [1], [0, 0, 1, 1], [], []>} : vector<8x32xf32>, vector<32x32xf32>, vector<8x32xf32> -> vector<8x32xf32>
    %867 = arith.addf %863, %866 : vector<8x32xf32>
    %868 = arith.negf %867 : vector<8x32xf32>
    %869 = math.exp %868 : vector<8x32xf32>
    %cst_527 = arith.constant 1.000000e+00 : f32
    %870 = vector.broadcast %cst_527 : f32 to vector<8x32xf32>
    %871 = arith.addf %870, %869 : vector<8x32xf32>
    %872 = arith.divf %870, %871 : vector<8x32xf32>
    %873 = arith.mulf %854, %758 : vector<8x32xf32>
    %874 = arith.mulf %843, %861 : vector<8x32xf32>
    %875 = arith.addf %873, %874 : vector<8x32xf32>
    %876 = math.tanh %875 : vector<8x32xf32>
    %877 = arith.mulf %872, %876 : vector<8x32xf32>
    %c0_528 = arith.constant 0 : index
    %c0_529 = arith.constant 0 : index
    %c0_530 = arith.constant 0 : index
    %878 = vector.load %arg3[%c0_528, %c0_529, %c0_530] : memref<4x32x32xf32, #tpu.memory_space<vmem>>, vector<1x32x32xf32>
    %879 = vector.shape_cast %878 : vector<1x32x32xf32> to vector<32x32xf32>
    %cst_531 = arith.constant dense<0.000000e+00> : vector<8x32xf32>
    %880 = tpu.matmul %877, %879, %cst_531 {dimension_numbers = #tpu.dot_dimension_numbers<[1], [0], [0], [1], [0, 0, 1, 1], [], []>} : vector<8x32xf32>, vector<32x32xf32>, vector<8x32xf32> -> vector<8x32xf32>
    %c0_532 = arith.constant 0 : index
    %c0_533 = arith.constant 0 : index
    %c0_534 = arith.constant 0 : index
    %881 = vector.load %arg5[%c0_532, %c0_533, %c0_534] : memref<4x1x32xf32, #tpu.memory_space<vmem>>, vector<1x1x32xf32>
    %882 = vector.shape_cast %881 : vector<1x1x32xf32> to vector<1x32xf32>
    %883 = vector.broadcast %882 : vector<1x32xf32> to vector<8x32xf32>
    %884 = arith.addf %880, %883 : vector<8x32xf32>
    %c0_535 = arith.constant 0 : index
    %c0_536 = arith.constant 0 : index
    %c0_537 = arith.constant 0 : index
    %885 = vector.load %arg4[%c0_535, %c0_536, %c0_537] : memref<4x32x32xf32, #tpu.memory_space<vmem>>, vector<1x32x32xf32>
    %886 = vector.shape_cast %885 : vector<1x32x32xf32> to vector<32x32xf32>
    %cst_538 = arith.constant dense<0.000000e+00> : vector<8x32xf32>
    %887 = tpu.matmul %825, %886, %cst_538 {dimension_numbers = #tpu.dot_dimension_numbers<[1], [0], [0], [1], [0, 0, 1, 1], [], []>} : vector<8x32xf32>, vector<32x32xf32>, vector<8x32xf32> -> vector<8x32xf32>
    %888 = arith.addf %884, %887 : vector<8x32xf32>
    %889 = arith.negf %888 : vector<8x32xf32>
    %890 = math.exp %889 : vector<8x32xf32>
    %cst_539 = arith.constant 1.000000e+00 : f32
    %891 = vector.broadcast %cst_539 : f32 to vector<8x32xf32>
    %892 = arith.addf %891, %890 : vector<8x32xf32>
    %893 = arith.divf %891, %892 : vector<8x32xf32>
    %c1_540 = arith.constant 1 : index
    %c0_541 = arith.constant 0 : index
    %c0_542 = arith.constant 0 : index
    %894 = vector.load %arg3[%c1_540, %c0_541, %c0_542] : memref<4x32x32xf32, #tpu.memory_space<vmem>>, vector<1x32x32xf32>
    %895 = vector.shape_cast %894 : vector<1x32x32xf32> to vector<32x32xf32>
    %cst_543 = arith.constant dense<0.000000e+00> : vector<8x32xf32>
    %896 = tpu.matmul %877, %895, %cst_543 {dimension_numbers = #tpu.dot_dimension_numbers<[1], [0], [0], [1], [0, 0, 1, 1], [], []>} : vector<8x32xf32>, vector<32x32xf32>, vector<8x32xf32> -> vector<8x32xf32>
    %c1_544 = arith.constant 1 : index
    %c0_545 = arith.constant 0 : index
    %c0_546 = arith.constant 0 : index
    %897 = vector.load %arg5[%c1_544, %c0_545, %c0_546] : memref<4x1x32xf32, #tpu.memory_space<vmem>>, vector<1x1x32xf32>
    %898 = vector.shape_cast %897 : vector<1x1x32xf32> to vector<1x32xf32>
    %899 = vector.broadcast %898 : vector<1x32xf32> to vector<8x32xf32>
    %900 = arith.addf %896, %899 : vector<8x32xf32>
    %c1_547 = arith.constant 1 : index
    %c0_548 = arith.constant 0 : index
    %c0_549 = arith.constant 0 : index
    %901 = vector.load %arg4[%c1_547, %c0_548, %c0_549] : memref<4x32x32xf32, #tpu.memory_space<vmem>>, vector<1x32x32xf32>
    %902 = vector.shape_cast %901 : vector<1x32x32xf32> to vector<32x32xf32>
    %cst_550 = arith.constant dense<0.000000e+00> : vector<8x32xf32>
    %903 = tpu.matmul %825, %902, %cst_550 {dimension_numbers = #tpu.dot_dimension_numbers<[1], [0], [0], [1], [0, 0, 1, 1], [], []>} : vector<8x32xf32>, vector<32x32xf32>, vector<8x32xf32> -> vector<8x32xf32>
    %904 = arith.addf %900, %903 : vector<8x32xf32>
    %905 = arith.negf %904 : vector<8x32xf32>
    %906 = math.exp %905 : vector<8x32xf32>
    %cst_551 = arith.constant 1.000000e+00 : f32
    %907 = vector.broadcast %cst_551 : f32 to vector<8x32xf32>
    %908 = arith.addf %907, %906 : vector<8x32xf32>
    %909 = arith.divf %907, %908 : vector<8x32xf32>
    %c2_552 = arith.constant 2 : index
    %c0_553 = arith.constant 0 : index
    %c0_554 = arith.constant 0 : index
    %910 = vector.load %arg3[%c2_552, %c0_553, %c0_554] : memref<4x32x32xf32, #tpu.memory_space<vmem>>, vector<1x32x32xf32>
    %911 = vector.shape_cast %910 : vector<1x32x32xf32> to vector<32x32xf32>
    %cst_555 = arith.constant dense<0.000000e+00> : vector<8x32xf32>
    %912 = tpu.matmul %877, %911, %cst_555 {dimension_numbers = #tpu.dot_dimension_numbers<[1], [0], [0], [1], [0, 0, 1, 1], [], []>} : vector<8x32xf32>, vector<32x32xf32>, vector<8x32xf32> -> vector<8x32xf32>
    %c2_556 = arith.constant 2 : index
    %c0_557 = arith.constant 0 : index
    %c0_558 = arith.constant 0 : index
    %913 = vector.load %arg5[%c2_556, %c0_557, %c0_558] : memref<4x1x32xf32, #tpu.memory_space<vmem>>, vector<1x1x32xf32>
    %914 = vector.shape_cast %913 : vector<1x1x32xf32> to vector<1x32xf32>
    %915 = vector.broadcast %914 : vector<1x32xf32> to vector<8x32xf32>
    %916 = arith.addf %912, %915 : vector<8x32xf32>
    %c2_559 = arith.constant 2 : index
    %c0_560 = arith.constant 0 : index
    %c0_561 = arith.constant 0 : index
    %917 = vector.load %arg4[%c2_559, %c0_560, %c0_561] : memref<4x32x32xf32, #tpu.memory_space<vmem>>, vector<1x32x32xf32>
    %918 = vector.shape_cast %917 : vector<1x32x32xf32> to vector<32x32xf32>
    %cst_562 = arith.constant dense<0.000000e+00> : vector<8x32xf32>
    %919 = tpu.matmul %825, %918, %cst_562 {dimension_numbers = #tpu.dot_dimension_numbers<[1], [0], [0], [1], [0, 0, 1, 1], [], []>} : vector<8x32xf32>, vector<32x32xf32>, vector<8x32xf32> -> vector<8x32xf32>
    %920 = arith.addf %916, %919 : vector<8x32xf32>
    %921 = math.tanh %920 : vector<8x32xf32>
    %c3_563 = arith.constant 3 : index
    %c0_564 = arith.constant 0 : index
    %c0_565 = arith.constant 0 : index
    %922 = vector.load %arg3[%c3_563, %c0_564, %c0_565] : memref<4x32x32xf32, #tpu.memory_space<vmem>>, vector<1x32x32xf32>
    %923 = vector.shape_cast %922 : vector<1x32x32xf32> to vector<32x32xf32>
    %cst_566 = arith.constant dense<0.000000e+00> : vector<8x32xf32>
    %924 = tpu.matmul %877, %923, %cst_566 {dimension_numbers = #tpu.dot_dimension_numbers<[1], [0], [0], [1], [0, 0, 1, 1], [], []>} : vector<8x32xf32>, vector<32x32xf32>, vector<8x32xf32> -> vector<8x32xf32>
    %c3_567 = arith.constant 3 : index
    %c0_568 = arith.constant 0 : index
    %c0_569 = arith.constant 0 : index
    %925 = vector.load %arg5[%c3_567, %c0_568, %c0_569] : memref<4x1x32xf32, #tpu.memory_space<vmem>>, vector<1x1x32xf32>
    %926 = vector.shape_cast %925 : vector<1x1x32xf32> to vector<1x32xf32>
    %927 = vector.broadcast %926 : vector<1x32xf32> to vector<8x32xf32>
    %928 = arith.addf %924, %927 : vector<8x32xf32>
    %c3_570 = arith.constant 3 : index
    %c0_571 = arith.constant 0 : index
    %c0_572 = arith.constant 0 : index
    %929 = vector.load %arg4[%c3_570, %c0_571, %c0_572] : memref<4x32x32xf32, #tpu.memory_space<vmem>>, vector<1x32x32xf32>
    %930 = vector.shape_cast %929 : vector<1x32x32xf32> to vector<32x32xf32>
    %cst_573 = arith.constant dense<0.000000e+00> : vector<8x32xf32>
    %931 = tpu.matmul %825, %930, %cst_573 {dimension_numbers = #tpu.dot_dimension_numbers<[1], [0], [0], [1], [0, 0, 1, 1], [], []>} : vector<8x32xf32>, vector<32x32xf32>, vector<8x32xf32> -> vector<8x32xf32>
    %932 = arith.addf %928, %931 : vector<8x32xf32>
    %933 = arith.negf %932 : vector<8x32xf32>
    %934 = math.exp %933 : vector<8x32xf32>
    %cst_574 = arith.constant 1.000000e+00 : f32
    %935 = vector.broadcast %cst_574 : f32 to vector<8x32xf32>
    %936 = arith.addf %935, %934 : vector<8x32xf32>
    %937 = arith.divf %935, %936 : vector<8x32xf32>
    %938 = arith.mulf %909, %823 : vector<8x32xf32>
    %939 = arith.mulf %893, %921 : vector<8x32xf32>
    %940 = arith.addf %938, %939 : vector<8x32xf32>
    %941 = math.tanh %940 : vector<8x32xf32>
    %942 = arith.mulf %937, %941 : vector<8x32xf32>
    %943 = arith.index_cast %c7_i32 : i32 to index
    %c0_575 = arith.constant 0 : index
    %c0_576 = arith.constant 0 : index
    %944 = vector.load %arg6[%943, %c0_575, %c0_576] : memref<8x8x32xf32, #tpu.memory_space<vmem>>, vector<1x8x32xf32>
    %945 = vector.shape_cast %944 : vector<1x8x32xf32> to vector<8x32xf32>
    %946 = vector.shape_cast %942 : vector<8x32xf32> to vector<1x8x32xf32>
    tpu.vector_store %arg6[%943, %c0_575, %c0_576], %946 {strides = array<i32>} : memref<8x8x32xf32, #tpu.memory_space<vmem>>, vector<1x8x32xf32>,
    %c8_i32 = arith.constant 8 : i32
    %c0_577 = arith.constant 0 : index
    %c0_578 = arith.constant 0 : index
    %c0_579 = arith.constant 0 : index
    %947 = vector.load %arg7[%c0_577, %c0_578, %c0_579] : memref<4x8x32xf32, #tpu.memory_space<vmem>>, vector<1x8x32xf32>
    %948 = vector.shape_cast %947 : vector<1x8x32xf32> to vector<8x32xf32>
    %949 = vector.shape_cast %877 : vector<8x32xf32> to vector<1x8x32xf32>
    tpu.vector_store %arg7[%c0_577, %c0_578, %c0_579], %949 {strides = array<i32>} : memref<4x8x32xf32, #tpu.memory_space<vmem>>, vector<1x8x32xf32>,
    %c1_580 = arith.constant 1 : index
    %c0_581 = arith.constant 0 : index
    %c0_582 = arith.constant 0 : index
    %950 = vector.load %arg7[%c1_580, %c0_581, %c0_582] : memref<4x8x32xf32, #tpu.memory_space<vmem>>, vector<1x8x32xf32>
    %951 = vector.shape_cast %950 : vector<1x8x32xf32> to vector<8x32xf32>
    %952 = vector.shape_cast %875 : vector<8x32xf32> to vector<1x8x32xf32>
    tpu.vector_store %arg7[%c1_580, %c0_581, %c0_582], %952 {strides = array<i32>} : memref<4x8x32xf32, #tpu.memory_space<vmem>>, vector<1x8x32xf32>,
    %c2_583 = arith.constant 2 : index
    %c0_584 = arith.constant 0 : index
    %c0_585 = arith.constant 0 : index
    %953 = vector.load %arg7[%c2_583, %c0_584, %c0_585] : memref<4x8x32xf32, #tpu.memory_space<vmem>>, vector<1x8x32xf32>
    %954 = vector.shape_cast %953 : vector<1x8x32xf32> to vector<8x32xf32>
    %955 = vector.shape_cast %942 : vector<8x32xf32> to vector<1x8x32xf32>
    tpu.vector_store %arg7[%c2_583, %c0_584, %c0_585], %955 {strides = array<i32>} : memref<4x8x32xf32, #tpu.memory_space<vmem>>, vector<1x8x32xf32>,
    %c3_586 = arith.constant 3 : index
    %c0_587 = arith.constant 0 : index
    %c0_588 = arith.constant 0 : index
    %956 = vector.load %arg7[%c3_586, %c0_587, %c0_588] : memref<4x8x32xf32, #tpu.memory_space<vmem>>, vector<1x8x32xf32>
    %957 = vector.shape_cast %956 : vector<1x8x32xf32> to vector<8x32xf32>
    %958 = vector.shape_cast %940 : vector<8x32xf32> to vector<1x8x32xf32>
    tpu.vector_store %arg7[%c3_586, %c0_587, %c0_588], %958 {strides = array<i32>} : memref<4x8x32xf32, #tpu.memory_space<vmem>>, vector<1x8x32xf32>,
    return
  }
  func.func @transform_0(%arg0: i32) -> (i32, i32, i32, i32) {
    %c0_i32 = arith.constant 0 : i32
    %c0_i32_0 = arith.constant 0 : i32
    %c0_i32_1 = arith.constant 0 : i32
    %c0_i32_2 = arith.constant 0 : i32
    return %arg0, %c0_i32, %c0_i32_0, %c0_i32_1 : i32, i32, i32, i32
  }
  func.func @transform_1(%arg0: i32) -> (i32, i32, i32) {
    %c0_i32 = arith.constant 0 : i32
    %c0_i32_0 = arith.constant 0 : i32
    %c0_i32_1 = arith.constant 0 : i32
    %c0_i32_2 = arith.constant 0 : i32
    return %c0_i32, %c0_i32_0, %c0_i32_1 : i32, i32, i32
  }
  func.func @transform_2(%arg0: i32) -> (i32, i32, i32) {
    %c0_i32 = arith.constant 0 : i32
    %c0_i32_0 = arith.constant 0 : i32
    %c0_i32_1 = arith.constant 0 : i32
    %c0_i32_2 = arith.constant 0 : i32
    return %c0_i32, %c0_i32_0, %c0_i32_1 : i32, i32, i32
  }
  func.func @transform_3(%arg0: i32) -> (i32, i32, i32) {
    %c0_i32 = arith.constant 0 : i32
    %c0_i32_0 = arith.constant 0 : i32
    %c0_i32_1 = arith.constant 0 : i32
    %c0_i32_2 = arith.constant 0 : i32
    return %c0_i32, %c0_i32_0, %c0_i32_1 : i32, i32, i32
  }
  func.func @transform_4(%arg0: i32) -> (i32, i32, i32) {
    %c0_i32 = arith.constant 0 : i32
    %c0_i32_0 = arith.constant 0 : i32
    %c0_i32_1 = arith.constant 0 : i32
    %c0_i32_2 = arith.constant 0 : i32
    return %c0_i32, %c0_i32_0, %c0_i32_1 : i32, i32, i32
  }
  func.func @transform_5(%arg0: i32) -> (i32, i32, i32) {
    %c0_i32 = arith.constant 0 : i32
    %c0_i32_0 = arith.constant 0 : i32
    %c0_i32_1 = arith.constant 0 : i32
    return %arg0, %c0_i32, %c0_i32_0 : i32, i32, i32
  }
}

</mosaic_0001>

<bundles_post_ra>
// kernel: _rnn_padded.1
= control target key start
LH: loop header
LB: loop body
LE: loop exit
PB: predicated region body
PF: predicated region fallthrough
CT: control target
= control target key end

     0   :  { %vm24_vm0 = vcmask 261120   ;;  %v12427_v0 = vmov 0.0   ;;  %vm10256_vm1 = vmmov 0   ;;  %s12421_s1 = inlined_call_operand.vmem [shape: f32[4,32,32], index: 1, kind: input, shape index: {}]   ;;  %s12422_s3 = inlined_call_operand.vmem [shape: f32[4,32,32], index: 3, kind: input, shape index: {}]   ;;  %s12423_s2 = inlined_call_operand.vmem [shape: f32[4,32,32], index: 2, kind: input, shape index: {}]   ;;  %s12424_s0 = inlined_call_operand.vmem [shape: f32[8,4,8,32], index: 0, kind: input, shape index: {}]   ;;  %s12425_s4 = inlined_call_operand.vmem [shape: f32[4,1,32], index: 4, kind: input, shape index: {}]   ;;  %s12426_s5 = inlined_call_operand.vmem [shape: f32[8,8,32], index: 5, kind: output, shape index: {}]  }
   0x1   :  { %8941 = vmatprep.subr.mxu0 %v12427_v0  ;;  %8952 = vmatprep.subr.mxu1 %v12427_v0  ;;  %v10292_v1 = vld [vmem:[%s12421_s1 + $0x18] sm:$0xff]  ;;  %v10302_v3 = vld [vmem:[%s12421_s1 + $0x10] sm:$0xff]  ;;  %25 = vst.msk [vmem:[#allocation2] sm:$0xff] %vm24_vm0, %v12427_v0  ;;  %26 = vst.msk [vmem:[#allocation2 + $0x8] sm:$0xff] %vm24_vm0, %v12427_v0 }
   0x2   :  { %v10297_v2 = vld [vmem:[%s12421_s1 + $0x38] sm:$0xff]  ;;  %27 = vst.msk [vmem:[#allocation2 + $0x10] sm:$0xff] %vm24_vm0, %v12427_v0  ;;  %28 = vst.msk [vmem:[#allocation2 + $0x18] sm:$0xff] %vm24_vm0, %v12427_v0  ;;  %8942 = vmatpush3.msra.mxu0 %v10292_v1  ;;  %v10317_v4 = vld [vmem:[%s12421_s1 + $0x30] sm:$0xff]  ;;  %8949 = vmatprep.mubr.msk.f32.mxu0 %vm10256_vm1, %v12427_v0 }
   0x3   :  { %8953 = vmatpush3.msra.mxu1 %v10297_v2  ;;  %8943 = vmatprep.subr.mxu0 %v12427_v0  ;;  %v10324_v5 = vld [vmem:[%s12421_s1 + $0x8] sm:$0xff]  ;;  %v10338_v7 = vld [vmem:[%s12421_s1] sm:$0xff]  ;;  %v10358_v10 = vld [vmem:[%s12421_s1 + $0x58] sm:$0xff] }
   0x4   :  { %8954 = vmatprep.subr.mxu1 %v12427_v0  ;;  %v10329_v6 = vld [vmem:[%s12421_s1 + $0x28] sm:$0xff]  ;;  %8944 = vmatpush3.msra.mxu0 %v10302_v3  ;;  %v10345_v8 = vld [vmem:[%s12421_s1 + $0x20] sm:$0xff]  ;;  %v10363_v11 = vld [vmem:[%s12421_s1 + $0x78] sm:$0xff] }
   0x5   :  { %8955 = vmatpush3.msra.mxu1 %v10317_v4  ;;  %8945 = vmatprep.subr.mxu0 %v12427_v0  ;;  %v10372_v12 = vld [vmem:[%s12421_s1 + $0x50] sm:$0xff]  ;;  %v10386_v14 = vld [vmem:[%s12421_s1 + $0x48] sm:$0xff]  ;;  %v10400_v16 = vld [vmem:[%s12421_s1 + $0x40] sm:$0xff] }
   0x6   :  { %8956 = vmatprep.subr.mxu1 %v12427_v0  ;;  %8946 = vmatpush3.msra.mxu0 %v10324_v5  ;;  %v10377_v13 = vld [vmem:[%s12421_s1 + $0x70] sm:$0xff]  ;;  %v10391_v15 = vld [vmem:[%s12421_s1 + $0x68] sm:$0xff]  ;;  %v10407_v17 = vld [vmem:[%s12421_s1 + $0x60] sm:$0xff] }
   0x7   :  { %8957 = vmatpush3.msra.mxu1 %v10329_v6  ;;  %8947 = vmatprep.subr.mxu0 %v12427_v0  ;;  %v10428_v18 = vld [vmem:[%s12422_s3 + $0x18] sm:$0xff]  ;;  %v10435_v19 = vld [vmem:[%s12422_s3 + $0x10] sm:$0xff]  ;;  %v10442_v20 = vld [vmem:[%s12422_s3 + $0x8] sm:$0xff] }
   0x8   :  { %8958 = vmatprep.subr.mxu1 %v12427_v0  ;;  %8948 = vmatpush3.msra.mxu0 %v10338_v7  ;;  %v29_v9 = vld [vmem:[#allocation2] sm:$0xff]  ;;  %12450 = vst [vmem:[#allocation3_spill] sm:$0xff] %v10435_v19  ;;  %12451 = vst [vmem:[#allocation4_spill] sm:$0xff] %v10442_v20  ;;  %v10456_v23 = vld [vmem:[%s12422_s3 + $0x38] sm:$0xff] }
   0x9   :  { %8959 = vmatpush3.msra.mxu1 %v10345_v8  ;;  %8960 = vmatprep.mubr.msk.f32.mxu1 %vm10256_vm1, %v12427_v0  ;;  %v10449_v21 = vld [vmem:[%s12422_s3] sm:$0xff]  ;;  %v33_v22 = vld [vmem:[#allocation2 + $0x10] sm:$0xff]  ;;  %v10472_v25 = vld [vmem:[%s12422_s3 + $0x28] sm:$0xff] }
   0xa   :  { %8950 = vmatmul.mubr.msk.f32.vlgmr.msra.gmra.mxu0 %vm24_vm0, %v29_v9  ;;  %8961 = vmatmul.mubr.msk.f32.vlgmr.msra.gmra.mxu1 %vm24_vm0, %v29_v9  ;;  %12452 = vst [vmem:[#allocation5_spill] sm:$0xff] %v10449_v21  ;;  %v10463_v24 = vld [vmem:[%s12422_s3 + $0x30] sm:$0xff]  ;;  %v10479_v26 = vld [vmem:[%s12422_s3 + $0x20] sm:$0xff]  ;;  %v10486_v27 = vld [vmem:[%s12422_s3 + $0x58] sm:$0xff] }
   0xb   :  { %8963 = vmatprep.subr.mxu0 %v12427_v0  ;;  %8974 = vmatprep.subr.mxu1 %v12427_v0  ;;  %v10494_v28 = vld [vmem:[%s12422_s3 + $0x50] sm:$0xff]  ;;  %v10503_v29 = vld [vmem:[%s12422_s3 + $0x48] sm:$0xff]  ;;  %v10510_v30 = vld [vmem:[%s12422_s3 + $0x40] sm:$0xff] }
   0xc   :  { %8964 = vmatpush3.msra.mxu0 %v10358_v10  ;;  %8975 = vmatpush3.msra.mxu1 %v10363_v11  ;;  %v10517_v31 = vld [vmem:[%s12422_s3 + $0x78] sm:$0xff]  ;;  %v10525_v32 = vld [vmem:[%s12422_s3 + $0x70] sm:$0xff]  ;;  %v10534_v33 = vld [vmem:[%s12422_s3 + $0x68] sm:$0xff] }
   0xd   :  { %8965 = vmatprep.subr.mxu0 %v12427_v0  ;;  %8976 = vmatprep.subr.mxu1 %v12427_v0  ;;  %v10541_v34 = vld [vmem:[%s12422_s3 + $0x60] sm:$0xff]  ;;  %v10548_v35 = vld [vmem:[%s12423_s2 + $0x18] sm:$0xff]  ;;  %v10557_v36 = vld [vmem:[%s12423_s2 + $0x10] sm:$0xff] }
   0xe   :  { %8966 = vmatpush3.msra.mxu0 %v10372_v12  ;;  %8977 = vmatpush3.msra.mxu1 %v10377_v13  ;;  %v10566_v37 = vld [vmem:[%s12423_s2 + $0x8] sm:$0xff]  ;;  %v10575_v38 = vld [vmem:[%s12423_s2] sm:$0xff]  ;;  %v39_v49 = vld [vmem:[%s12424_s0 + $0x18] sm:$0xff] }
   0xf   :  { %8967 = vmatprep.subr.mxu0 %v12427_v0  ;;  %8978 = vmatprep.subr.mxu1 %v12427_v0  ;;  %12453 = vst [vmem:[#allocation6_spill] sm:$0xff] %v10575_v38  ;;  %v36_v39 = vld [vmem:[%s12424_s0] sm:$0xff]  ;;  %v37_v40 = vld [vmem:[%s12424_s0 + $0x8] sm:$0xff]  ;;  %v38_v53 = vld [vmem:[%s12424_s0 + $0x10] sm:$0xff] }
  0x10   :  { %8968 = vmatpush3.msra.mxu0 %v10386_v14  ;;  %8979 = vmatpush3.msra.mxu1 %v10391_v15 }
  0x11   :  { %8969 = vmatprep.subr.mxu0 %v12427_v0  ;;  %8980 = vmatprep.subr.mxu1 %v12427_v0 }
  0x12   :  { %8970 = vmatpush3.msra.mxu0 %v10400_v16  ;;  %8971 = vmatprep.mubr.msk.f32.mxu0 %vm10256_vm1, %v12427_v0 }
  0x13   :  { %8981 = vmatpush3.msra.mxu1 %v10407_v17  ;;  %8982 = vmatprep.mubr.msk.f32.mxu1 %vm10256_vm1, %v12427_v0 }
  0x14   :  { %8972 = vmatmul.mubr.msk.f32.vlgmr.msra.gmra.mxu0 %vm24_vm0, %v29_v9  ;;  %8983 = vmatmul.mubr.msk.f32.vlgmr.msra.gmra.mxu1 %vm24_vm0, %v29_v9  ;;  %v31_v9 = vld [vmem:[#allocation2 + $0x8] sm:$0xff] }
  0x15   :  { %8996 = vmatprep.subr.mxu1 %v12427_v0  ;;  %9004 = vmatprep.mubr.msk.f32.mxu1 %vm10256_vm1, %v12427_v0 }
  0x16   :  { %8985 = vmatprep.subr.mxu0 %v12427_v0  ;;  %8993 = vmatprep.mubr.msk.f32.mxu0 %vm10256_vm1, %v12427_v0 }
  0x17   :  { %8997 = vmatpush3.msra.mxu1 %v10428_v18  ;;  %8986 = vmatpush3.msra.mxu0 %v10548_v35 }
  0x18   :  { %8998 = vmatprep.subr.mxu1 %v12427_v0  ;;  %8987 = vmatprep.subr.mxu0 %v12427_v0 }
  0x19   :  { %8999 = vmatpush3.msra.mxu1 %v10435_v19  ;;  %8988 = vmatpush3.msra.mxu0 %v10557_v36 }
  0x1a   :  { %9000 = vmatprep.subr.mxu1 %v12427_v0  ;;  %8989 = vmatprep.subr.mxu0 %v12427_v0 }
  0x1b   :  { %9001 = vmatpush3.msra.mxu1 %v10442_v20  ;;  %8990 = vmatpush3.msra.mxu0 %v10566_v37 }
  0x1c   :  { %9002 = vmatprep.subr.mxu1 %v12427_v0  ;;  %8991 = vmatprep.subr.mxu0 %v12427_v0 }
  0x1d   :  { %9003 = vmatpush3.msra.mxu1 %v10449_v21  ;;  %8992 = vmatpush3.msra.mxu0 %v10575_v38 }
  0x1e   :  { %9018 = vmatprep.subr.mxu1 %v12427_v0  ;;  %9005 = vmatmul.mubr.msk.f32.vlgmr.msra.gmra.mxu1 %vm24_vm0, %v33_v22 }
  0x1f   :  { %9019 = vmatpush3.msra.mxu1 %v10456_v23  ;;  %9026 = vmatprep.mubr.msk.f32.mxu1 %vm10256_vm1, %v12427_v0 }
  0x20   :  { %9020 = vmatprep.subr.mxu1 %v12427_v0  ;;  %9007 = vmatprep.subr.mxu0 %v12427_v0 }
  0x21   :  { %9021 = vmatpush3.msra.mxu1 %v10463_v24 }
  0x22   :  { %9022 = vmatprep.subr.mxu1 %v12427_v0 }
  0x23   :  { %9023 = vmatpush3.msra.mxu1 %v10472_v25 }
  0x24   :  { %9024 = vmatprep.subr.mxu1 %v12427_v0 }
  0x25   :  { %9025 = vmatpush3.msra.mxu1 %v10479_v26 }
  0x26   :  { %9040 = vmatprep.subr.mxu1 %v12427_v0  ;;  %9027 = vmatmul.mubr.msk.f32.vlgmr.msra.gmra.mxu1 %vm24_vm0, %v33_v22 }
  0x27   :  { %9041 = vmatpush3.msra.mxu1 %v10486_v27  ;;  %9048 = vmatprep.mubr.msk.f32.mxu1 %vm10256_vm1, %v12427_v0 }
  0x28   :  { %9042 = vmatprep.subr.mxu1 %v12427_v0 }
  0x29   :  { %9043 = vmatpush3.msra.mxu1 %v10494_v28 }
  0x2a   :  { %9044 = vmatprep.subr.mxu1 %v12427_v0 }
  0x2b   :  { %9045 = vmatpush3.msra.mxu1 %v10503_v29 }
  0x2c   :  { %9046 = vmatprep.subr.mxu1 %v12427_v0 }
  0x2d   :  { %9047 = vmatpush3.msra.mxu1 %v10510_v30 }
  0x2e   :  { %9062 = vmatprep.subr.mxu1 %v12427_v0  ;;  %9049 = vmatmul.mubr.msk.f32.vlgmr.msra.gmra.mxu1 %vm24_vm0, %v33_v22 }
  0x2f   :  { %9063 = vmatpush3.msra.mxu1 %v10517_v31  ;;  %9070 = vmatprep.mubr.msk.f32.mxu1 %vm10256_vm1, %v12427_v0 }
  0x30   :  { %9064 = vmatprep.subr.mxu1 %v12427_v0 }
  0x31   :  { %9065 = vmatpush3.msra.mxu1 %v10525_v32 }
  0x32   :  { %9066 = vmatprep.subr.mxu1 %v12427_v0 }
  0x33   :  { %9067 = vmatpush3.msra.mxu1 %v10534_v33 }
  0x34   :  { %9068 = vmatprep.subr.mxu1 %v12427_v0 }
  0x35   :  { %9069 = vmatpush3.msra.mxu1 %v10541_v34 }
  0x36   :  { %9084 = vmatprep.subr.mxu1 %v12427_v0  ;;  %9071 = vmatmul.mubr.msk.f32.vlgmr.msra.gmra.mxu1 %vm24_vm0, %v33_v22 }
  0x37   :  { %9085 = vmatpush3.msra.mxu1 %v10297_v2  ;;  %9092 = vmatprep.mubr.msk.f32.mxu1 %vm10256_vm1, %v12427_v0 }
  0x38   :  { %9086 = vmatprep.subr.mxu1 %v12427_v0 }
  0x39   :  { %9087 = vmatpush3.msra.mxu1 %v10317_v4 }
  0x3a   :  { %9088 = vmatprep.subr.mxu1 %v12427_v0 }
  0x3b   :  { %9089 = vmatpush3.msra.mxu1 %v10329_v6 }
  0x3c   :  { %9090 = vmatprep.subr.mxu1 %v12427_v0 }
  0x3d   :  { %9091 = vmatpush3.msra.mxu1 %v10345_v8 }
  0x3e   :  { %9106 = vmatprep.subr.mxu1 %v12427_v0 }
  0xca   :  { %v114_v41 = vpop.f32.mrf.mxu0  ;;  %v196_v42 = vpop.f32.mrf.mxu1 }
  0xcb   :  { %v118_v43 = vadd.f32 %v114_v41, %v36_v39  ;;  %v200_v44 = vadd.f32 %v196_v42, %v37_v40 }
  0xcc   :  { %v8951_v45 = vpop.f32.mrf.mxu0  ;;  %v8962_v46 = vpop.f32.mrf.mxu1 }
  0xcd   :  { %v7939_v47 = vmul.f32 -1.442695, %v118_v43  ;;  %v7945_v48 = vmul.f32 -1.442695, %v200_v44 }
  0xcf   :  { %9999 = vpow2.f32 %v7939_v47  ;;  %v10605_v47 = vld [vmem:[%s12423_s2 + $0x38] sm:$0xff] }
  0xd0   :  { %10001 = vpow2.f32 %v7945_v48  ;;  %v10614_v48 = vld [vmem:[%s12423_s2 + $0x30] sm:$0xff] }
  0xd4   :  { %v278_v50 = vpop.f32.mrf.mxu0  ;;  %v355_v51 = vpop.f32.mrf.mxu1 }
  0xd5   :  { %v359_v52 = vadd.f32 %v355_v51, %v39_v49  ;;  %v282_v57 = vadd.f32 %v278_v50, %v38_v53  ;;  %v10623_v49 = vld [vmem:[%s12423_s2 + $0x28] sm:$0xff]  ;;  %v10632_v50 = vld [vmem:[%s12423_s2 + $0x20] sm:$0xff]  ;;  %v10644_v51 = vld [vmem:[%s12423_s2 + $0x58] sm:$0xff] }
  0xd6   :  { %v8973_v54 = vpop.f32.mrf.mxu0  ;;  %v8984_v55 = vpop.f32.mrf.mxu1  ;;  %v10664_v53 = vld [vmem:[%s12423_s2 + $0x48] sm:$0xff] }
  0xd7   :  { %v7956_v56 = vmul.f32 -1.442695, %v359_v52  ;;  %v10655_v52 = vld [vmem:[%s12423_s2 + $0x50] sm:$0xff]  ;;  %v10674_v54 = vld [vmem:[%s12423_s2 + $0x40] sm:$0xff]  ;;  %v10683_v55 = vld [vmem:[%s12423_s2 + $0x78] sm:$0xff] }
  0xd9   :  { %10003 = vpow2.f32 %v7956_v56  ;;  %v10703_v56 = vld [vmem:[%s12423_s2 + $0x68] sm:$0xff] }
  0xda   :  { %10005 = vtanh.f32 %v282_v57  ;;  %v10712_v57 = vld [vmem:[%s12423_s2 + $0x60] sm:$0xff] }
  0xdc   :  { %v10000_v58 = vpop.eup %9999 }
  0xdd   :  { %v10002_v59 = vpop.eup %10001  ;;  %v122_v60 = vadd.f32 1.0, %v10000_v58 }
  0xde   :  { %v204_v61 = vadd.f32 1.0, %v10002_v59  ;;  %v528_v58 = vpop.f32.mrf.mxu1 }
  0xdf   :  { %10007 = vrcp.f32 %v122_v60 }
  0xe0   :  { %10009 = vrcp.f32 %v204_v61  ;;  %v9006_v59 = vpop.f32.mrf.mxu1 }
  0xe6   :  { %v10004_v62 = vpop.eup %10003  ;;  %v693_v60 = vpop.f32.mrf.mxu1 }
  0xe7   :  { %v10006_v63 = vpop.eup %10005  ;;  %v363_v39 = vadd.f32 1.0, %v10004_v62 }
  0xe8   :  { %v9028_v61 = vpop.f32.mrf.mxu1 }
  0xe9   :  { %10011 = vrcp.f32 %v363_v39  ;;  %v10761_v39 = vld [vmem:[%s12425_s4] ss:$0 sm:$0xff]  ;;  %v10767_v61 = vld [vmem:[%s12425_s4 + $0x1] ss:$0 sm:$0xff] }
  0xea   :  { %12454 = vst [vmem:[#allocation7_spill] sm:$0xff] %v10761_v39  ;;  %12455 = vst [vmem:[#allocation8_spill] sm:$0xff] %v10767_v61 }
  0xec   :  { %v10008_v22 = vpop.eup %10007 }
  0xed   :  { %v10010_v40 = vpop.eup %10009  ;;  %v367_v41 = vmul.f32 %v10008_v22, %v10006_v63 }
  0xee   :  { %v366_v42 = vmul.f32 %v10010_v40, %v31_v9  ;;  %v858_v62 = vpop.f32.mrf.mxu1 }
  0xf0   :  { %v10597_v43 = vadd.f32 %v367_v41, %v366_v42  ;;  %v9050_v63 = vpop.f32.mrf.mxu1 }
  0xf2   :  { %10013 = vtanh.f32 %v10597_v43 }
  0xf6   :  { %v10012_v44 = vpop.eup %10011  ;;  %v1018_v9 = vpop.f32.mrf.mxu1 }
  0xf8   :  { %v9072_v22 = vpop.f32.mrf.mxu1 }
  0xff   :  { %v10014_v45 = vpop.eup %10013 }
 0x100   :  { %v10600_v46 = vmul.f32 %v10014_v45, %v10012_v44 }
 0x102   :  { %8994 = vmatmul.mubr.msk.f32.vlgmr.msra.gmra.mxu0 %vm24_vm0, %v10600_v46  ;;  %9093 = vmatmul.mubr.msk.f32.vlgmr.msra.gmra.mxu1 %vm24_vm0, %v10600_v46 }
 0x103   :  { %9008 = vmatpush3.msra.mxu0 %v10605_v47  ;;  %9107 = vmatpush3.msra.mxu1 %v10363_v11 }
 0x104   :  { %9009 = vmatprep.subr.mxu0 %v12427_v0  ;;  %9108 = vmatprep.subr.mxu1 %v12427_v0 }
 0x105   :  { %9010 = vmatpush3.msra.mxu0 %v10614_v48  ;;  %9109 = vmatpush3.msra.mxu1 %v10377_v13 }
 0x106   :  { %9011 = vmatprep.subr.mxu0 %v12427_v0  ;;  %9110 = vmatprep.subr.mxu1 %v12427_v0 }
 0x107   :  { %9012 = vmatpush3.msra.mxu0 %v10623_v49  ;;  %9111 = vmatpush3.msra.mxu1 %v10391_v15 }
 0x108   :  { %9013 = vmatprep.subr.mxu0 %v12427_v0  ;;  %9112 = vmatprep.subr.mxu1 %v12427_v0 }
 0x109   :  { %9014 = vmatpush3.msra.mxu0 %v10632_v50  ;;  %9015 = vmatprep.mubr.msk.f32.mxu0 %vm10256_vm1, %v12427_v0 }
 0x10a   :  { %9113 = vmatpush3.msra.mxu1 %v10407_v17  ;;  %9114 = vmatprep.mubr.msk.f32.mxu1 %vm10256_vm1, %v12427_v0 }
 0x10b   :  { %9016 = vmatmul.mubr.msk.f32.vlgmr.msra.gmra.mxu0 %vm24_vm0, %v10600_v46  ;;  %9029 = vmatprep.subr.mxu0 %v12427_v0 }
 0x10c   :  { %9115 = vmatmul.mubr.msk.f32.vlgmr.msra.gmra.mxu1 %vm24_vm0, %v10600_v46  ;;  %9030 = vmatpush3.msra.mxu0 %v10644_v51 }
 0x10d   :  { %9031 = vmatprep.subr.mxu0 %v12427_v0  ;;  %9037 = vmatprep.mubr.msk.f32.mxu0 %vm10256_vm1, %v12427_v0 }
 0x10e   :  { %9032 = vmatpush3.msra.mxu0 %v10655_v52  ;;  %9128 = vmatprep.subr.mxu1 %v12427_v0 }
 0x10f   :  { %9033 = vmatprep.subr.mxu0 %v12427_v0  ;;  %9129 = vmatpush3.msra.mxu1 %v10428_v18  ;;  %v10694_v18 = vld [vmem:[%s12423_s2 + $0x70] sm:$0xff] }
 0x110   :  { %9034 = vmatpush3.msra.mxu0 %v10664_v53  ;;  %9130 = vmatprep.subr.mxu1 %v12427_v0 }
 0x111   :  { %9035 = vmatprep.subr.mxu0 %v12427_v0  ;;  %9131 = vmatpush3.msra.mxu1 %v10435_v19 }
 0x112   :  { %9036 = vmatpush3.msra.mxu0 %v10674_v54  ;;  %9132 = vmatprep.subr.mxu1 %v12427_v0 }
 0x113   :  { %9038 = vmatmul.mubr.msk.f32.vlgmr.msra.gmra.mxu0 %vm24_vm0, %v10600_v46  ;;  %9051 = vmatprep.subr.mxu0 %v12427_v0 }
 0x114   :  { %9052 = vmatpush3.msra.mxu0 %v10683_v55  ;;  %9059 = vmatprep.mubr.msk.f32.mxu0 %vm10256_vm1, %v12427_v0 }
 0x115   :  { %9053 = vmatprep.subr.mxu0 %v12427_v0  ;;  %9133 = vmatpush3.msra.mxu1 %v10442_v20 }
 0x116   :  { %9054 = vmatpush3.msra.mxu0 %v10694_v18  ;;  %9134 = vmatprep.subr.mxu1 %v12427_v0 }
 0x117   :  { %9055 = vmatprep.subr.mxu0 %v12427_v0  ;;  %9135 = vmatpush3.msra.mxu1 %v10449_v21 }
 0x118   :  { %9056 = vmatpush3.msra.mxu0 %v10703_v56  ;;  %9136 = vmatprep.mubr.msk.f32.mxu1 %vm10256_vm1, %v12427_v0 }
 0x119   :  { %9057 = vmatprep.subr.mxu0 %v12427_v0  ;;  %9150 = vmatprep.subr.mxu1 %v12427_v0 }
 0x11a   :  { %9058 = vmatpush3.msra.mxu0 %v10712_v57 }
 0x11b   :  { %9060 = vmatmul.mubr.msk.f32.vlgmr.msra.gmra.mxu0 %vm24_vm0, %v10600_v46  ;;  %9073 = vmatprep.subr.mxu0 %v12427_v0 }
 0x11c   :  { %9074 = vmatpush3.msra.mxu0 %v10292_v1  ;;  %9081 = vmatprep.mubr.msk.f32.mxu0 %vm10256_vm1, %v12427_v0 }
 0x11d   :  { %9075 = vmatprep.subr.mxu0 %v12427_v0 }
 0x11e   :  { %9076 = vmatpush3.msra.mxu0 %v10302_v3 }
 0x11f   :  { %9077 = vmatprep.subr.mxu0 %v12427_v0 }
 0x120   :  { %9078 = vmatpush3.msra.mxu0 %v10324_v5 }
 0x121   :  { %9079 = vmatprep.subr.mxu0 %v12427_v0 }
 0x122   :  { %9080 = vmatpush3.msra.mxu0 %v10338_v7 }
 0x123   :  { %9082 = vmatmul.mubr.msk.f32.vlgmr.msra.gmra.mxu0 %vm24_vm0, %v10600_v46  ;;  %9095 = vmatprep.subr.mxu0 %v12427_v0 }
 0x124   :  { %9096 = vmatpush3.msra.mxu0 %v10358_v10  ;;  %9103 = vmatprep.mubr.msk.f32.mxu0 %vm10256_vm1, %v12427_v0 }
 0x125   :  { %9097 = vmatprep.subr.mxu0 %v12427_v0 }
 0x126   :  { %9098 = vmatpush3.msra.mxu0 %v10372_v12 }
 0x127   :  { %9099 = vmatprep.subr.mxu0 %v12427_v0 }
 0x128   :  { %9100 = vmatpush3.msra.mxu0 %v10386_v14 }
 0x129   :  { %9101 = vmatprep.subr.mxu0 %v12427_v0 }
 0x12a   :  { %9102 = vmatpush3.msra.mxu0 %v10400_v16 }
 0x12b   :  { %9104 = vmatmul.mubr.msk.f32.vlgmr.msra.gmra.mxu0 %vm24_vm0, %v10600_v46  ;;  %9117 = vmatprep.subr.mxu0 %v12427_v0 }
 0x12c   :  { %9118 = vmatpush3.msra.mxu0 %v10548_v35  ;;  %9125 = vmatprep.mubr.msk.f32.mxu0 %vm10256_vm1, %v12427_v0 }
 0x12d   :  { %9119 = vmatprep.subr.mxu0 %v12427_v0 }
 0x12e   :  { %9120 = vmatpush3.msra.mxu0 %v10557_v36 }
 0x12f   :  { %9121 = vmatprep.subr.mxu0 %v12427_v0 }
 0x130   :  { %9122 = vmatpush3.msra.mxu0 %v10566_v37 }
 0x131   :  { %9123 = vmatprep.subr.mxu0 %v12427_v0 }
 0x132   :  { %9124 = vmatpush3.msra.mxu0 %v10575_v38 }
 0x133   :  { %9139 = vmatprep.subr.mxu0 %v12427_v0 }
 0x1c2   :  { %v451_v40 = vpop.f32.mrf.mxu0  ;;  %v1191_v41 = vpop.f32.mrf.mxu1 }
 0x1c3   :  { %v452_v42 = vadd.f32 %v10761_v39, %v451_v40 }
 0x1c4   :  { %v8995_v44 = vpop.f32.mrf.mxu0  ;;  %v9094_v45 = vpop.f32.mrf.mxu1 }
 0x1c5   :  { %v532_v46 = vadd.f32 %v528_v58, %v452_v42  ;;  %v8000_v58 = vld [vmem:[%s12424_s0 + $0x28] sm:$0xff]  ;;  %v10776_v44 = vld [vmem:[%s12425_s4 + $0x2] ss:$0 sm:$0xff] }
 0x1c6   :  { %12456 = vst [vmem:[#allocation9_spill] sm:$0xff] %v10776_v44  ;;  %v1195_v45 = vadd.f32 %v8000_v58, %v1191_v41 }
 0x1c7   :  { %v7960_v59 = vmul.f32 -1.442695, %v532_v46 }
 0x1c9   :  { %10015 = vpow2.f32 %v7960_v59 }
 0x1cb   :  { %v618_v63 = vpop.f32.mrf.mxu0 }
 0x1cc   :  { %v619_v22 = vadd.f32 %v10767_v61, %v618_v63  ;;  %v1348_v0 = vpop.f32.mrf.mxu1 }
 0x1cd   :  { %v9017_v21 = vpop.f32.mrf.mxu0 }
 0x1ce   :  { %v697_v20 = vadd.f32 %v693_v60, %v619_v22  ;;  %v9116_v19 = vpop.f32.mrf.mxu1 }
 0x1cf   :  { %v10782_v19 = vld [vmem:[%s12425_s4 + $0x3] ss:$0 sm:$0xff] }
 0x1d0   :  { %v7973_v38 = vmul.f32 -1.442695, %v697_v20  ;;  %v8010_v20 = vmul.f32 -1.442695, %v1195_v45 }
 0x1d2   :  { %10017 = vpow2.f32 %v7973_v38 }
 0x1d3   :  { %v783_v40 = vpop.f32.mrf.mxu0  ;;  %10019 = vpow2.f32 %v8010_v20 }
 0x1d4   :  { %v784_v59 = vadd.f32 %v10776_v44, %v783_v40  ;;  %v7999_v40 = vld [vmem:[%s12424_s0 + $0x20] sm:$0xff] }
 0x1d5   :  { %v9039_v42 = vpop.f32.mrf.mxu0 }
 0x1d6   :  { %v10016_v46 = vpop.eup %10015  ;;  %v862_v63 = vadd.f32 %v858_v62, %v784_v59  ;;  %v8002_v62 = vld [vmem:[%s12424_s0 + $0x38] sm:$0xff] }
 0x1d7   :  { %v536_v38 = vadd.f32 1.0, %v10016_v46  ;;  %v1352_v20 = vadd.f32 %v8002_v62, %v1348_v0 }
 0x1d9   :  { %10021 = vrcp.f32 %v536_v38 }
 0x1da   :  { %10023 = vtanh.f32 %v862_v63 }
 0x1db   :  { %v943_v21 = vpop.f32.mrf.mxu0 }
 0x1dc   :  { %v944_v60 = vadd.f32 %v10782_v19, %v943_v21  ;;  %v35_v21 = vld [vmem:[#allocation2 + $0x18] sm:$0xff] }
 0x1dd   :  { %v9061_v22 = vpop.f32.mrf.mxu0 }
 0x1de   :  { %v1022_v42 = vadd.f32 %v1018_v9, %v944_v60 }
 0x1df   :  { %v10018_v61 = vpop.eup %10017 }
 0x1e0   :  { %v701_v41 = vadd.f32 1.0, %v10018_v61  ;;  %v7998_v58 = vmul.f32 -1.442695, %v1022_v42  ;;  %v10020_v59 = vpop.eup %10019 }
 0x1e2   :  { %10025 = vrcp.f32 %v701_v41 }
 0x1e3   :  { %10027 = vpow2.f32 %v7998_v58  ;;  %v1110_v45 = vpop.f32.mrf.mxu0 }
 0x1e4   :  { %v1114_v44 = vadd.f32 %v7999_v40, %v1110_v45  ;;  %v1199_v40 = vadd.f32 1.0, %v10020_v59 }
 0x1e5   :  { %v9083_v46 = vpop.f32.mrf.mxu0 }
 0x1e6   :  { %v8004_v39 = vmul.f32 -1.442695, %v1114_v44  ;;  %v10022_v61 = vpop.eup %10021  ;;  %v8001_v44 = vld [vmem:[%s12424_s0 + $0x30] sm:$0xff] }
 0x1e7   :  { %v10024_v60 = vpop.eup %10023 }
 0x1e8   :  { %10029 = vpow2.f32 %v8004_v39  ;;  %v1030_v41 = vmul.f32 %v10024_v60, %v10022_v61  ;;  %v8021_v39 = vmul.f32 -1.442695, %v1352_v20 }
 0x1eb   :  { %v1272_v9 = vpop.f32.mrf.mxu0 }
 0x1ec   :  { %v1276_v46 = vadd.f32 %v8001_v44, %v1272_v9 }
 0x1ed   :  { %v9105_v38 = vpop.f32.mrf.mxu0 }
 0x1ef   :  { %v10026_v63 = vpop.eup %10025 }
 0x1f0   :  { %v10028_v22 = vpop.eup %10027  ;;  %v1029_v42 = vmul.f32 %v10026_v63, %v35_v21 }
 0x1f1   :  { %v1026_v58 = vadd.f32 1.0, %v10028_v22  ;;  %v12457_v22 = vmov 0.0  }
 0x1f2   :  { %v10794_v45 = vadd.f32 %v1030_v41, %v1029_v42 }
 0x1f3   :  { %10031 = vrcp.f32 %v1026_v58 }
 0x1f4   :  { %10033 = vtanh.f32 %v10794_v45 }
 0x1f5   :  { %v10030_v0 = vpop.eup %10029  ;;  %10035 = vpow2.f32 %v8021_v39 }
 0x1f6   :  { %10037 = vrcp.f32 %v1199_v40  ;;  %v1118_v62 = vadd.f32 1.0, %v10030_v0 }
 0x1f7   :  { %10039 = vtanh.f32 %v1276_v46 }
 0x1f8   :  { %10041 = vrcp.f32 %v1118_v62 }
 0x200   :  { %v10032_v61 = vpop.eup %10031 }
 0x201   :  { %v10034_v21 = vpop.eup %10033 }
 0x202   :  { %v10036_v38 = vpop.eup %10035  ;;  %v1033_v60 = vmul.f32 %v10034_v21, %v10032_v61 }
 0x203   :  { %v10038_v63 = vpop.eup %10037  ;;  %v1356_v59 = vadd.f32 1.0, %v10036_v38 }
 0x204   :  { %v10040_v20 = vpop.eup %10039  ;;  %1034 = vst.msk [vmem:[%s12426_s5] sm:$0xff] %vm24_vm0, %v1033_v60  ;;  %9137 = vmatmul.mubr.msk.f32.vlgmr.msra.gmra.mxu1 %vm24_vm0, %v1033_v60  ;;  %v1359_v42 = vmul.f32 %v10038_v63, %v10597_v43 }
 0x205   :  { %v10042_v9 = vpop.eup %10041  ;;  %9151 = vmatpush3.msra.mxu1 %v10456_v23  ;;  %9158 = vmatprep.mubr.msk.f32.mxu1 %vm10256_vm1, %v12457_v22  ;;  %10043 = vrcp.f32 %v1356_v59  ;;  %v12464_v59 = vld [vmem:[#allocation9_spill] sm:$0xff] }
 0x206   :  { %v1360_v41 = vmul.f32 %v10042_v9, %v10040_v20  ;;  %9152 = vmatprep.subr.mxu1 %v12457_v22  ;;  %v8066_v9 = vld [vmem:[%s12424_s0 + $0x48] sm:$0xff] }
 0x207   :  { %9153 = vmatpush3.msra.mxu1 %v10463_v24 }
 0x208   :  { %v10808_v44 = vadd.f32 %v1360_v41, %v1359_v42  ;;  %9154 = vmatprep.subr.mxu1 %v12457_v22 }
 0x209   :  { %9155 = vmatpush3.msra.mxu1 %v10472_v25 }
 0x20a   :  { %10045 = vtanh.f32 %v10808_v44  ;;  %9156 = vmatprep.subr.mxu1 %v12457_v22 }
 0x20b   :  { %9157 = vmatpush3.msra.mxu1 %v10479_v26 }
 0x20c   :  { %9159 = vmatmul.mubr.msk.f32.vlgmr.msra.gmra.mxu1 %vm24_vm0, %v1033_v60  ;;  %9172 = vmatprep.subr.mxu1 %v12457_v22 }
 0x20d   :  { %9173 = vmatpush3.msra.mxu1 %v10486_v27  ;;  %9180 = vmatprep.mubr.msk.f32.mxu1 %vm10256_vm1, %v12457_v22 }
 0x20e   :  { %9174 = vmatprep.subr.mxu1 %v12457_v22 }
 0x20f   :  { %9175 = vmatpush3.msra.mxu1 %v10494_v28 }
 0x210   :  { %9176 = vmatprep.subr.mxu1 %v12457_v22 }
 0x211   :  { %9177 = vmatpush3.msra.mxu1 %v10503_v29 }
 0x212   :  { %9178 = vmatprep.subr.mxu1 %v12457_v22  ;;  %v10044_v43 = vpop.eup %10043 }
 0x213   :  { %9179 = vmatpush3.msra.mxu1 %v10510_v30 }
 0x214   :  { %9181 = vmatmul.mubr.msk.f32.vlgmr.msra.gmra.mxu1 %vm24_vm0, %v1033_v60  ;;  %9194 = vmatprep.subr.mxu1 %v12457_v22 }
 0x215   :  { %9195 = vmatpush3.msra.mxu1 %v10517_v31  ;;  %9202 = vmatprep.mubr.msk.f32.mxu1 %vm10256_vm1, %v12457_v22 }
 0x216   :  { %9196 = vmatprep.subr.mxu1 %v12457_v22 }
 0x217   :  { %v10046_v39 = vpop.eup %10045  ;;  %9197 = vmatpush3.msra.mxu1 %v10525_v32 }
 0x218   :  { %9198 = vmatprep.subr.mxu1 %v12457_v22  ;;  %v10834_v58 = vmul.f32 %v10046_v39, %v10044_v43 }
 0x219   :  { %9199 = vmatpush3.msra.mxu1 %v10534_v33 }
 0x21a   :  { %9200 = vmatprep.subr.mxu1 %v12457_v22  ;;  %9126 = vmatmul.mubr.msk.f32.vlgmr.msra.gmra.mxu0 %vm24_vm0, %v10834_v58 }
 0x21b   :  { %9140 = vmatpush3.msra.mxu0 %v10605_v47  ;;  %9201 = vmatpush3.msra.mxu1 %v10541_v34 }
 0x21c   :  { %9141 = vmatprep.subr.mxu0 %v12457_v22  ;;  %9203 = vmatmul.mubr.msk.f32.vlgmr.msra.gmra.mxu1 %vm24_vm0, %v1033_v60 }
 0x21d   :  { %9216 = vmatprep.subr.mxu1 %v12457_v22  ;;  %9142 = vmatpush3.msra.mxu0 %v10614_v48 }
 0x21e   :  { %9217 = vmatpush3.msra.mxu1 %v10297_v2  ;;  %9143 = vmatprep.subr.mxu0 %v12457_v22  ;;  %v10942_v2 = vld [vmem:[%s12422_s3 + $0x18] sm:$0xff] }
 0x21f   :  { %9218 = vmatprep.subr.mxu1 %v12457_v22  ;;  %9144 = vmatpush3.msra.mxu0 %v10623_v49 }
 0x220   :  { %9219 = vmatpush3.msra.mxu1 %v10317_v4  ;;  %9145 = vmatprep.subr.mxu0 %v12457_v22  ;;  %v12460_v4 = vld [vmem:[#allocation4_spill] sm:$0xff] }
 0x221   :  { %9220 = vmatprep.subr.mxu1 %v12457_v22  ;;  %9146 = vmatpush3.msra.mxu0 %v10632_v50 }
 0x222   :  { %9147 = vmatprep.mubr.msk.f32.mxu0 %vm10256_vm1, %v12457_v22  ;;  %9221 = vmatpush3.msra.mxu1 %v10329_v6 }
 0x223   :  { %9148 = vmatmul.mubr.msk.f32.vlgmr.msra.gmra.mxu0 %vm24_vm0, %v10834_v58  ;;  %9161 = vmatprep.subr.mxu0 %v12457_v22 }
 0x224   :  { %9222 = vmatprep.subr.mxu1 %v12457_v22  ;;  %9162 = vmatpush3.msra.mxu0 %v10644_v51 }
 0x225   :  { %9223 = vmatpush3.msra.mxu1 %v10345_v8  ;;  %9224 = vmatprep.mubr.msk.f32.mxu1 %vm10256_vm1, %v12457_v22 }
 0x226   :  { %9163 = vmatprep.subr.mxu0 %v12457_v22  ;;  %9225 = vmatmul.mubr.msk.f32.vlgmr.msra.gmra.mxu1 %vm24_vm0, %v10834_v58 }
 0x227   :  { %9238 = vmatprep.subr.mxu1 %v12457_v22  ;;  %9164 = vmatpush3.msra.mxu0 %v10655_v52 }
 0x228   :  { %9239 = vmatpush3.msra.mxu1 %v10363_v11  ;;  %9165 = vmatprep.subr.mxu0 %v12457_v22 }
 0x229   :  { %9240 = vmatprep.subr.mxu1 %v12457_v22  ;;  %9166 = vmatpush3.msra.mxu0 %v10664_v53 }
 0x22a   :  { %9241 = vmatpush3.msra.mxu1 %v10377_v13  ;;  %9167 = vmatprep.subr.mxu0 %v12457_v22 }
 0x22b   :  { %9242 = vmatprep.subr.mxu1 %v12457_v22  ;;  %9168 = vmatpush3.msra.mxu0 %v10674_v54 }
 0x22c   :  { %9169 = vmatprep.mubr.msk.f32.mxu0 %vm10256_vm1, %v12457_v22  ;;  %9243 = vmatpush3.msra.mxu1 %v10391_v15 }
 0x22d   :  { %9170 = vmatmul.mubr.msk.f32.vlgmr.msra.gmra.mxu0 %vm24_vm0, %v10834_v58  ;;  %9183 = vmatprep.subr.mxu0 %v12457_v22 }
 0x22e   :  { %9244 = vmatprep.subr.mxu1 %v12457_v22  ;;  %9184 = vmatpush3.msra.mxu0 %v10683_v55 }
 0x22f   :  { %9245 = vmatpush3.msra.mxu1 %v10407_v17  ;;  %9246 = vmatprep.mubr.msk.f32.mxu1 %vm10256_vm1, %v12457_v22 }
 0x230   :  { %9185 = vmatprep.subr.mxu0 %v12457_v22  ;;  %9247 = vmatmul.mubr.msk.f32.vlgmr.msra.gmra.mxu1 %vm24_vm0, %v10834_v58 }
 0x231   :  { %9186 = vmatpush3.msra.mxu0 %v10694_v18  ;;  %9191 = vmatprep.mubr.msk.f32.mxu0 %vm10256_vm1, %v12457_v22 }
 0x232   :  { %9187 = vmatprep.subr.mxu0 %v12457_v22  ;;  %9260 = vmatprep.subr.mxu1 %v12457_v22 }
 0x233   :  { %9188 = vmatpush3.msra.mxu0 %v10703_v56  ;;  %9268 = vmatprep.mubr.msk.f32.mxu1 %vm10256_vm1, %v12457_v22 }
 0x234   :  { %9189 = vmatprep.subr.mxu0 %v12457_v22  ;;  %9261 = vmatpush3.msra.mxu1 %v10942_v2 }
 0x235   :  { %9190 = vmatpush3.msra.mxu0 %v10712_v57  ;;  %9262 = vmatprep.subr.mxu1 %v12457_v22 }
 0x236   :  { %9192 = vmatmul.mubr.msk.f32.vlgmr.msra.gmra.mxu0 %vm24_vm0, %v10834_v58  ;;  %9205 = vmatprep.subr.mxu0 %v12457_v22 }
 0x237   :  { %9206 = vmatpush3.msra.mxu0 %v10292_v1  ;;  %9213 = vmatprep.mubr.msk.f32.mxu0 %vm10256_vm1, %v12457_v22  ;;  %v12458_v1 = vld [vmem:[#allocation6_spill] sm:$0xff] }
 0x238   :  { %9207 = vmatprep.subr.mxu0 %v12457_v22 }
 0x239   :  { %9208 = vmatpush3.msra.mxu0 %v10302_v3  ;;  %v12459_v3 = vld [vmem:[#allocation3_spill] sm:$0xff] }
 0x23a   :  { %9209 = vmatprep.subr.mxu0 %v12457_v22  ;;  %9263 = vmatpush3.msra.mxu1 %v12459_v3 }
 0x23b   :  { %9210 = vmatpush3.msra.mxu0 %v10324_v5  ;;  %9264 = vmatprep.subr.mxu1 %v12457_v22  ;;  %v12461_v5 = vld [vmem:[#allocation5_spill] sm:$0xff] }
 0x23c   :  { %9211 = vmatprep.subr.mxu0 %v12457_v22  ;;  %9265 = vmatpush3.msra.mxu1 %v12460_v4 }
 0x23d   :  { %9212 = vmatpush3.msra.mxu0 %v10338_v7  ;;  %9266 = vmatprep.subr.mxu1 %v12457_v22 }
 0x23e   :  { %9214 = vmatmul.mubr.msk.f32.vlgmr.msra.gmra.mxu0 %vm24_vm0, %v10834_v58  ;;  %9227 = vmatprep.subr.mxu0 %v12457_v22 }
 0x23f   :  { %9228 = vmatpush3.msra.mxu0 %v10358_v10  ;;  %9235 = vmatprep.mubr.msk.f32.mxu0 %vm10256_vm1, %v12457_v22 }
 0x240   :  { %9229 = vmatprep.subr.mxu0 %v12457_v22  ;;  %9267 = vmatpush3.msra.mxu1 %v12461_v5 }
 0x241   :  { %9230 = vmatpush3.msra.mxu0 %v10372_v12  ;;  %9282 = vmatprep.subr.mxu1 %v12457_v22 }
 0x242   :  { %9231 = vmatprep.subr.mxu0 %v12457_v22 }
 0x243   :  { %9232 = vmatpush3.msra.mxu0 %v10386_v14  ;;  %v12462_v14 = vld [vmem:[#allocation7_spill] sm:$0xff] }
 0x244   :  { %9233 = vmatprep.subr.mxu0 %v12457_v22 }
 0x245   :  { %9234 = vmatpush3.msra.mxu0 %v10400_v16 }
 0x246   :  { %9236 = vmatmul.mubr.msk.f32.vlgmr.msra.gmra.mxu0 %vm24_vm0, %v10834_v58  ;;  %9249 = vmatprep.subr.mxu0 %v12457_v22 }
 0x247   :  { %9250 = vmatpush3.msra.mxu0 %v10548_v35  ;;  %9257 = vmatprep.mubr.msk.f32.mxu0 %vm10256_vm1, %v12457_v22 }
 0x248   :  { %9251 = vmatprep.subr.mxu0 %v12457_v22 }
 0x249   :  { %9252 = vmatpush3.msra.mxu0 %v10557_v36 }
 0x24a   :  { %9253 = vmatprep.subr.mxu0 %v12457_v22 }
 0x24b   :  { %9254 = vmatpush3.msra.mxu0 %v10566_v37  ;;  %v12463_v37 = vld [vmem:[#allocation8_spill] sm:$0xff] }
 0x24c   :  { %9255 = vmatprep.subr.mxu0 %v12457_v22 }
 0x24d   :  { %9256 = vmatpush3.msra.mxu0 %v12458_v1 }
 0x24e   :  { %9271 = vmatprep.subr.mxu0 %v12457_v22 }
 0x2c4   :  { %v1521_v6 = vpop.f32.mrf.mxu1 }
 0x2c6   :  { %v9138_v7 = vpop.f32.mrf.mxu1 }
 0x2cc   :  { %v1683_v8 = vpop.f32.mrf.mxu1 }
 0x2ce   :  { %v9160_v10 = vpop.f32.mrf.mxu1 }
 0x2d4   :  { %v1845_v11 = vpop.f32.mrf.mxu1 }
 0x2d6   :  { %v9182_v12 = vpop.f32.mrf.mxu1 }
 0x2d7   :  { %v8065_v12 = vld [vmem:[%s12424_s0 + $0x40] sm:$0xff] }
 0x2da   :  { %v1444_v13 = vpop.f32.mrf.mxu0 }
 0x2db   :  { %v1445_v15 = vadd.f32 %v12462_v14, %v1444_v13 }
 0x2dc   :  { %v2002_v16 = vpop.f32.mrf.mxu1  ;;  %v9127_v17 = vpop.f32.mrf.mxu0 }
 0x2dd   :  { %v1525_v33 = vadd.f32 %v1521_v6, %v1445_v15 }
 0x2de   :  { %v9204_v34 = vpop.f32.mrf.mxu1 }
 0x2df   :  { %v8025_v35 = vmul.f32 -1.442695, %v1525_v33  ;;  %v8068_v34 = vld [vmem:[%s12424_s0 + $0x58] sm:$0xff] }
 0x2e1   :  { %10047 = vpow2.f32 %v8025_v35 }
 0x2e3   :  { %v1609_v36 = vpop.f32.mrf.mxu0 }
 0x2e4   :  { %v1610_v40 = vadd.f32 %v12463_v37, %v1609_v36 }
 0x2e5   :  { %v9149_v46 = vpop.f32.mrf.mxu0 }
 0x2e6   :  { %v1687_v0 = vadd.f32 %v1683_v8, %v1610_v40  ;;  %v2176_v62 = vpop.f32.mrf.mxu1 }
 0x2e7   :  { %v2180_v39 = vadd.f32 %v8066_v9, %v2176_v62 }
 0x2e8   :  { %v8038_v61 = vmul.f32 -1.442695, %v1687_v0  ;;  %v9226_v21 = vpop.f32.mrf.mxu1 }
 0x2e9   :  { %v8076_v6 = vmul.f32 -1.442695, %v2180_v39 }
 0x2ea   :  { %10049 = vpow2.f32 %v8038_v61 }
 0x2ed   :  { %v1771_v38 = vpop.f32.mrf.mxu0 }
 0x2ee   :  { %v10048_v20 = vpop.eup %10047  ;;  %v1772_v42 = vadd.f32 %v12464_v59, %v1771_v38 }
 0x2ef   :  { %v9171_v60 = vpop.f32.mrf.mxu0  ;;  %v1529_v43 = vadd.f32 1.0, %v10048_v20  ;;  %v8067_v20 = vld [vmem:[%s12424_s0 + $0x50] sm:$0xff] }
 0x2f0   :  { %v2333_v63 = vpop.f32.mrf.mxu1  ;;  %v1849_v58 = vadd.f32 %v1845_v11, %v1772_v42 }
 0x2f1   :  { %10051 = vrcp.f32 %v1529_v43  ;;  %v2337_v0 = vadd.f32 %v8068_v34, %v2333_v63 }
 0x2f2   :  { %v9248_v41 = vpop.f32.mrf.mxu1  ;;  %10053 = vtanh.f32 %v1849_v58 }
 0x2f3   :  { %v8087_v9 = vmul.f32 -1.442695, %v2337_v0 }
 0x2f6   :  { %v1928_v1 = vpop.f32.mrf.mxu0 }
 0x2f7   :  { %v10050_v3 = vpop.eup %10049  ;;  %v1929_v4 = vadd.f32 %v10782_v19, %v1928_v1 }
 0x2f8   :  { %v1691_v5 = vadd.f32 1.0, %v10050_v3  ;;  %v9193_v7 = vpop.f32.mrf.mxu0 }
 0x2f9   :  { %v2006_v8 = vadd.f32 %v2002_v16, %v1929_v4 }
 0x2fa   :  { %10055 = vrcp.f32 %v1691_v5 }
 0x2fb   :  { %v8063_v10 = vmul.f32 -1.442695, %v2006_v8  ;;  %10057 = vpow2.f32 %v8076_v6 }
 0x2fd   :  { %10059 = vpow2.f32 %v8063_v10 }
 0x2fe   :  { %v2095_v13 = vpop.f32.mrf.mxu0  ;;  %v10052_v33 = vpop.eup %10051 }
 0x2ff   :  { %v2099_v11 = vadd.f32 %v8065_v12, %v2095_v13  ;;  %v10054_v35 = vpop.eup %10053  ;;  %v11215_v12 = vld [vmem:[%s12422_s3] sm:$0xff]  ;;  %v11222_v13 = vld [vmem:[%s12423_s2 + $0x18] sm:$0xff] }
 0x300   :  { %v9215_v15 = vpop.f32.mrf.mxu0  ;;  %v2014_v46 = vmul.f32 %v10054_v35, %v10052_v33  ;;  %12467 = vst [vmem:[#allocation4_spill] sm:$0xff] %v11215_v12  ;;  %12468 = vst [vmem:[#allocation5_spill] sm:$0xff] %v11222_v13 }
 0x301   :  { %v8070_v17 = vmul.f32 -1.442695, %v2099_v11  ;;  %v11229_v11 = vld [vmem:[%s12423_s2 + $0x10] sm:$0xff]  ;;  %v11236_v15 = vld [vmem:[%s12423_s2 + $0x8] sm:$0xff] }
 0x302   :  { %12469 = vst [vmem:[#allocation7_spill] sm:$0xff] %v11229_v11  ;;  %12470 = vst [vmem:[#allocation8_spill] sm:$0xff] %v11236_v15 }
 0x303   :  { %10061 = vpow2.f32 %v8070_v17  ;;  %v11243_v17 = vld [vmem:[%s12423_s2] sm:$0xff] }
 0x304   :  { %12471 = vst [vmem:[#allocation9_spill] sm:$0xff] %v11243_v17 }
 0x306   :  { %v2257_v16 = vpop.f32.mrf.mxu0 }
 0x307   :  { %v10056_v36 = vpop.eup %10055  ;;  %v2261_v41 = vadd.f32 %v8067_v20, %v2257_v16 }
 0x308   :  { %v2013_v40 = vmul.f32 %v10056_v36, %v10794_v45  ;;  %v9237_v62 = vpop.f32.mrf.mxu0  ;;  %v10058_v61 = vpop.eup %10057 }
 0x309   :  { %v2184_v42 = vadd.f32 1.0, %v10058_v61 }
 0x30a   :  { %v10060_v21 = vpop.eup %10059  ;;  %v10966_v38 = vadd.f32 %v2014_v46, %v2013_v40 }
 0x30b   :  { %v2010_v60 = vadd.f32 1.0, %v10060_v21 }
 0x30c   :  { %10063 = vtanh.f32 %v10966_v38 }
 0x30d   :  { %10065 = vrcp.f32 %v2010_v60 }
 0x30e   :  { %10067 = vpow2.f32 %v8087_v9 }
 0x30f   :  { %10069 = vrcp.f32 %v2184_v42 }
 0x310   :  { %v10062_v43 = vpop.eup %10061  ;;  %10071 = vtanh.f32 %v2261_v41 }
 0x311   :  { %v2103_v45 = vadd.f32 1.0, %v10062_v43 }
 0x313   :  { %10073 = vrcp.f32 %v2103_v45 }
 0x319   :  { %v10064_v63 = vpop.eup %10063 }
 0x31a   :  { %v10066_v39 = vpop.eup %10065 }
 0x31b   :  { %v2017_v58 = vmul.f32 %v10066_v39, %v10064_v63  ;;  %v10068_v1 = vpop.eup %10067 }
 0x31c   :  { %v10070_v3 = vpop.eup %10069  ;;  %v2341_v6 = vadd.f32 1.0, %v10068_v1 }
 0x31d   :  { %8064 = vst.msk [vmem:[%s12426_s5 + $0x8] sm:$0xff] %vm24_vm0, %v2017_v58  ;;  %9269 = vmatmul.mubr.msk.f32.vlgmr.msra.gmra.mxu1 %vm24_vm0, %v2017_v58  ;;  %v10072_v4 = vpop.eup %10071  ;;  %v2344_v7 = vmul.f32 %v10070_v3, %v10808_v44  ;;  %v11208_v44 = vld [vmem:[%s12422_s3 + $0x8] sm:$0xff] }
 0x31e   :  { %9283 = vmatpush3.msra.mxu1 %v10456_v23  ;;  %9290 = vmatprep.mubr.msk.f32.mxu1 %vm10256_vm1, %v12457_v22  ;;  %10075 = vrcp.f32 %v2341_v6  ;;  %v11010_v23 = vld [vmem:[%s12422_s3 + $0x68] sm:$0xff]  ;;  %12466 = vst [vmem:[#allocation3_spill] sm:$0xff] %v11208_v44 }
 0x31f   :  { %9284 = vmatprep.subr.mxu1 %v12457_v22 }
 0x320   :  { %v10074_v5 = vpop.eup %10073  ;;  %9285 = vmatpush3.msra.mxu1 %v10463_v24 }
 0x321   :  { %v2345_v8 = vmul.f32 %v10074_v5, %v10072_v4  ;;  %9286 = vmatprep.subr.mxu1 %v12457_v22 }
 0x322   :  { %9287 = vmatpush3.msra.mxu1 %v10472_v25  ;;  %v11017_v25 = vld [vmem:[%s12422_s3 + $0x60] sm:$0xff] }
 0x323   :  { %v10985_v10 = vadd.f32 %v2345_v8, %v2344_v7  ;;  %9288 = vmatprep.subr.mxu1 %v12457_v22 }
 0x324   :  { %9289 = vmatpush3.msra.mxu1 %v10479_v26 }
 0x325   :  { %10077 = vtanh.f32 %v10985_v10  ;;  %9291 = vmatmul.mubr.msk.f32.vlgmr.msra.gmra.mxu1 %vm24_vm0, %v2017_v58  ;;  %9304 = vmatprep.subr.mxu1 %v12457_v22 }
 0x326   :  { %9305 = vmatpush3.msra.mxu1 %v10486_v27  ;;  %9312 = vmatprep.mubr.msk.f32.mxu1 %vm10256_vm1, %v12457_v22 }
 0x327   :  { %9306 = vmatprep.subr.mxu1 %v12457_v22 }
 0x328   :  { %9307 = vmatpush3.msra.mxu1 %v10494_v28  ;;  %v11027_v28 = vld [vmem:[%s12421_s1 + $0x38] sm:$0xff] }
 0x329   :  { %9308 = vmatprep.subr.mxu1 %v12457_v22 }
 0x32a   :  { %9309 = vmatpush3.msra.mxu1 %v10503_v29  ;;  %v11037_v29 = vld [vmem:[%s12421_s1 + $0x30] sm:$0xff] }
 0x32b   :  { %9310 = vmatprep.subr.mxu1 %v12457_v22  ;;  %v10076_v24 = vpop.eup %10075 }
 0x32c   :  { %9311 = vmatpush3.msra.mxu1 %v10510_v30  ;;  %v11048_v30 = vld [vmem:[%s12421_s1 + $0x28] sm:$0xff] }
 0x32d   :  { %9313 = vmatmul.mubr.msk.f32.vlgmr.msra.gmra.mxu1 %vm24_vm0, %v2017_v58  ;;  %9326 = vmatprep.subr.mxu1 %v12457_v22 }
 0x32e   :  { %9327 = vmatpush3.msra.mxu1 %v10517_v31  ;;  %9334 = vmatprep.mubr.msk.f32.mxu1 %vm10256_vm1, %v12457_v22  ;;  %v11060_v31 = vld [vmem:[%s12421_s1 + $0x20] sm:$0xff] }
 0x32f   :  { %9328 = vmatprep.subr.mxu1 %v12457_v22 }
 0x330   :  { %9329 = vmatpush3.msra.mxu1 %v10525_v32  ;;  %v11073_v32 = vld [vmem:[%s12421_s1 + $0x78] sm:$0xff] }
 0x331   :  { %9330 = vmatprep.subr.mxu1 %v12457_v22 }
 0x332   :  { %v10078_v26 = vpop.eup %10077  ;;  %9331 = vmatpush3.msra.mxu1 %v11010_v23 }
 0x333   :  { %9332 = vmatprep.subr.mxu1 %v12457_v22  ;;  %v11021_v27 = vmul.f32 %v10078_v26, %v10076_v24 }
 0x334   :  { %9333 = vmatpush3.msra.mxu1 %v11017_v25 }
 0x335   :  { %9258 = vmatmul.mubr.msk.f32.vlgmr.msra.gmra.mxu0 %vm24_vm0, %v11021_v27  ;;  %9335 = vmatmul.mubr.msk.f32.vlgmr.msra.gmra.mxu1 %vm24_vm0, %v2017_v58 }
 0x336   :  { %9272 = vmatpush3.msra.mxu0 %v10605_v47  ;;  %9348 = vmatprep.subr.mxu1 %v12457_v22  ;;  %v11083_v47 = vld [vmem:[%s12421_s1 + $0x70] sm:$0xff] }
 0x337   :  { %9273 = vmatprep.subr.mxu0 %v12457_v22  ;;  %9349 = vmatpush3.msra.mxu1 %v11027_v28 }
 0x338   :  { %9274 = vmatpush3.msra.mxu0 %v10614_v48  ;;  %9350 = vmatprep.subr.mxu1 %v12457_v22  ;;  %v11092_v48 = vld [vmem:[%s12421_s1 + $0x68] sm:$0xff] }
 0x339   :  { %9275 = vmatprep.subr.mxu0 %v12457_v22  ;;  %9351 = vmatpush3.msra.mxu1 %v11037_v29 }
 0x33a   :  { %9276 = vmatpush3.msra.mxu0 %v10623_v49  ;;  %9352 = vmatprep.subr.mxu1 %v12457_v22  ;;  %v11104_v49 = vld [vmem:[%s12421_s1 + $0x60] sm:$0xff] }
 0x33b   :  { %9277 = vmatprep.subr.mxu0 %v12457_v22  ;;  %9279 = vmatprep.mubr.msk.f32.mxu0 %vm10256_vm1, %v12457_v22 }
 0x33c   :  { %9278 = vmatpush3.msra.mxu0 %v10632_v50  ;;  %9353 = vmatpush3.msra.mxu1 %v11048_v30  ;;  %v11128_v50 = vld [vmem:[%s12421_s1 + $0x18] sm:$0xff] }
 0x33d   :  { %9280 = vmatmul.mubr.msk.f32.vlgmr.msra.gmra.mxu0 %vm24_vm0, %v11021_v27  ;;  %9293 = vmatprep.subr.mxu0 %v12457_v22 }
 0x33e   :  { %9354 = vmatprep.subr.mxu1 %v12457_v22  ;;  %9294 = vmatpush3.msra.mxu0 %v10644_v51  ;;  %v11140_v51 = vld [vmem:[%s12421_s1 + $0x10] sm:$0xff] }
 0x33f   :  { %9355 = vmatpush3.msra.mxu1 %v11060_v31  ;;  %9356 = vmatprep.mubr.msk.f32.mxu1 %vm10256_vm1, %v12457_v22 }
 0x340   :  { %9295 = vmatprep.subr.mxu0 %v12457_v22  ;;  %9357 = vmatmul.mubr.msk.f32.vlgmr.msra.gmra.mxu1 %vm24_vm0, %v11021_v27 }
 0x341   :  { %9370 = vmatprep.subr.mxu1 %v12457_v22  ;;  %9296 = vmatpush3.msra.mxu0 %v10655_v52  ;;  %v11149_v52 = vld [vmem:[%s12421_s1 + $0x8] sm:$0xff] }
 0x342   :  { %9371 = vmatpush3.msra.mxu1 %v11073_v32  ;;  %9297 = vmatprep.subr.mxu0 %v12457_v22 }
 0x343   :  { %9372 = vmatprep.subr.mxu1 %v12457_v22  ;;  %9298 = vmatpush3.msra.mxu0 %v10664_v53  ;;  %v11156_v53 = vld [vmem:[%s12421_s1] sm:$0xff] }
 0x344   :  { %9373 = vmatpush3.msra.mxu1 %v11083_v47  ;;  %9299 = vmatprep.subr.mxu0 %v12457_v22 }
 0x345   :  { %9374 = vmatprep.subr.mxu1 %v12457_v22  ;;  %9300 = vmatpush3.msra.mxu0 %v10674_v54  ;;  %v11163_v54 = vld [vmem:[%s12421_s1 + $0x58] sm:$0xff] }
 0x346   :  { %9301 = vmatprep.mubr.msk.f32.mxu0 %vm10256_vm1, %v12457_v22  ;;  %9375 = vmatpush3.msra.mxu1 %v11092_v48 }
 0x347   :  { %9302 = vmatmul.mubr.msk.f32.vlgmr.msra.gmra.mxu0 %vm24_vm0, %v11021_v27  ;;  %9315 = vmatprep.subr.mxu0 %v12457_v22 }
 0x348   :  { %9376 = vmatprep.subr.mxu1 %v12457_v22  ;;  %9316 = vmatpush3.msra.mxu0 %v10683_v55  ;;  %v11172_v55 = vld [vmem:[%s12421_s1 + $0x50] sm:$0xff] }
 0x349   :  { %9377 = vmatpush3.msra.mxu1 %v11104_v49  ;;  %9378 = vmatprep.mubr.msk.f32.mxu1 %vm10256_vm1, %v12457_v22 }
 0x34a   :  { %9317 = vmatprep.subr.mxu0 %v12457_v22  ;;  %9379 = vmatmul.mubr.msk.f32.vlgmr.msra.gmra.mxu1 %vm24_vm0, %v11021_v27 }
 0x34b   :  { %9318 = vmatpush3.msra.mxu0 %v10694_v18  ;;  %9323 = vmatprep.mubr.msk.f32.mxu0 %vm10256_vm1, %v12457_v22  ;;  %v11181_v18 = vld [vmem:[%s12421_s1 + $0x48] sm:$0xff] }
 0x34c   :  { %9319 = vmatprep.subr.mxu0 %v12457_v22  ;;  %9392 = vmatprep.subr.mxu1 %v12457_v22 }
 0x34d   :  { %9320 = vmatpush3.msra.mxu0 %v10703_v56  ;;  %9393 = vmatpush3.msra.mxu1 %v10942_v2  ;;  %v11188_v56 = vld [vmem:[%s12421_s1 + $0x40] sm:$0xff] }
 0x34e   :  { %9321 = vmatprep.subr.mxu0 %v12457_v22  ;;  %9394 = vmatprep.subr.mxu1 %v12457_v22 }
 0x34f   :  { %9322 = vmatpush3.msra.mxu0 %v10712_v57  ;;  %9400 = vmatprep.mubr.msk.f32.mxu1 %vm10256_vm1, %v12457_v22  ;;  %v11201_v57 = vld [vmem:[%s12422_s3 + $0x10] sm:$0xff] }
 0x350   :  { %9324 = vmatmul.mubr.msk.f32.vlgmr.msra.gmra.mxu0 %vm24_vm0, %v11021_v27  ;;  %9337 = vmatprep.subr.mxu0 %v12457_v22  ;;  %12465 = vst [vmem:[#allocation6_spill] sm:$0xff] %v11201_v57 }
 0x351   :  { %9338 = vmatpush3.msra.mxu0 %v11128_v50  ;;  %9345 = vmatprep.mubr.msk.f32.mxu0 %vm10256_vm1, %v12457_v22 }
 0x352   :  { %9339 = vmatprep.subr.mxu0 %v12457_v22  ;;  %9395 = vmatpush3.msra.mxu1 %v11201_v57 }
 0x353   :  { %9340 = vmatpush3.msra.mxu0 %v11140_v51  ;;  %9396 = vmatprep.subr.mxu1 %v12457_v22 }
 0x354   :  { %9341 = vmatprep.subr.mxu0 %v12457_v22  ;;  %9397 = vmatpush3.msra.mxu1 %v11208_v44 }
 0x355   :  { %9342 = vmatpush3.msra.mxu0 %v11149_v52  ;;  %9398 = vmatprep.subr.mxu1 %v12457_v22 }
 0x356   :  { %9343 = vmatprep.subr.mxu0 %v12457_v22  ;;  %9399 = vmatpush3.msra.mxu1 %v11215_v12 }
 0x357   :  { %9344 = vmatpush3.msra.mxu0 %v11156_v53  ;;  %9414 = vmatprep.subr.mxu1 %v12457_v22 }
 0x358   :  { %9346 = vmatmul.mubr.msk.f32.vlgmr.msra.gmra.mxu0 %vm24_vm0, %v11021_v27  ;;  %9359 = vmatprep.subr.mxu0 %v12457_v22 }
 0x359   :  { %9360 = vmatpush3.msra.mxu0 %v11163_v54  ;;  %9367 = vmatprep.mubr.msk.f32.mxu0 %vm10256_vm1, %v12457_v22 }
 0x35a   :  { %9361 = vmatprep.subr.mxu0 %v12457_v22 }
 0x35b   :  { %9362 = vmatpush3.msra.mxu0 %v11172_v55 }
 0x35c   :  { %9363 = vmatprep.subr.mxu0 %v12457_v22 }
 0x35d   :  { %9364 = vmatpush3.msra.mxu0 %v11181_v18 }
 0x35e   :  { %9365 = vmatprep.subr.mxu0 %v12457_v22 }
 0x35f   :  { %9366 = vmatpush3.msra.mxu0 %v11188_v56 }
 0x360   :  { %9368 = vmatmul.mubr.msk.f32.vlgmr.msra.gmra.mxu0 %vm24_vm0, %v11021_v27  ;;  %9381 = vmatprep.subr.mxu0 %v12457_v22 }
 0x361   :  { %9389 = vmatprep.mubr.msk.f32.mxu0 %vm10256_vm1, %v12457_v22  ;;  %9382 = vmatpush3.msra.mxu0 %v11222_v13 }
 0x362   :  { %9383 = vmatprep.subr.mxu0 %v12457_v22 }
 0x363   :  { %9384 = vmatpush3.msra.mxu0 %v11229_v11 }
 0x364   :  { %9385 = vmatprep.subr.mxu0 %v12457_v22 }
 0x365   :  { %9386 = vmatpush3.msra.mxu0 %v11236_v15 }
 0x366   :  { %9387 = vmatprep.subr.mxu0 %v12457_v22 }
 0x367   :  { %9388 = vmatpush3.msra.mxu0 %v11243_v17 }
 0x368   :  { %9403 = vmatprep.subr.mxu0 %v12457_v22 }
 0x3dd   :  { %v2506_v33 = vpop.f32.mrf.mxu1 }
 0x3df   :  { %v9270_v34 = vpop.f32.mrf.mxu1 }
 0x3e5   :  { %v2668_v35 = vpop.f32.mrf.mxu1 }
 0x3e7   :  { %v9292_v16 = vpop.f32.mrf.mxu1 }
 0x3ed   :  { %v2830_v36 = vpop.f32.mrf.mxu1 }
 0x3ef   :  { %v9314_v40 = vpop.f32.mrf.mxu1 }
 0x3f5   :  { %v2429_v46 = vpop.f32.mrf.mxu0  ;;  %v2987_v0 = vpop.f32.mrf.mxu1 }
 0x3f6   :  { %v2430_v62 = vadd.f32 %v12462_v14, %v2429_v46  ;;  %v8132_v14 = vld [vmem:[%s12424_s0 + $0x68] sm:$0xff] }
 0x3f7   :  { %v9259_v61 = vpop.f32.mrf.mxu0  ;;  %v9336_v21 = vpop.f32.mrf.mxu1 }
 0x3f8   :  { %v2510_v60 = vadd.f32 %v2506_v33, %v2430_v62  ;;  %v8134_v21 = vld [vmem:[%s12424_s0 + $0x78] sm:$0xff] }
 0x3fa   :  { %v8091_v20 = vmul.f32 -1.442695, %v2510_v60 }
 0x3fc   :  { %10079 = vpow2.f32 %v8091_v20 }
 0x3fd   :  { %v2594_v9 = vpop.f32.mrf.mxu0 }
 0x3fe   :  { %v2595_v42 = vadd.f32 %v12463_v37, %v2594_v9 }
 0x3ff   :  { %v9281_v41 = vpop.f32.mrf.mxu0 }
 0x400   :  { %v2672_v43 = vadd.f32 %v2668_v35, %v2595_v42  ;;  %v3161_v45 = vpop.f32.mrf.mxu1 }
 0x401   :  { %v3165_v8 = vadd.f32 %v8132_v14, %v3161_v45 }
 0x402   :  { %v8104_v63 = vmul.f32 -1.442695, %v2672_v43  ;;  %v9358_v39 = vpop.f32.mrf.mxu1 }
 0x403   :  { %v8142_v34 = vmul.f32 -1.442695, %v3165_v8 }
 0x404   :  { %10081 = vpow2.f32 %v8104_v63 }
 0x407   :  { %v2756_v58 = vpop.f32.mrf.mxu0 }
 0x408   :  { %v2757_v5 = vadd.f32 %v12464_v59, %v2756_v58  ;;  %v8131_v59 = vld [vmem:[%s12424_s0 + $0x60] sm:$0xff] }
 0x409   :  { %v9303_v1 = vpop.f32.mrf.mxu0  ;;  %v10080_v4 = vpop.eup %10079 }
 0x40a   :  { %v3318_v3 = vpop.f32.mrf.mxu1  ;;  %v2514_v7 = vadd.f32 1.0, %v10080_v4  ;;  %v2834_v37 = vadd.f32 %v2830_v36, %v2757_v5  ;;  %v8133_v1 = vld [vmem:[%s12424_s0 + $0x70] sm:$0xff] }
 0x40b   :  { %v3322_v41 = vadd.f32 %v8134_v21, %v3318_v3  ;;  %v11338_v21 = vld [vmem:[%s12422_s3 + $0x78] sm:$0xff] }
 0x40c   :  { %v9380_v6 = vpop.f32.mrf.mxu1  ;;  %10083 = vrcp.f32 %v2514_v7 }
 0x40d   :  { %10085 = vtanh.f32 %v2834_v37  ;;  %v8153_v4 = vmul.f32 -1.442695, %v3322_v41  ;;  %v11270_v37 = vld [vmem:[%s12422_s3 + $0x38] sm:$0xff]  ;;  %v11370_v41 = vld [vmem:[%s12423_s2 + $0x30] sm:$0xff] }
 0x410   :  { %v2913_v24 = vpop.f32.mrf.mxu0 }
 0x411   :  { %v10082_v26 = vpop.eup %10081  ;;  %v2914_v27 = vadd.f32 %v10782_v19, %v2913_v24 }
 0x412   :  { %v2676_v33 = vadd.f32 1.0, %v10082_v26  ;;  %v9325_v35 = vpop.f32.mrf.mxu0  ;;  %v11280_v26 = vld [vmem:[%s12422_s3 + $0x30] sm:$0xff] }
 0x413   :  { %v2991_v16 = vadd.f32 %v2987_v0, %v2914_v27 }
 0x414   :  { %10087 = vrcp.f32 %v2676_v33 }
 0x415   :  { %v8129_v40 = vmul.f32 -1.442695, %v2991_v16  ;;  %10089 = vpow2.f32 %v8142_v34  ;;  %v11289_v34 = vld [vmem:[%s12422_s3 + $0x28] sm:$0xff] }
 0x417   :  { %10091 = vpow2.f32 %v8129_v40 }
 0x418   :  { %v3080_v46 = vpop.f32.mrf.mxu0 }
 0x419   :  { %v3084_v36 = vadd.f32 %v8131_v59, %v3080_v46  ;;  %v10084_v19 = vpop.eup %10083  ;;  %v11297_v46 = vld [vmem:[%s12422_s3 + $0x20] sm:$0xff] }
 0x41a   :  { %v9347_v62 = vpop.f32.mrf.mxu0  ;;  %v10086_v60 = vpop.eup %10085 }
 0x41b   :  { %v8136_v61 = vmul.f32 -1.442695, %v3084_v36  ;;  %v2999_v42 = vmul.f32 %v10086_v60, %v10084_v19  ;;  %v11306_v62 = vld [vmem:[%s12422_s3 + $0x58] sm:$0xff]  ;;  %v11331_v19 = vld [vmem:[%s12422_s3 + $0x40] sm:$0xff]  ;;  %v11346_v60 = vld [vmem:[%s12422_s3 + $0x70] sm:$0xff] }
 0x41d   :  { %10093 = vpow2.f32 %v8136_v61  ;;  %v11324_v61 = vld [vmem:[%s12422_s3 + $0x48] sm:$0xff] }
 0x420   :  { %v3242_v0 = vpop.f32.mrf.mxu0 }
 0x421   :  { %v10088_v20 = vpop.eup %10087  ;;  %v3246_v5 = vadd.f32 %v8133_v1, %v3242_v0  ;;  %v11421_v1 = vld [vmem:[%s12423_s2 + $0x48] sm:$0xff] }
 0x422   :  { %v2998_v9 = vmul.f32 %v10088_v20, %v10966_v38  ;;  %v9369_v43 = vpop.f32.mrf.mxu0  ;;  %v10090_v45 = vpop.eup %10089 }
 0x423   :  { %v3169_v14 = vadd.f32 1.0, %v10090_v45  ;;  %v11379_v43 = vld [vmem:[%s12423_s2 + $0x28] sm:$0xff]  ;;  %v11388_v45 = vld [vmem:[%s12423_s2 + $0x20] sm:$0xff] }
 0x424   :  { %v10092_v63 = vpop.eup %10091  ;;  %v11261_v39 = vadd.f32 %v2999_v42, %v2998_v9  ;;  %v11361_v42 = vld [vmem:[%s12423_s2 + $0x38] sm:$0xff] }
 0x425   :  { %v2995_v58 = vadd.f32 1.0, %v10092_v63  ;;  %v11398_v63 = vld [vmem:[%s12423_s2 + $0x58] sm:$0xff] }
 0x426   :  { %10095 = vtanh.f32 %v11261_v39 }
 0x427   :  { %10097 = vrcp.f32 %v2995_v58  ;;  %v11410_v58 = vld [vmem:[%s12423_s2 + $0x50] sm:$0xff] }
 0x428   :  { %10099 = vpow2.f32 %v8153_v4  ;;  %v11430_v4 = vld [vmem:[%s12423_s2 + $0x40] sm:$0xff] }
 0x429   :  { %10101 = vrcp.f32 %v3169_v14  ;;  %v11441_v14 = vld [vmem:[%s12423_s2 + $0x78] sm:$0xff] }
 0x42a   :  { %v10094_v6 = vpop.eup %10093  ;;  %10103 = vtanh.f32 %v3246_v5  ;;  %v11454_v5 = vld [vmem:[%s12423_s2 + $0x70] sm:$0xff] }
 0x42b   :  { %v3088_v38 = vadd.f32 1.0, %v10094_v6  ;;  %v11465_v6 = vld [vmem:[%s12423_s2 + $0x68] sm:$0xff] }
 0x42d   :  { %10105 = vrcp.f32 %v3088_v38  ;;  %v11474_v38 = vld [vmem:[%s12423_s2 + $0x60] sm:$0xff] }
 0x433   :  { %v10096_v3 = vpop.eup %10095 }
 0x434   :  { %v10098_v7 = vpop.eup %10097 }
 0x435   :  { %v3002_v8 = vmul.f32 %v10098_v7, %v10096_v3  ;;  %v10100_v24 = vpop.eup %10099 }
 0x436   :  { %v10102_v27 = vpop.eup %10101  ;;  %v3326_v16 = vadd.f32 1.0, %v10100_v24 }
 0x437   :  { %8130 = vst.msk [vmem:[%s12426_s5 + $0x10] sm:$0xff] %vm24_vm0, %v3002_v8  ;;  %9401 = vmatmul.mubr.msk.f32.vlgmr.msra.gmra.mxu1 %vm24_vm0, %v3002_v8  ;;  %v10104_v33 = vpop.eup %10103  ;;  %v3329_v40 = vmul.f32 %v10102_v27, %v10985_v10  ;;  %v11315_v10 = vld [vmem:[%s12422_s3 + $0x50] sm:$0xff] }
 0x438   :  { %9415 = vmatpush3.msra.mxu1 %v11270_v37  ;;  %9422 = vmatprep.mubr.msk.f32.mxu1 %vm10256_vm1, %v12457_v22  ;;  %10107 = vrcp.f32 %v3326_v16 }
 0x439   :  { %9416 = vmatprep.subr.mxu1 %v12457_v22 }
 0x43a   :  { %v10106_v35 = vpop.eup %10105  ;;  %9417 = vmatpush3.msra.mxu1 %v11280_v26 }
 0x43b   :  { %v3330_v59 = vmul.f32 %v10106_v35, %v10104_v33  ;;  %9418 = vmatprep.subr.mxu1 %v12457_v22  ;;  %v11530_v33 = vld [vmem:[%s12425_s4] ss:$0 sm:$0xff] }
 0x43c   :  { %9419 = vmatpush3.msra.mxu1 %v11289_v34  ;;  %12472 = vst [vmem:[#allocation10_spill] sm:$0xff] %v11530_v33 }
 0x43d   :  { %v11300_v36 = vadd.f32 %v3330_v59, %v3329_v40  ;;  %9420 = vmatprep.subr.mxu1 %v12457_v22 }
 0x43e   :  { %9421 = vmatpush3.msra.mxu1 %v11297_v46 }
 0x43f   :  { %10109 = vtanh.f32 %v11300_v36  ;;  %9423 = vmatmul.mubr.msk.f32.vlgmr.msra.gmra.mxu1 %vm24_vm0, %v3002_v8  ;;  %9436 = vmatprep.subr.mxu1 %v12457_v22 }
 0x440   :  { %9437 = vmatpush3.msra.mxu1 %v11306_v62  ;;  %9444 = vmatprep.mubr.msk.f32.mxu1 %vm10256_vm1, %v12457_v22 }
 0x441   :  { %9438 = vmatprep.subr.mxu1 %v12457_v22 }
 0x442   :  { %9439 = vmatpush3.msra.mxu1 %v11315_v10 }
 0x443   :  { %9440 = vmatprep.subr.mxu1 %v12457_v22 }
 0x444   :  { %9441 = vmatpush3.msra.mxu1 %v11324_v61 }
 0x445   :  { %9442 = vmatprep.subr.mxu1 %v12457_v22  ;;  %v10108_v0 = vpop.eup %10107 }
 0x446   :  { %9443 = vmatpush3.msra.mxu1 %v11331_v19 }
 0x447   :  { %9445 = vmatmul.mubr.msk.f32.vlgmr.msra.gmra.mxu1 %vm24_vm0, %v3002_v8  ;;  %9458 = vmatprep.subr.mxu1 %v12457_v22 }
 0x448   :  { %9459 = vmatpush3.msra.mxu1 %v11338_v21  ;;  %9466 = vmatprep.mubr.msk.f32.mxu1 %vm10256_vm1, %v12457_v22 }
 0x449   :  { %9460 = vmatprep.subr.mxu1 %v12457_v22 }
 0x44a   :  { %9461 = vmatpush3.msra.mxu1 %v11346_v60 }
 0x44b   :  { %9462 = vmatprep.subr.mxu1 %v12457_v22 }
 0x44c   :  { %v10110_v20 = vpop.eup %10109  ;;  %9463 = vmatpush3.msra.mxu1 %v11010_v23 }
 0x44d   :  { %9464 = vmatprep.subr.mxu1 %v12457_v22  ;;  %v11356_v9 = vmul.f32 %v10110_v20, %v10108_v0 }
 0x44e   :  { %9465 = vmatpush3.msra.mxu1 %v11017_v25 }
 0x44f   :  { %9390 = vmatmul.mubr.msk.f32.vlgmr.msra.gmra.mxu0 %vm24_vm0, %v11356_v9  ;;  %9467 = vmatmul.mubr.msk.f32.vlgmr.msra.gmra.mxu1 %vm24_vm0, %v3002_v8 }
 0x450   :  { %9404 = vmatpush3.msra.mxu0 %v11361_v42  ;;  %9480 = vmatprep.subr.mxu1 %v12457_v22 }
 0x451   :  { %9405 = vmatprep.subr.mxu0 %v12457_v22  ;;  %9481 = vmatpush3.msra.mxu1 %v11027_v28 }
 0x452   :  { %9406 = vmatpush3.msra.mxu0 %v11370_v41  ;;  %9482 = vmatprep.subr.mxu1 %v12457_v22 }
 0x453   :  { %9407 = vmatprep.subr.mxu0 %v12457_v22  ;;  %9483 = vmatpush3.msra.mxu1 %v11037_v29 }
 0x454   :  { %9408 = vmatpush3.msra.mxu0 %v11379_v43  ;;  %9484 = vmatprep.subr.mxu1 %v12457_v22 }
 0x455   :  { %9409 = vmatprep.subr.mxu0 %v12457_v22  ;;  %9411 = vmatprep.mubr.msk.f32.mxu0 %vm10256_vm1, %v12457_v22 }
 0x456   :  { %9410 = vmatpush3.msra.mxu0 %v11388_v45  ;;  %9485 = vmatpush3.msra.mxu1 %v11048_v30 }
 0x457   :  { %9412 = vmatmul.mubr.msk.f32.vlgmr.msra.gmra.mxu0 %vm24_vm0, %v11356_v9  ;;  %9425 = vmatprep.subr.mxu0 %v12457_v22 }
 0x458   :  { %9486 = vmatprep.subr.mxu1 %v12457_v22  ;;  %9426 = vmatpush3.msra.mxu0 %v11398_v63 }
 0x459   :  { %9487 = vmatpush3.msra.mxu1 %v11060_v31  ;;  %9488 = vmatprep.mubr.msk.f32.mxu1 %vm10256_vm1, %v12457_v22 }
 0x45a   :  { %9427 = vmatprep.subr.mxu0 %v12457_v22  ;;  %9489 = vmatmul.mubr.msk.f32.vlgmr.msra.gmra.mxu1 %vm24_vm0, %v11356_v9 }
 0x45b   :  { %9502 = vmatprep.subr.mxu1 %v12457_v22  ;;  %9428 = vmatpush3.msra.mxu0 %v11410_v58 }
 0x45c   :  { %9503 = vmatpush3.msra.mxu1 %v11073_v32  ;;  %9429 = vmatprep.subr.mxu0 %v12457_v22 }
 0x45d   :  { %9504 = vmatprep.subr.mxu1 %v12457_v22  ;;  %9430 = vmatpush3.msra.mxu0 %v11421_v1 }
 0x45e   :  { %9505 = vmatpush3.msra.mxu1 %v11083_v47  ;;  %9431 = vmatprep.subr.mxu0 %v12457_v22 }
 0x45f   :  { %9506 = vmatprep.subr.mxu1 %v12457_v22  ;;  %9432 = vmatpush3.msra.mxu0 %v11430_v4 }
 0x460   :  { %9433 = vmatprep.mubr.msk.f32.mxu0 %vm10256_vm1, %v12457_v22  ;;  %9507 = vmatpush3.msra.mxu1 %v11092_v48 }
 0x461   :  { %9434 = vmatmul.mubr.msk.f32.vlgmr.msra.gmra.mxu0 %vm24_vm0, %v11356_v9  ;;  %9447 = vmatprep.subr.mxu0 %v12457_v22 }
 0x462   :  { %9508 = vmatprep.subr.mxu1 %v12457_v22  ;;  %9448 = vmatpush3.msra.mxu0 %v11441_v14 }
 0x463   :  { %9509 = vmatpush3.msra.mxu1 %v11104_v49  ;;  %9510 = vmatprep.mubr.msk.f32.mxu1 %vm10256_vm1, %v12457_v22 }
 0x464   :  { %9449 = vmatprep.subr.mxu0 %v12457_v22  ;;  %9511 = vmatmul.mubr.msk.f32.vlgmr.msra.gmra.mxu1 %vm24_vm0, %v11356_v9 }
 0x465   :  { %9450 = vmatpush3.msra.mxu0 %v11454_v5  ;;  %9455 = vmatprep.mubr.msk.f32.mxu0 %vm10256_vm1, %v12457_v22 }
 0x466   :  { %9451 = vmatprep.subr.mxu0 %v12457_v22  ;;  %9524 = vmatprep.subr.mxu1 %v12457_v22 }
 0x467   :  { %9452 = vmatpush3.msra.mxu0 %v11465_v6  ;;  %9525 = vmatpush3.msra.mxu1 %v10942_v2 }
 0x468   :  { %9453 = vmatprep.subr.mxu0 %v12457_v22  ;;  %9526 = vmatprep.subr.mxu1 %v12457_v22 }
 0x469   :  { %9454 = vmatpush3.msra.mxu0 %v11474_v38  ;;  %9527 = vmatpush3.msra.mxu1 %v11201_v57 }
 0x46a   :  { %9456 = vmatmul.mubr.msk.f32.vlgmr.msra.gmra.mxu0 %vm24_vm0, %v11356_v9  ;;  %9469 = vmatprep.subr.mxu0 %v12457_v22 }
 0x46b   :  { %9470 = vmatpush3.msra.mxu0 %v11128_v50  ;;  %9477 = vmatprep.mubr.msk.f32.mxu0 %vm10256_vm1, %v12457_v22 }
 0x46c   :  { %9471 = vmatprep.subr.mxu0 %v12457_v22  ;;  %9528 = vmatprep.subr.mxu1 %v12457_v22 }
 0x46d   :  { %9472 = vmatpush3.msra.mxu0 %v11140_v51  ;;  %9529 = vmatpush3.msra.mxu1 %v11208_v44 }
 0x46e   :  { %9473 = vmatprep.subr.mxu0 %v12457_v22  ;;  %9530 = vmatprep.subr.mxu1 %v12457_v22 }
 0x46f   :  { %9474 = vmatpush3.msra.mxu0 %v11149_v52  ;;  %9531 = vmatpush3.msra.mxu1 %v11215_v12 }
 0x470   :  { %9475 = vmatprep.subr.mxu0 %v12457_v22  ;;  %9532 = vmatprep.mubr.msk.f32.mxu1 %vm10256_vm1, %v12457_v22 }
 0x471   :  { %9476 = vmatpush3.msra.mxu0 %v11156_v53  ;;  %9546 = vmatprep.subr.mxu1 %v12457_v22 }
 0x472   :  { %9478 = vmatmul.mubr.msk.f32.vlgmr.msra.gmra.mxu0 %vm24_vm0, %v11356_v9  ;;  %9491 = vmatprep.subr.mxu0 %v12457_v22 }
 0x473   :  { %9492 = vmatpush3.msra.mxu0 %v11163_v54  ;;  %9499 = vmatprep.mubr.msk.f32.mxu0 %vm10256_vm1, %v12457_v22 }
 0x474   :  { %9493 = vmatprep.subr.mxu0 %v12457_v22 }
 0x475   :  { %9494 = vmatpush3.msra.mxu0 %v11172_v55 }
 0x476   :  { %9495 = vmatprep.subr.mxu0 %v12457_v22 }
 0x477   :  { %9496 = vmatpush3.msra.mxu0 %v11181_v18 }
 0x478   :  { %9497 = vmatprep.subr.mxu0 %v12457_v22 }
 0x479   :  { %9498 = vmatpush3.msra.mxu0 %v11188_v56 }
 0x47a   :  { %9500 = vmatmul.mubr.msk.f32.vlgmr.msra.gmra.mxu0 %vm24_vm0, %v11356_v9  ;;  %9513 = vmatprep.subr.mxu0 %v12457_v22 }
 0x47b   :  { %9514 = vmatpush3.msra.mxu0 %v11222_v13  ;;  %9521 = vmatprep.mubr.msk.f32.mxu0 %vm10256_vm1, %v12457_v22 }
 0x47c   :  { %9515 = vmatprep.subr.mxu0 %v12457_v22 }
 0x47d   :  { %9516 = vmatpush3.msra.mxu0 %v11229_v11 }
 0x47e   :  { %9517 = vmatprep.subr.mxu0 %v12457_v22 }
 0x47f   :  { %9518 = vmatpush3.msra.mxu0 %v11236_v15 }
 0x480   :  { %9519 = vmatprep.subr.mxu0 %v12457_v22 }
 0x481   :  { %9520 = vmatpush3.msra.mxu0 %v11243_v17 }
 0x482   :  { %9535 = vmatprep.subr.mxu0 %v12457_v22 }
 0x4f7   :  { %v3491_v2 = vpop.f32.mrf.mxu1 }
 0x4f9   :  { %v9402_v3 = vpop.f32.mrf.mxu1 }
 0x4fa   :  { %v11536_v3 = vld [vmem:[%s12425_s4 + $0x1] ss:$0 sm:$0xff] }
 0x4fb   :  { %12473 = vst [vmem:[#allocation11_spill] sm:$0xff] %v11536_v3 }
 0x4ff   :  { %v3653_v7 = vpop.f32.mrf.mxu1 }
 0x501   :  { %v9424_v8 = vpop.f32.mrf.mxu1 }
 0x507   :  { %v3815_v24 = vpop.f32.mrf.mxu1 }
 0x509   :  { %v9446_v27 = vpop.f32.mrf.mxu1 }
 0x50f   :  { %v3414_v35 = vpop.f32.mrf.mxu0  ;;  %v3972_v16 = vpop.f32.mrf.mxu1 }
 0x510   :  { %v3415_v40 = vadd.f32 %v11530_v33, %v3414_v35 }
 0x511   :  { %v9391_v59 = vpop.f32.mrf.mxu0  ;;  %v9468_v0 = vpop.f32.mrf.mxu1 }
 0x512   :  { %v3495_v20 = vadd.f32 %v3491_v2, %v3415_v40  ;;  %v11542_v2 = vld [vmem:[%s12425_s4 + $0x2] ss:$0 sm:$0xff] }
 0x514   :  { %v8157_v9 = vmul.f32 -1.442695, %v3495_v20  ;;  %v8198_v20 = vld [vmem:[%s12424_s0 + $0x88] sm:$0xff] }
 0x516   :  { %10111 = vpow2.f32 %v8157_v9 }
 0x517   :  { %v3579_v8 = vpop.f32.mrf.mxu0 }
 0x518   :  { %v3580_v27 = vadd.f32 %v11536_v3, %v3579_v8 }
 0x519   :  { %v9413_v12 = vpop.f32.mrf.mxu0 }
 0x51a   :  { %v3657_v44 = vadd.f32 %v3653_v7, %v3580_v27  ;;  %v4146_v57 = vpop.f32.mrf.mxu1 }
 0x51c   :  { %v8170_v17 = vmul.f32 -1.442695, %v3657_v44  ;;  %v9490_v15 = vpop.f32.mrf.mxu1  ;;  %v4150_v44 = vadd.f32 %v8198_v20, %v4146_v57  ;;  %v8197_v57 = vld [vmem:[%s12424_s0 + $0x80] sm:$0xff] }
 0x51d   :  { %v11551_v15 = vld [vmem:[%s12425_s4 + $0x3] ss:$0 sm:$0xff] }
 0x51e   :  { %10113 = vpow2.f32 %v8170_v17  ;;  %v8208_v33 = vmul.f32 -1.442695, %v4150_v44 }
 0x521   :  { %v3741_v35 = vpop.f32.mrf.mxu0 }
 0x522   :  { %v3742_v12 = vadd.f32 %v11542_v2, %v3741_v35 }
 0x523   :  { %v9435_v40 = vpop.f32.mrf.mxu0  ;;  %v10112_v0 = vpop.eup %10111 }
 0x524   :  { %v4303_v59 = vpop.f32.mrf.mxu1  ;;  %v3499_v9 = vadd.f32 1.0, %v10112_v0  ;;  %v3819_v17 = vadd.f32 %v3815_v24, %v3742_v12 }
 0x526   :  { %v9512_v7 = vpop.f32.mrf.mxu1  ;;  %10115 = vrcp.f32 %v3499_v9 }
 0x527   :  { %10117 = vtanh.f32 %v3819_v17 }
 0x52a   :  { %v3898_v8 = vpop.f32.mrf.mxu0 }
 0x52b   :  { %v10114_v27 = vpop.eup %10113  ;;  %v3899_v40 = vadd.f32 %v11551_v15, %v3898_v8 }
 0x52c   :  { %v3661_v3 = vadd.f32 1.0, %v10114_v27  ;;  %v9457_v11 = vpop.f32.mrf.mxu0 }
 0x52d   :  { %v3976_v13 = vadd.f32 %v3972_v16, %v3899_v40  ;;  %v8200_v11 = vld [vmem:[%s12424_s0 + $0x98] sm:$0xff] }
 0x52e   :  { %10119 = vrcp.f32 %v3661_v3  ;;  %v4307_v44 = vadd.f32 %v8200_v11, %v4303_v59 }
 0x52f   :  { %v8195_v35 = vmul.f32 -1.442695, %v3976_v13  ;;  %10121 = vpow2.f32 %v8208_v33 }
 0x531   :  { %10123 = vpow2.f32 %v8195_v35 }
 0x532   :  { %v4065_v0 = vpop.f32.mrf.mxu0 }
 0x533   :  { %v4069_v24 = vadd.f32 %v8197_v57, %v4065_v0  ;;  %v10116_v7 = vpop.eup %10115  ;;  %v8199_v57 = vld [vmem:[%s12424_s0 + $0x90] sm:$0xff]  ;;  %v8219_v0 = vmul.f32 -1.442695, %v4307_v44 }
 0x534   :  { %v9479_v20 = vpop.f32.mrf.mxu0  ;;  %v10118_v9 = vpop.eup %10117 }
 0x535   :  { %v8202_v12 = vmul.f32 -1.442695, %v4069_v24  ;;  %v3984_v33 = vmul.f32 %v10118_v9, %v10116_v7 }
 0x537   :  { %10125 = vpow2.f32 %v8202_v12 }
 0x53a   :  { %v4227_v16 = vpop.f32.mrf.mxu0 }
 0x53b   :  { %v10120_v3 = vpop.eup %10119  ;;  %v4231_v20 = vadd.f32 %v8199_v57, %v4227_v16 }
 0x53c   :  { %v3983_v13 = vmul.f32 %v10120_v3, %v11261_v39  ;;  %v9501_v17 = vpop.f32.mrf.mxu0  ;;  %v10122_v8 = vpop.eup %10121 }
 0x53d   :  { %v4154_v24 = vadd.f32 1.0, %v10122_v8 }
 0x53e   :  { %v10124_v27 = vpop.eup %10123  ;;  %v11561_v40 = vadd.f32 %v3984_v33, %v3983_v13 }
 0x53f   :  { %v3980_v35 = vadd.f32 1.0, %v10124_v27 }
 0x540   :  { %10127 = vtanh.f32 %v11561_v40 }
 0x541   :  { %10129 = vrcp.f32 %v3980_v35 }
 0x542   :  { %10131 = vpow2.f32 %v8219_v0 }
 0x543   :  { %10133 = vrcp.f32 %v4154_v24 }
 0x544   :  { %v10126_v12 = vpop.eup %10125  ;;  %10135 = vtanh.f32 %v4231_v20 }
 0x545   :  { %v4073_v39 = vadd.f32 1.0, %v10126_v12 }
 0x547   :  { %10137 = vrcp.f32 %v4073_v39  ;;  %v12482_v39 = vld [vmem:[#allocation11_spill] sm:$0xff] }
 0x54d   :  { %v10128_v59 = vpop.eup %10127 }
 0x54e   :  { %v10130_v7 = vpop.eup %10129 }
 0x54f   :  { %v3987_v11 = vmul.f32 %v10130_v7, %v10128_v59  ;;  %v10132_v9 = vpop.eup %10131 }
 0x550   :  { %v10134_v3 = vpop.eup %10133  ;;  %v4311_v33 = vadd.f32 1.0, %v10132_v9 }
 0x551   :  { %8196 = vst.msk [vmem:[%s12426_s5 + $0x18] sm:$0xff] %vm24_vm0, %v3987_v11  ;;  %9533 = vmatmul.mubr.msk.f32.vlgmr.msra.gmra.mxu1 %vm24_vm0, %v3987_v11  ;;  %v10136_v16 = vpop.eup %10135  ;;  %v4314_v44 = vmul.f32 %v10134_v3, %v11300_v36 }
 0x552   :  { %9547 = vmatpush3.msra.mxu1 %v11270_v37  ;;  %9554 = vmatprep.mubr.msk.f32.mxu1 %vm10256_vm1, %v12457_v22  ;;  %10139 = vrcp.f32 %v4311_v33 }
 0x553   :  { %9548 = vmatprep.subr.mxu1 %v12457_v22 }
 0x554   :  { %v10138_v13 = vpop.eup %10137  ;;  %9549 = vmatpush3.msra.mxu1 %v11280_v26 }
 0x555   :  { %v4315_v17 = vmul.f32 %v10138_v13, %v10136_v16  ;;  %9550 = vmatprep.subr.mxu1 %v12457_v22 }
 0x556   :  { %9551 = vmatpush3.msra.mxu1 %v11289_v34 }
 0x557   :  { %v11580_v8 = vadd.f32 %v4315_v17, %v4314_v44  ;;  %9552 = vmatprep.subr.mxu1 %v12457_v22 }
 0x558   :  { %9553 = vmatpush3.msra.mxu1 %v11297_v46 }
 0x559   :  { %10141 = vtanh.f32 %v11580_v8  ;;  %9555 = vmatmul.mubr.msk.f32.vlgmr.msra.gmra.mxu1 %vm24_vm0, %v3987_v11  ;;  %9568 = vmatprep.subr.mxu1 %v12457_v22 }
 0x55a   :  { %9569 = vmatpush3.msra.mxu1 %v11306_v62  ;;  %9576 = vmatprep.mubr.msk.f32.mxu1 %vm10256_vm1, %v12457_v22 }
 0x55b   :  { %9570 = vmatprep.subr.mxu1 %v12457_v22 }
 0x55c   :  { %9571 = vmatpush3.msra.mxu1 %v11315_v10 }
 0x55d   :  { %9572 = vmatprep.subr.mxu1 %v12457_v22 }
 0x55e   :  { %9573 = vmatpush3.msra.mxu1 %v11324_v61 }
 0x55f   :  { %9574 = vmatprep.subr.mxu1 %v12457_v22  ;;  %v10140_v36 = vpop.eup %10139 }
 0x560   :  { %9575 = vmatpush3.msra.mxu1 %v11331_v19 }
 0x561   :  { %9577 = vmatmul.mubr.msk.f32.vlgmr.msra.gmra.mxu1 %vm24_vm0, %v3987_v11  ;;  %9590 = vmatprep.subr.mxu1 %v12457_v22 }
 0x562   :  { %9591 = vmatpush3.msra.mxu1 %v11338_v21  ;;  %9598 = vmatprep.mubr.msk.f32.mxu1 %vm10256_vm1, %v12457_v22 }
 0x563   :  { %9592 = vmatprep.subr.mxu1 %v12457_v22 }
 0x564   :  { %9593 = vmatpush3.msra.mxu1 %v11346_v60 }
 0x565   :  { %9594 = vmatprep.subr.mxu1 %v12457_v22 }
 0x566   :  { %v10142_v27 = vpop.eup %10141  ;;  %9595 = vmatpush3.msra.mxu1 %v11010_v23  ;;  %v12474_v23 = vld [vmem:[#allocation5_spill] sm:$0xff] }
 0x567   :  { %9596 = vmatprep.subr.mxu1 %v12457_v22  ;;  %v11606_v35 = vmul.f32 %v10142_v27, %v10140_v36  ;;  %v8264_v36 = vld [vmem:[%s12424_s0 + $0xa8] sm:$0xff] }
 0x568   :  { %9597 = vmatpush3.msra.mxu1 %v11017_v25  ;;  %v12475_v25 = vld [vmem:[#allocation7_spill] sm:$0xff] }
 0x569   :  { %9522 = vmatmul.mubr.msk.f32.vlgmr.msra.gmra.mxu0 %vm24_vm0, %v11606_v35  ;;  %9599 = vmatmul.mubr.msk.f32.vlgmr.msra.gmra.mxu1 %vm24_vm0, %v3987_v11 }
 0x56a   :  { %9536 = vmatpush3.msra.mxu0 %v11361_v42  ;;  %9612 = vmatprep.subr.mxu1 %v12457_v22 }
 0x56b   :  { %9537 = vmatprep.subr.mxu0 %v12457_v22  ;;  %9613 = vmatpush3.msra.mxu1 %v11027_v28  ;;  %v12476_v28 = vld [vmem:[#allocation8_spill] sm:$0xff] }
 0x56c   :  { %9538 = vmatpush3.msra.mxu0 %v11370_v41  ;;  %9614 = vmatprep.subr.mxu1 %v12457_v22 }
 0x56d   :  { %9539 = vmatprep.subr.mxu0 %v12457_v22  ;;  %9615 = vmatpush3.msra.mxu1 %v11037_v29  ;;  %v12477_v29 = vld [vmem:[#allocation9_spill] sm:$0xff] }
 0x56e   :  { %9540 = vmatpush3.msra.mxu0 %v11379_v43  ;;  %9616 = vmatprep.subr.mxu1 %v12457_v22 }
 0x56f   :  { %9541 = vmatprep.subr.mxu0 %v12457_v22  ;;  %9543 = vmatprep.mubr.msk.f32.mxu0 %vm10256_vm1, %v12457_v22 }
 0x570   :  { %9542 = vmatpush3.msra.mxu0 %v11388_v45  ;;  %9617 = vmatpush3.msra.mxu1 %v11048_v30  ;;  %v11712_v30 = vld [vmem:[%s12422_s3 + $0x18] sm:$0xff] }
 0x571   :  { %9544 = vmatmul.mubr.msk.f32.vlgmr.msra.gmra.mxu0 %vm24_vm0, %v11606_v35  ;;  %9557 = vmatprep.subr.mxu0 %v12457_v22 }
 0x572   :  { %9618 = vmatprep.subr.mxu1 %v12457_v22  ;;  %9558 = vmatpush3.msra.mxu0 %v11398_v63 }
 0x573   :  { %9619 = vmatpush3.msra.mxu1 %v11060_v31  ;;  %9620 = vmatprep.mubr.msk.f32.mxu1 %vm10256_vm1, %v12457_v22  ;;  %v12478_v31 = vld [vmem:[#allocation6_spill] sm:$0xff] }
 0x574   :  { %9559 = vmatprep.subr.mxu0 %v12457_v22  ;;  %9621 = vmatmul.mubr.msk.f32.vlgmr.msra.gmra.mxu1 %vm24_vm0, %v11606_v35 }
 0x575   :  { %9634 = vmatprep.subr.mxu1 %v12457_v22  ;;  %9560 = vmatpush3.msra.mxu0 %v11410_v58 }
 0x576   :  { %9635 = vmatpush3.msra.mxu1 %v11073_v32  ;;  %9561 = vmatprep.subr.mxu0 %v12457_v22  ;;  %v12479_v32 = vld [vmem:[#allocation3_spill] sm:$0xff] }
 0x577   :  { %9636 = vmatprep.subr.mxu1 %v12457_v22  ;;  %9562 = vmatpush3.msra.mxu0 %v11421_v1 }
 0x578   :  { %9637 = vmatpush3.msra.mxu1 %v11083_v47  ;;  %9563 = vmatprep.subr.mxu0 %v12457_v22  ;;  %v12480_v47 = vld [vmem:[#allocation4_spill] sm:$0xff] }
 0x579   :  { %9638 = vmatprep.subr.mxu1 %v12457_v22  ;;  %9564 = vmatpush3.msra.mxu0 %v11430_v4 }
 0x57a   :  { %9565 = vmatprep.mubr.msk.f32.mxu0 %vm10256_vm1, %v12457_v22  ;;  %9639 = vmatpush3.msra.mxu1 %v11092_v48 }
 0x57b   :  { %9566 = vmatmul.mubr.msk.f32.vlgmr.msra.gmra.mxu0 %vm24_vm0, %v11606_v35  ;;  %9579 = vmatprep.subr.mxu0 %v12457_v22 }
 0x57c   :  { %9640 = vmatprep.subr.mxu1 %v12457_v22  ;;  %9580 = vmatpush3.msra.mxu0 %v11441_v14 }
 0x57d   :  { %9641 = vmatpush3.msra.mxu1 %v11104_v49  ;;  %9642 = vmatprep.mubr.msk.f32.mxu1 %vm10256_vm1, %v12457_v22 }
 0x57e   :  { %9581 = vmatprep.subr.mxu0 %v12457_v22  ;;  %9643 = vmatmul.mubr.msk.f32.vlgmr.msra.gmra.mxu1 %vm24_vm0, %v11606_v35 }
 0x57f   :  { %9582 = vmatpush3.msra.mxu0 %v11454_v5  ;;  %9587 = vmatprep.mubr.msk.f32.mxu0 %vm10256_vm1, %v12457_v22 }
 0x580   :  { %9583 = vmatprep.subr.mxu0 %v12457_v22  ;;  %9656 = vmatprep.subr.mxu1 %v12457_v22 }
 0x581   :  { %9584 = vmatpush3.msra.mxu0 %v11465_v6  ;;  %9664 = vmatprep.mubr.msk.f32.mxu1 %vm10256_vm1, %v12457_v22 }
 0x582   :  { %9585 = vmatprep.subr.mxu0 %v12457_v22  ;;  %9657 = vmatpush3.msra.mxu1 %v11712_v30 }
 0x583   :  { %9586 = vmatpush3.msra.mxu0 %v11474_v38  ;;  %9658 = vmatprep.subr.mxu1 %v12457_v22 }
 0x584   :  { %9588 = vmatmul.mubr.msk.f32.vlgmr.msra.gmra.mxu0 %vm24_vm0, %v11606_v35  ;;  %9601 = vmatprep.subr.mxu0 %v12457_v22 }
 0x585   :  { %9602 = vmatpush3.msra.mxu0 %v11128_v50  ;;  %9609 = vmatprep.mubr.msk.f32.mxu0 %vm10256_vm1, %v12457_v22 }
 0x586   :  { %9603 = vmatprep.subr.mxu0 %v12457_v22  ;;  %9659 = vmatpush3.msra.mxu1 %v12478_v31 }
 0x587   :  { %9604 = vmatpush3.msra.mxu0 %v11140_v51  ;;  %9660 = vmatprep.subr.mxu1 %v12457_v22 }
 0x588   :  { %9605 = vmatprep.subr.mxu0 %v12457_v22  ;;  %9661 = vmatpush3.msra.mxu1 %v12479_v32 }
 0x589   :  { %9606 = vmatpush3.msra.mxu0 %v11149_v52  ;;  %9662 = vmatprep.subr.mxu1 %v12457_v22 }
 0x58a   :  { %9607 = vmatprep.subr.mxu0 %v12457_v22  ;;  %9663 = vmatpush3.msra.mxu1 %v12480_v47 }
 0x58b   :  { %9608 = vmatpush3.msra.mxu0 %v11156_v53  ;;  %9678 = vmatprep.subr.mxu1 %v12457_v22 }
 0x58c   :  { %9610 = vmatmul.mubr.msk.f32.vlgmr.msra.gmra.mxu0 %vm24_vm0, %v11606_v35  ;;  %9623 = vmatprep.subr.mxu0 %v12457_v22 }
 0x58d   :  { %9624 = vmatpush3.msra.mxu0 %v11163_v54  ;;  %9631 = vmatprep.mubr.msk.f32.mxu0 %vm10256_vm1, %v12457_v22 }
 0x58e   :  { %9625 = vmatprep.subr.mxu0 %v12457_v22 }
 0x58f   :  { %9626 = vmatpush3.msra.mxu0 %v11172_v55 }
 0x590   :  { %9627 = vmatprep.subr.mxu0 %v12457_v22 }
 0x591   :  { %9628 = vmatpush3.msra.mxu0 %v11181_v18  ;;  %v12481_v18 = vld [vmem:[#allocation10_spill] sm:$0xff] }
 0x592   :  { %9629 = vmatprep.subr.mxu0 %v12457_v22 }
 0x593   :  { %9630 = vmatpush3.msra.mxu0 %v11188_v56 }
 0x594   :  { %9632 = vmatmul.mubr.msk.f32.vlgmr.msra.gmra.mxu0 %vm24_vm0, %v11606_v35  ;;  %9645 = vmatprep.subr.mxu0 %v12457_v22 }
 0x595   :  { %9646 = vmatpush3.msra.mxu0 %v12474_v23  ;;  %9653 = vmatprep.mubr.msk.f32.mxu0 %vm10256_vm1, %v12457_v22 }
 0x596   :  { %9647 = vmatprep.subr.mxu0 %v12457_v22 }
 0x597   :  { %9648 = vmatpush3.msra.mxu0 %v12475_v25 }
 0x598   :  { %9649 = vmatprep.subr.mxu0 %v12457_v22 }
 0x599   :  { %9650 = vmatpush3.msra.mxu0 %v12476_v28 }
 0x59a   :  { %9651 = vmatprep.subr.mxu0 %v12457_v22 }
 0x59b   :  { %9652 = vmatpush3.msra.mxu0 %v12477_v29 }
 0x59c   :  { %9667 = vmatprep.subr.mxu0 %v12457_v22 }
 0x611   :  { %v4476_v48 = vpop.f32.mrf.mxu1 }
 0x613   :  { %v9534_v49 = vpop.f32.mrf.mxu1 }
 0x619   :  { %v4638_v50 = vpop.f32.mrf.mxu1 }
 0x61b   :  { %v9556_v51 = vpop.f32.mrf.mxu1 }
 0x621   :  { %v4800_v52 = vpop.f32.mrf.mxu1 }
 0x623   :  { %v9578_v53 = vpop.f32.mrf.mxu1 }
 0x624   :  { %v8263_v53 = vld [vmem:[%s12424_s0 + $0xa0] sm:$0xff] }
 0x629   :  { %v4399_v54 = vpop.f32.mrf.mxu0  ;;  %v4957_v55 = vpop.f32.mrf.mxu1 }
 0x62a   :  { %v4400_v56 = vadd.f32 %v12481_v18, %v4399_v54 }
 0x62b   :  { %v9523_v57 = vpop.f32.mrf.mxu0  ;;  %v9600_v0 = vpop.f32.mrf.mxu1 }
 0x62c   :  { %v4480_v24 = vadd.f32 %v4476_v48, %v4400_v56 }
 0x62e   :  { %v8223_v20 = vmul.f32 -1.442695, %v4480_v24  ;;  %v8266_v24 = vld [vmem:[%s12424_s0 + $0xb8] sm:$0xff] }
 0x630   :  { %10143 = vpow2.f32 %v8223_v20 }
 0x631   :  { %v4564_v12 = vpop.f32.mrf.mxu0 }
 0x632   :  { %v4565_v59 = vadd.f32 %v12482_v39, %v4564_v12 }
 0x633   :  { %v9545_v7 = vpop.f32.mrf.mxu0 }
 0x634   :  { %v4642_v11 = vadd.f32 %v4638_v50, %v4565_v59  ;;  %v5131_v9 = vpop.f32.mrf.mxu1 }
 0x635   :  { %v5135_v25 = vadd.f32 %v8264_v36, %v5131_v9 }
 0x636   :  { %v8236_v3 = vmul.f32 -1.442695, %v4642_v11  ;;  %v9622_v16 = vpop.f32.mrf.mxu1 }
 0x637   :  { %v8274_v48 = vmul.f32 -1.442695, %v5135_v25 }
 0x638   :  { %10145 = vpow2.f32 %v8236_v3 }
 0x63b   :  { %v4726_v13 = vpop.f32.mrf.mxu0 }
 0x63c   :  { %v4727_v27 = vadd.f32 %v11542_v2, %v4726_v13 }
 0x63d   :  { %v9567_v33 = vpop.f32.mrf.mxu0  ;;  %v10144_v17 = vpop.eup %10143 }
 0x63e   :  { %v5288_v44 = vpop.f32.mrf.mxu1  ;;  %v4484_v23 = vadd.f32 1.0, %v10144_v17  ;;  %v4804_v28 = vadd.f32 %v4800_v52, %v4727_v27  ;;  %v8265_v17 = vld [vmem:[%s12424_s0 + $0xb0] sm:$0xff] }
 0x63f   :  { %v5292_v11 = vadd.f32 %v8266_v24, %v5288_v44 }
 0x640   :  { %v9644_v35 = vpop.f32.mrf.mxu1  ;;  %10147 = vrcp.f32 %v4484_v23 }
 0x641   :  { %10149 = vtanh.f32 %v4804_v28  ;;  %v8285_v36 = vmul.f32 -1.442695, %v5292_v11 }
 0x644   :  { %v4883_v29 = vpop.f32.mrf.mxu0 }
 0x645   :  { %v10146_v31 = vpop.eup %10145  ;;  %v4884_v32 = vadd.f32 %v11551_v15, %v4883_v29 }
 0x646   :  { %v4646_v47 = vadd.f32 1.0, %v10146_v31  ;;  %v9589_v49 = vpop.f32.mrf.mxu0 }
 0x647   :  { %v4961_v50 = vadd.f32 %v4957_v55, %v4884_v32 }
 0x648   :  { %10151 = vrcp.f32 %v4646_v47 }
 0x649   :  { %v8261_v51 = vmul.f32 -1.442695, %v4961_v50  ;;  %10153 = vpow2.f32 %v8274_v48 }
 0x64b   :  { %10155 = vpow2.f32 %v8261_v51 }
 0x64c   :  { %v5050_v54 = vpop.f32.mrf.mxu0 }
 0x64d   :  { %v5054_v52 = vadd.f32 %v8263_v53, %v5050_v54  ;;  %v10148_v0 = vpop.eup %10147  ;;  %v11985_v53 = vld [vmem:[%s12422_s3] sm:$0xff]  ;;  %v11992_v54 = vld [vmem:[%s12423_s2 + $0x18] sm:$0xff] }
 0x64e   :  { %v9611_v56 = vpop.f32.mrf.mxu0  ;;  %v10150_v20 = vpop.eup %10149 }
 0x64f   :  { %v8268_v57 = vmul.f32 -1.442695, %v5054_v52  ;;  %v4969_v7 = vmul.f32 %v10150_v20, %v10148_v0  ;;  %v11999_v52 = vld [vmem:[%s12423_s2 + $0x10] sm:$0xff]  ;;  %v12006_v56 = vld [vmem:[%s12423_s2 + $0x8] sm:$0xff] }
 0x651   :  { %10157 = vpow2.f32 %v8268_v57  ;;  %v12013_v57 = vld [vmem:[%s12423_s2] sm:$0xff] }
 0x654   :  { %v5212_v55 = vpop.f32.mrf.mxu0 }
 0x655   :  { %v10152_v12 = vpop.eup %10151  ;;  %v5216_v35 = vadd.f32 %v8265_v17, %v5212_v55 }
 0x656   :  { %v4968_v59 = vmul.f32 %v10152_v12, %v11561_v40  ;;  %v9633_v9 = vpop.f32.mrf.mxu0  ;;  %v10154_v3 = vpop.eup %10153 }
 0x657   :  { %v5139_v27 = vadd.f32 1.0, %v10154_v3 }
 0x658   :  { %v10156_v16 = vpop.eup %10155  ;;  %v11736_v13 = vadd.f32 %v4969_v7, %v4968_v59 }
 0x659   :  { %v4965_v33 = vadd.f32 1.0, %v10156_v16 }
 0x65a   :  { %10159 = vtanh.f32 %v11736_v13 }
 0x65b   :  { %10161 = vrcp.f32 %v4965_v33 }
 0x65c   :  { %10163 = vpow2.f32 %v8285_v36 }
 0x65d   :  { %10165 = vrcp.f32 %v5139_v27 }
 0x65e   :  { %v10158_v23 = vpop.eup %10157  ;;  %10167 = vtanh.f32 %v5216_v35 }
 0x65f   :  { %v5058_v40 = vadd.f32 1.0, %v10158_v23 }
 0x661   :  { %10169 = vrcp.f32 %v5058_v40 }
 0x667   :  { %v10160_v44 = vpop.eup %10159 }
 0x668   :  { %v10162_v25 = vpop.eup %10161 }
 0x669   :  { %v4972_v28 = vmul.f32 %v10162_v25, %v10160_v44  ;;  %v10164_v29 = vpop.eup %10163 }
 0x66a   :  { %v10166_v31 = vpop.eup %10165  ;;  %v5296_v48 = vadd.f32 1.0, %v10164_v29 }
 0x66b   :  { %8262 = vst.msk [vmem:[%s12426_s5 + $0x20] sm:$0xff] %vm24_vm0, %v4972_v28  ;;  %9665 = vmatmul.mubr.msk.f32.vlgmr.msra.gmra.mxu1 %vm24_vm0, %v4972_v28  ;;  %v10168_v32 = vpop.eup %10167  ;;  %v5299_v49 = vmul.f32 %v10166_v31, %v11580_v8  ;;  %v11978_v8 = vld [vmem:[%s12422_s3 + $0x8] sm:$0xff] }
 0x66c   :  { %9679 = vmatpush3.msra.mxu1 %v11270_v37  ;;  %9686 = vmatprep.mubr.msk.f32.mxu1 %vm10256_vm1, %v12457_v22  ;;  %10171 = vrcp.f32 %v5296_v48  ;;  %v11780_v37 = vld [vmem:[%s12422_s3 + $0x68] sm:$0xff] }
 0x66d   :  { %9680 = vmatprep.subr.mxu1 %v12457_v22 }
 0x66e   :  { %v10170_v47 = vpop.eup %10169  ;;  %9681 = vmatpush3.msra.mxu1 %v11280_v26 }
 0x66f   :  { %v5300_v50 = vmul.f32 %v10170_v47, %v10168_v32  ;;  %9682 = vmatprep.subr.mxu1 %v12457_v22 }
 0x670   :  { %9683 = vmatpush3.msra.mxu1 %v11289_v34  ;;  %v11787_v34 = vld [vmem:[%s12422_s3 + $0x60] sm:$0xff] }
 0x671   :  { %v11755_v51 = vadd.f32 %v5300_v50, %v5299_v49  ;;  %9684 = vmatprep.subr.mxu1 %v12457_v22 }
 0x672   :  { %9685 = vmatpush3.msra.mxu1 %v11297_v46 }
 0x673   :  { %10173 = vtanh.f32 %v11755_v51  ;;  %9687 = vmatmul.mubr.msk.f32.vlgmr.msra.gmra.mxu1 %vm24_vm0, %v4972_v28  ;;  %9700 = vmatprep.subr.mxu1 %v12457_v22 }
 0x674   :  { %9701 = vmatpush3.msra.mxu1 %v11306_v62  ;;  %9708 = vmatprep.mubr.msk.f32.mxu1 %vm10256_vm1, %v12457_v22 }
 0x675   :  { %9702 = vmatprep.subr.mxu1 %v12457_v22 }
 0x676   :  { %9703 = vmatpush3.msra.mxu1 %v11315_v10  ;;  %v11797_v10 = vld [vmem:[%s12421_s1 + $0x38] sm:$0xff] }
 0x677   :  { %9704 = vmatprep.subr.mxu1 %v12457_v22 }
 0x678   :  { %9705 = vmatpush3.msra.mxu1 %v11324_v61  ;;  %v11807_v61 = vld [vmem:[%s12421_s1 + $0x30] sm:$0xff] }
 0x679   :  { %9706 = vmatprep.subr.mxu1 %v12457_v22  ;;  %v10172_v26 = vpop.eup %10171 }
 0x67a   :  { %9707 = vmatpush3.msra.mxu1 %v11331_v19  ;;  %v11818_v19 = vld [vmem:[%s12421_s1 + $0x28] sm:$0xff] }
 0x67b   :  { %9709 = vmatmul.mubr.msk.f32.vlgmr.msra.gmra.mxu1 %vm24_vm0, %v4972_v28  ;;  %9722 = vmatprep.subr.mxu1 %v12457_v22 }
 0x67c   :  { %9723 = vmatpush3.msra.mxu1 %v11338_v21  ;;  %9730 = vmatprep.mubr.msk.f32.mxu1 %vm10256_vm1, %v12457_v22  ;;  %v11830_v21 = vld [vmem:[%s12421_s1 + $0x20] sm:$0xff] }
 0x67d   :  { %9724 = vmatprep.subr.mxu1 %v12457_v22 }
 0x67e   :  { %9725 = vmatpush3.msra.mxu1 %v11346_v60  ;;  %v11843_v60 = vld [vmem:[%s12421_s1 + $0x78] sm:$0xff] }
 0x67f   :  { %9726 = vmatprep.subr.mxu1 %v12457_v22 }
 0x680   :  { %v10174_v46 = vpop.eup %10173  ;;  %9727 = vmatpush3.msra.mxu1 %v11780_v37 }
 0x681   :  { %9728 = vmatprep.subr.mxu1 %v12457_v22  ;;  %v11791_v62 = vmul.f32 %v10174_v46, %v10172_v26 }
 0x682   :  { %9729 = vmatpush3.msra.mxu1 %v11787_v34 }
 0x683   :  { %9654 = vmatmul.mubr.msk.f32.vlgmr.msra.gmra.mxu0 %vm24_vm0, %v11791_v62  ;;  %9731 = vmatmul.mubr.msk.f32.vlgmr.msra.gmra.mxu1 %vm24_vm0, %v4972_v28 }
 0x684   :  { %9668 = vmatpush3.msra.mxu0 %v11361_v42  ;;  %9744 = vmatprep.subr.mxu1 %v12457_v22  ;;  %v11853_v42 = vld [vmem:[%s12421_s1 + $0x70] sm:$0xff] }
 0x685   :  { %9669 = vmatprep.subr.mxu0 %v12457_v22  ;;  %9745 = vmatpush3.msra.mxu1 %v11797_v10 }
 0x686   :  { %9670 = vmatpush3.msra.mxu0 %v11370_v41  ;;  %9746 = vmatprep.subr.mxu1 %v12457_v22  ;;  %v11862_v41 = vld [vmem:[%s12421_s1 + $0x68] sm:$0xff] }
 0x687   :  { %9671 = vmatprep.subr.mxu0 %v12457_v22  ;;  %9747 = vmatpush3.msra.mxu1 %v11807_v61 }
 0x688   :  { %9672 = vmatpush3.msra.mxu0 %v11379_v43  ;;  %9748 = vmatprep.subr.mxu1 %v12457_v22  ;;  %v11874_v43 = vld [vmem:[%s12421_s1 + $0x60] sm:$0xff] }
 0x689   :  { %9673 = vmatprep.subr.mxu0 %v12457_v22  ;;  %9675 = vmatprep.mubr.msk.f32.mxu0 %vm10256_vm1, %v12457_v22 }
 0x68a   :  { %9674 = vmatpush3.msra.mxu0 %v11388_v45  ;;  %9749 = vmatpush3.msra.mxu1 %v11818_v19  ;;  %v11898_v45 = vld [vmem:[%s12421_s1 + $0x18] sm:$0xff] }
 0x68b   :  { %9676 = vmatmul.mubr.msk.f32.vlgmr.msra.gmra.mxu0 %vm24_vm0, %v11791_v62  ;;  %9689 = vmatprep.subr.mxu0 %v12457_v22 }
 0x68c   :  { %9750 = vmatprep.subr.mxu1 %v12457_v22  ;;  %9690 = vmatpush3.msra.mxu0 %v11398_v63  ;;  %v11910_v63 = vld [vmem:[%s12421_s1 + $0x10] sm:$0xff] }
 0x68d   :  { %9751 = vmatpush3.msra.mxu1 %v11830_v21  ;;  %9752 = vmatprep.mubr.msk.f32.mxu1 %vm10256_vm1, %v12457_v22 }
 0x68e   :  { %9691 = vmatprep.subr.mxu0 %v12457_v22  ;;  %9753 = vmatmul.mubr.msk.f32.vlgmr.msra.gmra.mxu1 %vm24_vm0, %v11791_v62 }
 0x68f   :  { %9766 = vmatprep.subr.mxu1 %v12457_v22  ;;  %9692 = vmatpush3.msra.mxu0 %v11410_v58  ;;  %v11919_v58 = vld [vmem:[%s12421_s1 + $0x8] sm:$0xff] }
 0x690   :  { %9767 = vmatpush3.msra.mxu1 %v11843_v60  ;;  %9693 = vmatprep.subr.mxu0 %v12457_v22 }
 0x691   :  { %9768 = vmatprep.subr.mxu1 %v12457_v22  ;;  %9694 = vmatpush3.msra.mxu0 %v11421_v1  ;;  %v11926_v1 = vld [vmem:[%s12421_s1] sm:$0xff] }
 0x692   :  { %9769 = vmatpush3.msra.mxu1 %v11853_v42  ;;  %9695 = vmatprep.subr.mxu0 %v12457_v22 }
 0x693   :  { %9770 = vmatprep.subr.mxu1 %v12457_v22  ;;  %9696 = vmatpush3.msra.mxu0 %v11430_v4  ;;  %v11933_v4 = vld [vmem:[%s12421_s1 + $0x58] sm:$0xff] }
 0x694   :  { %9697 = vmatprep.mubr.msk.f32.mxu0 %vm10256_vm1, %v12457_v22  ;;  %9771 = vmatpush3.msra.mxu1 %v11862_v41 }
 0x695   :  { %9698 = vmatmul.mubr.msk.f32.vlgmr.msra.gmra.mxu0 %vm24_vm0, %v11791_v62  ;;  %9711 = vmatprep.subr.mxu0 %v12457_v22 }
 0x696   :  { %9772 = vmatprep.subr.mxu1 %v12457_v22  ;;  %9712 = vmatpush3.msra.mxu0 %v11441_v14  ;;  %v11942_v14 = vld [vmem:[%s12421_s1 + $0x50] sm:$0xff] }
 0x697   :  { %9773 = vmatpush3.msra.mxu1 %v11874_v43  ;;  %9774 = vmatprep.mubr.msk.f32.mxu1 %vm10256_vm1, %v12457_v22 }
 0x698   :  { %9713 = vmatprep.subr.mxu0 %v12457_v22  ;;  %9775 = vmatmul.mubr.msk.f32.vlgmr.msra.gmra.mxu1 %vm24_vm0, %v11791_v62 }
 0x699   :  { %9714 = vmatpush3.msra.mxu0 %v11454_v5  ;;  %9719 = vmatprep.mubr.msk.f32.mxu0 %vm10256_vm1, %v12457_v22  ;;  %v11951_v5 = vld [vmem:[%s12421_s1 + $0x48] sm:$0xff] }
 0x69a   :  { %9715 = vmatprep.subr.mxu0 %v12457_v22  ;;  %9788 = vmatprep.subr.mxu1 %v12457_v22 }
 0x69b   :  { %9716 = vmatpush3.msra.mxu0 %v11465_v6  ;;  %9789 = vmatpush3.msra.mxu1 %v11712_v30  ;;  %v11958_v6 = vld [vmem:[%s12421_s1 + $0x40] sm:$0xff] }
 0x69c   :  { %9717 = vmatprep.subr.mxu0 %v12457_v22  ;;  %9790 = vmatprep.subr.mxu1 %v12457_v22 }
 0x69d   :  { %9718 = vmatpush3.msra.mxu0 %v11474_v38  ;;  %9796 = vmatprep.mubr.msk.f32.mxu1 %vm10256_vm1, %v12457_v22  ;;  %v11971_v38 = vld [vmem:[%s12422_s3 + $0x10] sm:$0xff] }
 0x69e   :  { %9720 = vmatmul.mubr.msk.f32.vlgmr.msra.gmra.mxu0 %vm24_vm0, %v11791_v62  ;;  %9733 = vmatprep.subr.mxu0 %v12457_v22 }
 0x69f   :  { %9734 = vmatpush3.msra.mxu0 %v11898_v45  ;;  %9741 = vmatprep.mubr.msk.f32.mxu0 %vm10256_vm1, %v12457_v22 }
 0x6a0   :  { %9735 = vmatprep.subr.mxu0 %v12457_v22  ;;  %9791 = vmatpush3.msra.mxu1 %v11971_v38 }
 0x6a1   :  { %9736 = vmatpush3.msra.mxu0 %v11910_v63  ;;  %9792 = vmatprep.subr.mxu1 %v12457_v22 }
 0x6a2   :  { %9737 = vmatprep.subr.mxu0 %v12457_v22  ;;  %9793 = vmatpush3.msra.mxu1 %v11978_v8 }
 0x6a3   :  { %9738 = vmatpush3.msra.mxu0 %v11919_v58  ;;  %9794 = vmatprep.subr.mxu1 %v12457_v22 }
 0x6a4   :  { %9739 = vmatprep.subr.mxu0 %v12457_v22  ;;  %9795 = vmatpush3.msra.mxu1 %v11985_v53 }
 0x6a5   :  { %9740 = vmatpush3.msra.mxu0 %v11926_v1  ;;  %9810 = vmatprep.subr.mxu1 %v12457_v22 }
 0x6a6   :  { %9742 = vmatmul.mubr.msk.f32.vlgmr.msra.gmra.mxu0 %vm24_vm0, %v11791_v62  ;;  %9755 = vmatprep.subr.mxu0 %v12457_v22 }
 0x6a7   :  { %9756 = vmatpush3.msra.mxu0 %v11933_v4  ;;  %9763 = vmatprep.mubr.msk.f32.mxu0 %vm10256_vm1, %v12457_v22 }
 0x6a8   :  { %9757 = vmatprep.subr.mxu0 %v12457_v22 }
 0x6a9   :  { %9758 = vmatpush3.msra.mxu0 %v11942_v14 }
 0x6aa   :  { %9759 = vmatprep.subr.mxu0 %v12457_v22 }
 0x6ab   :  { %9760 = vmatpush3.msra.mxu0 %v11951_v5 }
 0x6ac   :  { %9761 = vmatprep.subr.mxu0 %v12457_v22 }
 0x6ad   :  { %9762 = vmatpush3.msra.mxu0 %v11958_v6 }
 0x6ae   :  { %9764 = vmatmul.mubr.msk.f32.vlgmr.msra.gmra.mxu0 %vm24_vm0, %v11791_v62  ;;  %9777 = vmatprep.subr.mxu0 %v12457_v22 }
 0x6af   :  { %9785 = vmatprep.mubr.msk.f32.mxu0 %vm10256_vm1, %v12457_v22  ;;  %9778 = vmatpush3.msra.mxu0 %v11992_v54 }
 0x6b0   :  { %9779 = vmatprep.subr.mxu0 %v12457_v22 }
 0x6b1   :  { %9780 = vmatpush3.msra.mxu0 %v11999_v52 }
 0x6b2   :  { %9781 = vmatprep.subr.mxu0 %v12457_v22 }
 0x6b3   :  { %9782 = vmatpush3.msra.mxu0 %v12006_v56 }
 0x6b4   :  { %9783 = vmatprep.subr.mxu0 %v12457_v22 }
 0x6b5   :  { %9784 = vmatpush3.msra.mxu0 %v12013_v57 }
 0x6b6   :  { %9799 = vmatprep.subr.mxu0 %v12457_v22 }
 0x72b   :  { %v5461_v0 = vpop.f32.mrf.mxu1 }
 0x72d   :  { %v9666_v24 = vpop.f32.mrf.mxu1 }
 0x733   :  { %v5623_v20 = vpop.f32.mrf.mxu1 }
 0x735   :  { %v9688_v55 = vpop.f32.mrf.mxu1 }
 0x73b   :  { %v5785_v12 = vpop.f32.mrf.mxu1 }
 0x73d   :  { %v9710_v59 = vpop.f32.mrf.mxu1 }
 0x743   :  { %v5384_v7 = vpop.f32.mrf.mxu0  ;;  %v5942_v11 = vpop.f32.mrf.mxu1 }
 0x744   :  { %v5385_v9 = vadd.f32 %v12481_v18, %v5384_v7  ;;  %v8330_v18 = vld [vmem:[%s12424_s0 + $0xc8] sm:$0xff] }
 0x745   :  { %v9655_v3 = vpop.f32.mrf.mxu0  ;;  %v9732_v16 = vpop.f32.mrf.mxu1 }
 0x746   :  { %v5465_v33 = vadd.f32 %v5461_v0, %v5385_v9  ;;  %v8332_v16 = vld [vmem:[%s12424_s0 + $0xd8] sm:$0xff] }
 0x748   :  { %v8289_v17 = vmul.f32 -1.442695, %v5465_v33 }
 0x74a   :  { %10175 = vpow2.f32 %v8289_v17 }
 0x74b   :  { %v5549_v36 = vpop.f32.mrf.mxu0 }
 0x74c   :  { %v5550_v27 = vadd.f32 %v12482_v39, %v5549_v36 }
 0x74d   :  { %v9677_v35 = vpop.f32.mrf.mxu0 }
 0x74e   :  { %v5627_v23 = vadd.f32 %v5623_v20, %v5550_v27  ;;  %v6116_v40 = vpop.f32.mrf.mxu1 }
 0x74f   :  { %v6120_v50 = vadd.f32 %v8330_v18, %v6116_v40 }
 0x750   :  { %v8302_v44 = vmul.f32 -1.442695, %v5627_v23  ;;  %v9754_v25 = vpop.f32.mrf.mxu1 }
 0x751   :  { %v8340_v24 = vmul.f32 -1.442695, %v6120_v50 }
 0x752   :  { %10177 = vpow2.f32 %v8302_v44 }
 0x755   :  { %v5711_v28 = vpop.f32.mrf.mxu0 }
 0x756   :  { %v5712_v47 = vadd.f32 %v11542_v2, %v5711_v28  ;;  %v8329_v2 = vld [vmem:[%s12424_s0 + $0xc0] sm:$0xff] }
 0x757   :  { %v9699_v29 = vpop.f32.mrf.mxu0  ;;  %v10176_v32 = vpop.eup %10175 }
 0x758   :  { %v6273_v31 = vpop.f32.mrf.mxu1  ;;  %v5469_v49 = vadd.f32 1.0, %v10176_v32  ;;  %v5789_v39 = vadd.f32 %v5785_v12, %v5712_v47  ;;  %v8331_v29 = vld [vmem:[%s12424_s0 + $0xd0] sm:$0xff] }
 0x759   :  { %v6277_v35 = vadd.f32 %v8332_v16, %v6273_v31  ;;  %v12108_v16 = vld [vmem:[%s12422_s3 + $0x78] sm:$0xff] }
 0x75a   :  { %v9776_v48 = vpop.f32.mrf.mxu1  ;;  %10179 = vrcp.f32 %v5469_v49 }
 0x75b   :  { %10181 = vtanh.f32 %v5789_v39  ;;  %v8351_v32 = vmul.f32 -1.442695, %v6277_v35  ;;  %v12040_v39 = vld [vmem:[%s12422_s3 + $0x38] sm:$0xff]  ;;  %v12140_v35 = vld [vmem:[%s12423_s2 + $0x30] sm:$0xff] }
 0x75e   :  { %v5868_v26 = vpop.f32.mrf.mxu0 }
 0x75f   :  { %v10178_v46 = vpop.eup %10177  ;;  %v5869_v62 = vadd.f32 %v11551_v15, %v5868_v26 }
 0x760   :  { %v5631_v0 = vadd.f32 1.0, %v10178_v46  ;;  %v9721_v20 = vpop.f32.mrf.mxu0  ;;  %v12050_v46 = vld [vmem:[%s12422_s3 + $0x30] sm:$0xff] }
 0x761   :  { %v5946_v55 = vadd.f32 %v5942_v11, %v5869_v62 }
 0x762   :  { %10183 = vrcp.f32 %v5631_v0 }
 0x763   :  { %v8327_v59 = vmul.f32 -1.442695, %v5946_v55  ;;  %10185 = vpow2.f32 %v8340_v24  ;;  %v12059_v24 = vld [vmem:[%s12422_s3 + $0x28] sm:$0xff] }
 0x765   :  { %10187 = vpow2.f32 %v8327_v59 }
 0x766   :  { %v6035_v7 = vpop.f32.mrf.mxu0 }
 0x767   :  { %v6039_v12 = vadd.f32 %v8329_v2, %v6035_v7  ;;  %v10180_v15 = vpop.eup %10179  ;;  %v12067_v7 = vld [vmem:[%s12422_s3 + $0x20] sm:$0xff] }
 0x768   :  { %v9743_v9 = vpop.f32.mrf.mxu0  ;;  %v10182_v33 = vpop.eup %10181 }
 0x769   :  { %v8334_v3 = vmul.f32 -1.442695, %v6039_v12  ;;  %v5954_v27 = vmul.f32 %v10182_v33, %v10180_v15  ;;  %v12076_v9 = vld [vmem:[%s12422_s3 + $0x58] sm:$0xff]  ;;  %v12101_v15 = vld [vmem:[%s12422_s3 + $0x40] sm:$0xff]  ;;  %v12116_v33 = vld [vmem:[%s12422_s3 + $0x70] sm:$0xff] }
 0x76b   :  { %10189 = vpow2.f32 %v8334_v3  ;;  %v12094_v3 = vld [vmem:[%s12422_s3 + $0x48] sm:$0xff] }
 0x76e   :  { %v6197_v11 = vpop.f32.mrf.mxu0 }
 0x76f   :  { %v10184_v17 = vpop.eup %10183  ;;  %v6201_v47 = vadd.f32 %v8331_v29, %v6197_v11 }
 0x770   :  { %v5953_v36 = vmul.f32 %v10184_v17, %v11736_v13  ;;  %v9765_v23 = vpop.f32.mrf.mxu0  ;;  %v10186_v40 = vpop.eup %10185 }
 0x771   :  { %v6124_v18 = vadd.f32 1.0, %v10186_v40  ;;  %v12149_v23 = vld [vmem:[%s12423_s2 + $0x28] sm:$0xff]  ;;  %v12158_v40 = vld [vmem:[%s12423_s2 + $0x20] sm:$0xff] }
 0x772   :  { %v10188_v44 = vpop.eup %10187  ;;  %v12031_v25 = vadd.f32 %v5954_v27, %v5953_v36  ;;  %v12131_v27 = vld [vmem:[%s12423_s2 + $0x38] sm:$0xff] }
 0x773   :  { %v5950_v28 = vadd.f32 1.0, %v10188_v44 }
 0x774   :  { %10191 = vtanh.f32 %v12031_v25 }
 0x775   :  { %10193 = vrcp.f32 %v5950_v28 }
 0x776   :  { %10195 = vpow2.f32 %v8351_v32 }
 0x777   :  { %10197 = vrcp.f32 %v6124_v18 }
 0x778   :  { %v10190_v48 = vpop.eup %10189  ;;  %10199 = vtanh.f32 %v6201_v47 }
 0x779   :  { %v6043_v13 = vadd.f32 1.0, %v10190_v48 }
 0x77b   :  { %10201 = vrcp.f32 %v6043_v13  ;;  %v12312_v13 = vld [vmem:[%s12425_s4 + $0x2] ss:$0 sm:$0xff] }
 0x781   :  { %v10192_v31 = vpop.eup %10191 }
 0x782   :  { %v10194_v49 = vpop.eup %10193 }
 0x783   :  { %v5957_v50 = vmul.f32 %v10194_v49, %v10192_v31  ;;  %v10196_v26 = vpop.eup %10195 }
 0x784   :  { %v10198_v62 = vpop.eup %10197  ;;  %v6281_v55 = vadd.f32 1.0, %v10196_v26  ;;  %v8396_v26 = vld [vmem:[%s12424_s0 + $0xe8] sm:$0xff] }
 0x785   :  { %8328 = vst.msk [vmem:[%s12426_s5 + $0x28] sm:$0xff] %vm24_vm0, %v5957_v50  ;;  %9797 = vmatmul.mubr.msk.f32.vlgmr.msra.gmra.mxu1 %vm24_vm0, %v5957_v50  ;;  %v10200_v0 = vpop.eup %10199  ;;  %v6284_v59 = vmul.f32 %v10198_v62, %v11755_v51  ;;  %v12085_v51 = vld [vmem:[%s12422_s3 + $0x50] sm:$0xff] }
 0x786   :  { %9811 = vmatpush3.msra.mxu1 %v12040_v39  ;;  %9818 = vmatprep.mubr.msk.f32.mxu1 %vm10256_vm1, %v12457_v22  ;;  %10203 = vrcp.f32 %v6281_v55 }
 0x787   :  { %9812 = vmatprep.subr.mxu1 %v12457_v22 }
 0x788   :  { %v10202_v20 = vpop.eup %10201  ;;  %9813 = vmatpush3.msra.mxu1 %v12050_v46 }
 0x789   :  { %v6285_v2 = vmul.f32 %v10202_v20, %v10200_v0  ;;  %9814 = vmatprep.subr.mxu1 %v12457_v22 }
 0x78a   :  { %9815 = vmatpush3.msra.mxu1 %v12059_v24 }
 0x78b   :  { %v12070_v12 = vadd.f32 %v6285_v2, %v6284_v59  ;;  %9816 = vmatprep.subr.mxu1 %v12457_v22  ;;  %v12321_v59 = vld [vmem:[%s12425_s4 + $0x3] ss:$0 sm:$0xff] }
 0x78c   :  { %9817 = vmatpush3.msra.mxu1 %v12067_v7 }
 0x78d   :  { %10205 = vtanh.f32 %v12070_v12  ;;  %9819 = vmatmul.mubr.msk.f32.vlgmr.msra.gmra.mxu1 %vm24_vm0, %v5957_v50  ;;  %9832 = vmatprep.subr.mxu1 %v12457_v22 }
 0x78e   :  { %9833 = vmatpush3.msra.mxu1 %v12076_v9  ;;  %9840 = vmatprep.mubr.msk.f32.mxu1 %vm10256_vm1, %v12457_v22 }
 0x78f   :  { %9834 = vmatprep.subr.mxu1 %v12457_v22 }
 0x790   :  { %9835 = vmatpush3.msra.mxu1 %v12085_v51 }
 0x791   :  { %9836 = vmatprep.subr.mxu1 %v12457_v22 }
 0x792   :  { %9837 = vmatpush3.msra.mxu1 %v12094_v3 }
 0x793   :  { %9838 = vmatprep.subr.mxu1 %v12457_v22  ;;  %v10204_v11 = vpop.eup %10203 }
 0x794   :  { %9839 = vmatpush3.msra.mxu1 %v12101_v15 }
 0x795   :  { %9841 = vmatmul.mubr.msk.f32.vlgmr.msra.gmra.mxu1 %vm24_vm0, %v5957_v50  ;;  %9854 = vmatprep.subr.mxu1 %v12457_v22 }
 0x796   :  { %9855 = vmatpush3.msra.mxu1 %v12108_v16  ;;  %9862 = vmatprep.mubr.msk.f32.mxu1 %vm10256_vm1, %v12457_v22 }
 0x797   :  { %9856 = vmatprep.subr.mxu1 %v12457_v22 }
 0x798   :  { %9857 = vmatpush3.msra.mxu1 %v12116_v33 }
 0x799   :  { %9858 = vmatprep.subr.mxu1 %v12457_v22 }
 0x79a   :  { %v10206_v17 = vpop.eup %10205  ;;  %9859 = vmatpush3.msra.mxu1 %v11780_v37 }
 0x79b   :  { %9860 = vmatprep.subr.mxu1 %v12457_v22  ;;  %v12126_v36 = vmul.f32 %v10206_v17, %v10204_v11 }
 0x79c   :  { %9861 = vmatpush3.msra.mxu1 %v11787_v34 }
 0x79d   :  { %9786 = vmatmul.mubr.msk.f32.vlgmr.msra.gmra.mxu0 %vm24_vm0, %v12126_v36  ;;  %9863 = vmatmul.mubr.msk.f32.vlgmr.msra.gmra.mxu1 %vm24_vm0, %v5957_v50 }
 0x79e   :  { %9800 = vmatpush3.msra.mxu0 %v12131_v27  ;;  %9876 = vmatprep.subr.mxu1 %v12457_v22 }
 0x79f   :  { %9801 = vmatprep.subr.mxu0 %v12457_v22  ;;  %9877 = vmatpush3.msra.mxu1 %v11797_v10  ;;  %v12168_v10 = vld [vmem:[%s12423_s2 + $0x58] sm:$0xff] }
 0x7a0   :  { %9802 = vmatpush3.msra.mxu0 %v12140_v35  ;;  %9878 = vmatprep.subr.mxu1 %v12457_v22 }
 0x7a1   :  { %9803 = vmatprep.subr.mxu0 %v12457_v22  ;;  %9879 = vmatpush3.msra.mxu1 %v11807_v61  ;;  %v12180_v61 = vld [vmem:[%s12423_s2 + $0x50] sm:$0xff] }
 0x7a2   :  { %9804 = vmatpush3.msra.mxu0 %v12149_v23  ;;  %9880 = vmatprep.subr.mxu1 %v12457_v22 }
 0x7a3   :  { %9805 = vmatprep.subr.mxu0 %v12457_v22  ;;  %9807 = vmatprep.mubr.msk.f32.mxu0 %vm10256_vm1, %v12457_v22 }
 0x7a4   :  { %9806 = vmatpush3.msra.mxu0 %v12158_v40  ;;  %9881 = vmatpush3.msra.mxu1 %v11818_v19  ;;  %v12191_v19 = vld [vmem:[%s12423_s2 + $0x48] sm:$0xff] }
 0x7a5   :  { %9808 = vmatmul.mubr.msk.f32.vlgmr.msra.gmra.mxu0 %vm24_vm0, %v12126_v36  ;;  %9821 = vmatprep.subr.mxu0 %v12457_v22 }
 0x7a6   :  { %9882 = vmatprep.subr.mxu1 %v12457_v22  ;;  %9822 = vmatpush3.msra.mxu0 %v12168_v10 }
 0x7a7   :  { %9883 = vmatpush3.msra.mxu1 %v11830_v21  ;;  %9884 = vmatprep.mubr.msk.f32.mxu1 %vm10256_vm1, %v12457_v22  ;;  %v12200_v21 = vld [vmem:[%s12423_s2 + $0x40] sm:$0xff] }
 0x7a8   :  { %9823 = vmatprep.subr.mxu0 %v12457_v22  ;;  %9885 = vmatmul.mubr.msk.f32.vlgmr.msra.gmra.mxu1 %vm24_vm0, %v12126_v36 }
 0x7a9   :  { %9898 = vmatprep.subr.mxu1 %v12457_v22  ;;  %9824 = vmatpush3.msra.mxu0 %v12180_v61 }
 0x7aa   :  { %9899 = vmatpush3.msra.mxu1 %v11843_v60  ;;  %9825 = vmatprep.subr.mxu0 %v12457_v22  ;;  %v12211_v60 = vld [vmem:[%s12423_s2 + $0x78] sm:$0xff] }
 0x7ab   :  { %9900 = vmatprep.subr.mxu1 %v12457_v22  ;;  %9826 = vmatpush3.msra.mxu0 %v12191_v19 }
 0x7ac   :  { %9901 = vmatpush3.msra.mxu1 %v11853_v42  ;;  %9827 = vmatprep.subr.mxu0 %v12457_v22  ;;  %v12224_v42 = vld [vmem:[%s12423_s2 + $0x70] sm:$0xff] }
 0x7ad   :  { %9902 = vmatprep.subr.mxu1 %v12457_v22  ;;  %9828 = vmatpush3.msra.mxu0 %v12200_v21 }
 0x7ae   :  { %9829 = vmatprep.mubr.msk.f32.mxu0 %vm10256_vm1, %v12457_v22  ;;  %9903 = vmatpush3.msra.mxu1 %v11862_v41  ;;  %v12235_v41 = vld [vmem:[%s12423_s2 + $0x68] sm:$0xff] }
 0x7af   :  { %9830 = vmatmul.mubr.msk.f32.vlgmr.msra.gmra.mxu0 %vm24_vm0, %v12126_v36  ;;  %9843 = vmatprep.subr.mxu0 %v12457_v22 }
 0x7b0   :  { %9904 = vmatprep.subr.mxu1 %v12457_v22  ;;  %9844 = vmatpush3.msra.mxu0 %v12211_v60 }
 0x7b1   :  { %9905 = vmatpush3.msra.mxu1 %v11874_v43  ;;  %9906 = vmatprep.mubr.msk.f32.mxu1 %vm10256_vm1, %v12457_v22  ;;  %v12244_v43 = vld [vmem:[%s12423_s2 + $0x60] sm:$0xff] }
 0x7b2   :  { %9845 = vmatprep.subr.mxu0 %v12457_v22  ;;  %9907 = vmatmul.mubr.msk.f32.vlgmr.msra.gmra.mxu1 %vm24_vm0, %v12126_v36 }
 0x7b3   :  { %9846 = vmatpush3.msra.mxu0 %v12224_v42  ;;  %9851 = vmatprep.mubr.msk.f32.mxu0 %vm10256_vm1, %v12457_v22 }
 0x7b4   :  { %9847 = vmatprep.subr.mxu0 %v12457_v22  ;;  %9920 = vmatprep.subr.mxu1 %v12457_v22 }
 0x7b5   :  { %9848 = vmatpush3.msra.mxu0 %v12235_v41  ;;  %9921 = vmatpush3.msra.mxu1 %v11712_v30 }
 0x7b6   :  { %9849 = vmatprep.subr.mxu0 %v12457_v22  ;;  %9922 = vmatprep.subr.mxu1 %v12457_v22 }
 0x7b7   :  { %9850 = vmatpush3.msra.mxu0 %v12244_v43  ;;  %9923 = vmatpush3.msra.mxu1 %v11971_v38 }
 0x7b8   :  { %9852 = vmatmul.mubr.msk.f32.vlgmr.msra.gmra.mxu0 %vm24_vm0, %v12126_v36  ;;  %9865 = vmatprep.subr.mxu0 %v12457_v22 }
 0x7b9   :  { %9866 = vmatpush3.msra.mxu0 %v11898_v45  ;;  %9873 = vmatprep.mubr.msk.f32.mxu0 %vm10256_vm1, %v12457_v22 }
 0x7ba   :  { %9867 = vmatprep.subr.mxu0 %v12457_v22  ;;  %9924 = vmatprep.subr.mxu1 %v12457_v22 }
 0x7bb   :  { %9868 = vmatpush3.msra.mxu0 %v11910_v63  ;;  %9925 = vmatpush3.msra.mxu1 %v11978_v8 }
 0x7bc   :  { %9869 = vmatprep.subr.mxu0 %v12457_v22  ;;  %9926 = vmatprep.subr.mxu1 %v12457_v22 }
 0x7bd   :  { %9870 = vmatpush3.msra.mxu0 %v11919_v58  ;;  %9927 = vmatpush3.msra.mxu1 %v11985_v53 }
 0x7be   :  { %9871 = vmatprep.subr.mxu0 %v12457_v22  ;;  %9928 = vmatprep.mubr.msk.f32.mxu1 %vm10256_vm1, %v12457_v22 }
 0x7bf   :  { %9872 = vmatpush3.msra.mxu0 %v11926_v1  ;;  %9942 = vmatprep.subr.mxu1 %v12457_v22 }
 0x7c0   :  { %9874 = vmatmul.mubr.msk.f32.vlgmr.msra.gmra.mxu0 %vm24_vm0, %v12126_v36  ;;  %9887 = vmatprep.subr.mxu0 %v12457_v22 }
 0x7c1   :  { %9888 = vmatpush3.msra.mxu0 %v11933_v4  ;;  %9895 = vmatprep.mubr.msk.f32.mxu0 %vm10256_vm1, %v12457_v22 }
 0x7c2   :  { %9889 = vmatprep.subr.mxu0 %v12457_v22 }
 0x7c3   :  { %9890 = vmatpush3.msra.mxu0 %v11942_v14  ;;  %v12300_v14 = vld [vmem:[%s12425_s4] ss:$0 sm:$0xff] }
 0x7c4   :  { %9891 = vmatprep.subr.mxu0 %v12457_v22 }
 0x7c5   :  { %9892 = vmatpush3.msra.mxu0 %v11951_v5 }
 0x7c6   :  { %9893 = vmatprep.subr.mxu0 %v12457_v22 }
 0x7c7   :  { %9894 = vmatpush3.msra.mxu0 %v11958_v6 }
 0x7c8   :  { %9896 = vmatmul.mubr.msk.f32.vlgmr.msra.gmra.mxu0 %vm24_vm0, %v12126_v36  ;;  %9909 = vmatprep.subr.mxu0 %v12457_v22 }
 0x7c9   :  { %9910 = vmatpush3.msra.mxu0 %v11992_v54  ;;  %9917 = vmatprep.mubr.msk.f32.mxu0 %vm10256_vm1, %v12457_v22 }
 0x7ca   :  { %9911 = vmatprep.subr.mxu0 %v12457_v22 }
 0x7cb   :  { %9912 = vmatpush3.msra.mxu0 %v11999_v52 }
 0x7cc   :  { %9913 = vmatprep.subr.mxu0 %v12457_v22 }
 0x7cd   :  { %9914 = vmatpush3.msra.mxu0 %v12006_v56  ;;  %v12306_v56 = vld [vmem:[%s12425_s4 + $0x1] ss:$0 sm:$0xff] }
 0x7ce   :  { %9915 = vmatprep.subr.mxu0 %v12457_v22 }
 0x7cf   :  { %9916 = vmatpush3.msra.mxu0 %v12013_v57 }
 0x7d0   :  { %9931 = vmatprep.subr.mxu0 %v12457_v22 }
 0x845   :  { %v6446_v30 = vpop.f32.mrf.mxu1 }
 0x847   :  { %v9798_v45 = vpop.f32.mrf.mxu1 }
 0x84d   :  { %v6608_v63 = vpop.f32.mrf.mxu1 }
 0x84f   :  { %v9820_v58 = vpop.f32.mrf.mxu1 }
 0x855   :  { %v6770_v1 = vpop.f32.mrf.mxu1 }
 0x857   :  { %v9842_v4 = vpop.f32.mrf.mxu1 }
 0x85d   :  { %v6369_v5 = vpop.f32.mrf.mxu0  ;;  %v6927_v6 = vpop.f32.mrf.mxu1 }
 0x85e   :  { %v6370_v38 = vadd.f32 %v12300_v14, %v6369_v5  ;;  %v8395_v5 = vld [vmem:[%s12424_s0 + $0xe0] sm:$0xff] }
 0x85f   :  { %v9787_v8 = vpop.f32.mrf.mxu0  ;;  %v9864_v53 = vpop.f32.mrf.mxu1 }
 0x860   :  { %v6450_v54 = vadd.f32 %v6446_v30, %v6370_v38 }
 0x862   :  { %v8355_v52 = vmul.f32 -1.442695, %v6450_v54 }
 0x864   :  { %10207 = vpow2.f32 %v8355_v52  ;;  %v8398_v52 = vld [vmem:[%s12424_s0 + $0xf8] sm:$0xff] }
 0x865   :  { %v6534_v57 = vpop.f32.mrf.mxu0 }
 0x866   :  { %v6535_v44 = vadd.f32 %v12306_v56, %v6534_v57 }
 0x867   :  { %v9809_v28 = vpop.f32.mrf.mxu0 }
 0x868   :  { %v6612_v29 = vadd.f32 %v6608_v63, %v6535_v44  ;;  %v7101_v32 = vpop.f32.mrf.mxu1 }
 0x869   :  { %v7105_v55 = vadd.f32 %v8396_v26, %v7101_v32  ;;  %v8397_v26 = vld [vmem:[%s12424_s0 + $0xf0] sm:$0xff] }
 0x86a   :  { %v8368_v18 = vmul.f32 -1.442695, %v6612_v29  ;;  %v9886_v47 = vpop.f32.mrf.mxu1 }
 0x86b   :  { %v8406_v45 = vmul.f32 -1.442695, %v7105_v55 }
 0x86c   :  { %10209 = vpow2.f32 %v8368_v18 }
 0x86f   :  { %v6696_v48 = vpop.f32.mrf.mxu0 }
 0x870   :  { %v6697_v62 = vadd.f32 %v12312_v13, %v6696_v48 }
 0x871   :  { %v9831_v31 = vpop.f32.mrf.mxu0  ;;  %v10208_v50 = vpop.eup %10207 }
 0x872   :  { %v7258_v49 = vpop.f32.mrf.mxu1  ;;  %v6454_v20 = vadd.f32 1.0, %v10208_v50  ;;  %v6774_v2 = vadd.f32 %v6770_v1, %v6697_v62 }
 0x873   :  { %v7262_v32 = vadd.f32 %v8398_v52, %v7258_v49 }
 0x874   :  { %v9908_v0 = vpop.f32.mrf.mxu1  ;;  %10211 = vrcp.f32 %v6454_v20 }
 0x875   :  { %10213 = vtanh.f32 %v6774_v2  ;;  %v8417_v62 = vmul.f32 -1.442695, %v7262_v32 }
 0x878   :  { %v6853_v11 = vpop.f32.mrf.mxu0 }
 0x879   :  { %v10210_v17 = vpop.eup %10209  ;;  %v6854_v36 = vadd.f32 %v12321_v59, %v6853_v11 }
 0x87a   :  { %v6616_v30 = vadd.f32 1.0, %v10210_v17  ;;  %v9853_v63 = vpop.f32.mrf.mxu0 }
 0x87b   :  { %v6931_v58 = vadd.f32 %v6927_v6, %v6854_v36 }
 0x87c   :  { %10215 = vrcp.f32 %v6616_v30 }
 0x87d   :  { %v8393_v4 = vmul.f32 -1.442695, %v6931_v58  ;;  %10217 = vpow2.f32 %v8406_v45 }
 0x87f   :  { %10219 = vpow2.f32 %v8393_v4 }
 0x880   :  { %v7020_v38 = vpop.f32.mrf.mxu0 }
 0x881   :  { %v7024_v1 = vadd.f32 %v8395_v5, %v7020_v38  ;;  %v10212_v54 = vpop.eup %10211 }
 0x882   :  { %v9875_v8 = vpop.f32.mrf.mxu0  ;;  %v10214_v57 = vpop.eup %10213 }
 0x883   :  { %v8400_v53 = vmul.f32 -1.442695, %v7024_v1  ;;  %v6939_v29 = vmul.f32 %v10214_v57, %v10212_v54 }
 0x885   :  { %10221 = vpow2.f32 %v8400_v53 }
 0x888   :  { %v7182_v6 = vpop.f32.mrf.mxu0 }
 0x889   :  { %v10216_v44 = vpop.eup %10215  ;;  %v7186_v20 = vadd.f32 %v8397_v26, %v7182_v6 }
 0x88a   :  { %v6938_v28 = vmul.f32 %v10216_v44, %v12031_v25  ;;  %v9897_v18 = vpop.f32.mrf.mxu0  ;;  %v10218_v47 = vpop.eup %10217 }
 0x88b   :  { %v7109_v0 = vadd.f32 1.0, %v10218_v47 }
 0x88c   :  { %v10220_v48 = vpop.eup %10219  ;;  %v12331_v31 = vadd.f32 %v6939_v29, %v6938_v28 }
 0x88d   :  { %v6935_v50 = vadd.f32 1.0, %v10220_v48 }
 0x88e   :  { %10223 = vtanh.f32 %v12331_v31 }
 0x88f   :  { %10225 = vrcp.f32 %v6935_v50 }
 0x890   :  { %10227 = vpow2.f32 %v8417_v62 }
 0x891   :  { %10229 = vrcp.f32 %v7109_v0 }
 0x892   :  { %v10222_v55 = vpop.eup %10221  ;;  %10231 = vtanh.f32 %v7186_v20 }
 0x893   :  { %v7028_v25 = vadd.f32 1.0, %v10222_v55 }
 0x895   :  { %10233 = vrcp.f32 %v7028_v25 }
 0x89b   :  { %v10224_v49 = vpop.eup %10223 }
 0x89c   :  { %v10226_v2 = vpop.eup %10225 }
 0x89d   :  { %v6942_v11 = vmul.f32 %v10226_v2, %v10224_v49  ;;  %v10228_v17 = vpop.eup %10227 }
 0x89e   :  { %v10230_v36 = vpop.eup %10229  ;;  %v7266_v63 = vadd.f32 1.0, %v10228_v17 }
 0x89f   :  { %8394 = vst.msk [vmem:[%s12426_s5 + $0x30] sm:$0xff] %vm24_vm0, %v6942_v11  ;;  %9929 = vmatmul.mubr.msk.f32.vlgmr.msra.gmra.mxu1 %vm24_vm0, %v6942_v11  ;;  %v10232_v30 = vpop.eup %10231  ;;  %v7269_v58 = vmul.f32 %v10230_v36, %v12070_v12 }
 0x8a0   :  { %9943 = vmatpush3.msra.mxu1 %v12040_v39  ;;  %9950 = vmatprep.mubr.msk.f32.mxu1 %vm10256_vm1, %v12457_v22  ;;  %10235 = vrcp.f32 %v7266_v63 }
 0x8a1   :  { %9944 = vmatprep.subr.mxu1 %v12457_v22 }
 0x8a2   :  { %v10234_v45 = vpop.eup %10233  ;;  %9945 = vmatpush3.msra.mxu1 %v12050_v46 }
 0x8a3   :  { %v7270_v4 = vmul.f32 %v10234_v45, %v10232_v30  ;;  %9946 = vmatprep.subr.mxu1 %v12457_v22 }
 0x8a4   :  { %9947 = vmatpush3.msra.mxu1 %v12059_v24 }
 0x8a5   :  { %v7271_v5 = vadd.f32 %v7270_v4, %v7269_v58  ;;  %9948 = vmatprep.subr.mxu1 %v12457_v22 }
 0x8a6   :  { %9949 = vmatpush3.msra.mxu1 %v12067_v7 }
 0x8a7   :  { %10237 = vtanh.f32 %v7271_v5  ;;  %7931 = vst.msk [vmem:[#allocation2 + $0x8] sm:$0xff] %vm24_vm0, %v7271_v5  ;;  %9951 = vmatmul.mubr.msk.f32.vlgmr.msra.gmra.mxu1 %vm24_vm0, %v6942_v11  ;;  %9964 = vmatprep.subr.mxu1 %v12457_v22 }
 0x8a8   :  { %9965 = vmatpush3.msra.mxu1 %v12076_v9  ;;  %9972 = vmatprep.mubr.msk.f32.mxu1 %vm10256_vm1, %v12457_v22 }
 0x8a9   :  { %9966 = vmatprep.subr.mxu1 %v12457_v22 }
 0x8aa   :  { %9967 = vmatpush3.msra.mxu1 %v12085_v51 }
 0x8ab   :  { %9968 = vmatprep.subr.mxu1 %v12457_v22 }
 0x8ac   :  { %9969 = vmatpush3.msra.mxu1 %v12094_v3 }
 0x8ad   :  { %9970 = vmatprep.subr.mxu1 %v12457_v22  ;;  %v10236_v39 = vpop.eup %10235 }
 0x8ae   :  { %9971 = vmatpush3.msra.mxu1 %v12101_v15 }
 0x8af   :  { %9973 = vmatmul.mubr.msk.f32.vlgmr.msra.gmra.mxu1 %vm24_vm0, %v6942_v11  ;;  %9986 = vmatprep.subr.mxu1 %v12457_v22 }
 0x8b0   :  { %9987 = vmatpush3.msra.mxu1 %v12108_v16  ;;  %9994 = vmatprep.mubr.msk.f32.mxu1 %vm10256_vm1, %v12457_v22 }
 0x8b1   :  { %9988 = vmatprep.subr.mxu1 %v12457_v22 }
 0x8b2   :  { %9989 = vmatpush3.msra.mxu1 %v12116_v33 }
 0x8b3   :  { %9990 = vmatprep.subr.mxu1 %v12457_v22 }
 0x8b4   :  { %v10238_v46 = vpop.eup %10237  ;;  %9991 = vmatpush3.msra.mxu1 %v11780_v37 }
 0x8b5   :  { %9992 = vmatprep.subr.mxu1 %v12457_v22  ;;  %v7273_v24 = vmul.f32 %v10238_v46, %v10236_v39 }
 0x8b6   :  { %9993 = vmatpush3.msra.mxu1 %v11787_v34 }
 0x8b7   :  { %9918 = vmatmul.mubr.msk.f32.vlgmr.msra.gmra.mxu0 %vm24_vm0, %v7273_v24  ;;  %7930 = vst.msk [vmem:[#allocation2] sm:$0xff] %vm24_vm0, %v7273_v24  ;;  %9995 = vmatmul.mubr.msk.f32.vlgmr.msra.gmra.mxu1 %vm24_vm0, %v6942_v11 }
 0x8b8   :  { %9932 = vmatpush3.msra.mxu0 %v12131_v27  ;;  %9939 = vmatprep.mubr.msk.f32.mxu0 %vm10256_vm1, %v12457_v22 }
 0x8b9   :  { %9933 = vmatprep.subr.mxu0 %v12457_v22 }
 0x8ba   :  { %9934 = vmatpush3.msra.mxu0 %v12140_v35 }
 0x8bb   :  { %9935 = vmatprep.subr.mxu0 %v12457_v22 }
 0x8bc   :  { %9936 = vmatpush3.msra.mxu0 %v12149_v23 }
 0x8bd   :  { %9937 = vmatprep.subr.mxu0 %v12457_v22 }
 0x8be   :  { %9938 = vmatpush3.msra.mxu0 %v12158_v40 }
 0x8bf   :  { %9940 = vmatmul.mubr.msk.f32.vlgmr.msra.gmra.mxu0 %vm24_vm0, %v7273_v24  ;;  %9953 = vmatprep.subr.mxu0 %v12457_v22 }
 0x8c0   :  { %9954 = vmatpush3.msra.mxu0 %v12168_v10  ;;  %9961 = vmatprep.mubr.msk.f32.mxu0 %vm10256_vm1, %v12457_v22 }
 0x8c1   :  { %9955 = vmatprep.subr.mxu0 %v12457_v22 }
 0x8c2   :  { %9956 = vmatpush3.msra.mxu0 %v12180_v61 }
 0x8c3   :  { %9957 = vmatprep.subr.mxu0 %v12457_v22 }
 0x8c4   :  { %9958 = vmatpush3.msra.mxu0 %v12191_v19 }
 0x8c5   :  { %9959 = vmatprep.subr.mxu0 %v12457_v22 }
 0x8c6   :  { %9960 = vmatpush3.msra.mxu0 %v12200_v21 }
 0x8c7   :  { %9962 = vmatmul.mubr.msk.f32.vlgmr.msra.gmra.mxu0 %vm24_vm0, %v7273_v24  ;;  %9975 = vmatprep.subr.mxu0 %v12457_v22 }
 0x8c8   :  { %9976 = vmatpush3.msra.mxu0 %v12211_v60  ;;  %9983 = vmatprep.mubr.msk.f32.mxu0 %vm10256_vm1, %v12457_v22 }
 0x8c9   :  { %9977 = vmatprep.subr.mxu0 %v12457_v22 }
 0x8ca   :  { %9978 = vmatpush3.msra.mxu0 %v12224_v42 }
 0x8cb   :  { %9979 = vmatprep.subr.mxu0 %v12457_v22 }
 0x8cc   :  { %9980 = vmatpush3.msra.mxu0 %v12235_v41 }
 0x8cd   :  { %9981 = vmatprep.subr.mxu0 %v12457_v22 }
 0x8ce   :  { %9982 = vmatpush3.msra.mxu0 %v12244_v43 }
 0x8cf   :  { %9984 = vmatmul.mubr.msk.f32.vlgmr.msra.gmra.mxu0 %vm24_vm0, %v7273_v24 }
 0x95f   :  { %v7431_v37 = vpop.f32.mrf.mxu1 }
 0x961   :  { %v9930_v34 = vpop.f32.mrf.mxu1 }
 0x967   :  { %v7593_v7 = vpop.f32.mrf.mxu1 }
 0x969   :  { %v9952_v12 = vpop.f32.mrf.mxu1 }
 0x96f   :  { %v7755_v9 = vpop.f32.mrf.mxu1 }
 0x971   :  { %v9974_v51 = vpop.f32.mrf.mxu1 }
 0x977   :  { %v7354_v3 = vpop.f32.mrf.mxu0  ;;  %v7912_v15 = vpop.f32.mrf.mxu1 }
 0x978   :  { %v7355_v16 = vadd.f32 %v12300_v14, %v7354_v3 }
 0x979   :  { %v9919_v33 = vpop.f32.mrf.mxu0  ;;  %v9996_v27 = vpop.f32.mrf.mxu1 }
 0x97a   :  { %v7435_v35 = vadd.f32 %v7431_v37, %v7355_v16 }
 0x97c   :  { %v8421_v23 = vmul.f32 -1.442695, %v7435_v35 }
 0x97e   :  { %10239 = vpow2.f32 %v8421_v23 }
 0x97f   :  { %v7519_v40 = vpop.f32.mrf.mxu0 }
 0x980   :  { %v7520_v22 = vadd.f32 %v12306_v56, %v7519_v40 }
 0x981   :  { %v9941_v10 = vpop.f32.mrf.mxu0 }
 0x982   :  { %v7597_v61 = vadd.f32 %v7593_v7, %v7520_v22 }
 0x984   :  { %v8434_v19 = vmul.f32 -1.442695, %v7597_v61 }
 0x986   :  { %10241 = vpow2.f32 %v8434_v19 }
 0x987   :  { %v7681_v21 = vpop.f32.mrf.mxu0 }
 0x988   :  { %v7682_v41 = vadd.f32 %v12312_v13, %v7681_v21 }
 0x989   :  { %v9963_v60 = vpop.f32.mrf.mxu0 }
 0x98a   :  { %v7759_v1 = vadd.f32 %v7755_v9, %v7682_v41 }
 0x98b   :  { %v10240_v42 = vpop.eup %10239 }
 0x98c   :  { %v7439_v38 = vadd.f32 1.0, %v10240_v42 }
 0x98e   :  { %10243 = vrcp.f32 %v7439_v38 }
 0x98f   :  { %v7838_v43 = vpop.f32.mrf.mxu0  ;;  %10245 = vtanh.f32 %v7759_v1 }
 0x990   :  { %v7839_v14 = vadd.f32 %v12321_v59, %v7838_v43 }
 0x991   :  { %v9985_v8 = vpop.f32.mrf.mxu0 }
 0x992   :  { %v7916_v53 = vadd.f32 %v7912_v15, %v7839_v14 }
 0x993   :  { %v10242_v54 = vpop.eup %10241 }
 0x994   :  { %v7601_v52 = vadd.f32 1.0, %v10242_v54  ;;  %v8459_v56 = vmul.f32 -1.442695, %v7916_v53 }
 0x996   :  { %10247 = vrcp.f32 %v7601_v52 }
 0x997   :  { %10249 = vpow2.f32 %v8459_v56 }
 0x99b   :  { %v10244_v57 = vpop.eup %10243 }
 0x99c   :  { %v10246_v6 = vpop.eup %10245 }
 0x99d   :  { %v7924_v29 = vmul.f32 %v10246_v6, %v10244_v57 }
 0x9a3   :  { %v10248_v44 = vpop.eup %10247 }
 0x9a4   :  { %v10250_v28 = vpop.eup %10249  ;;  %v7923_v13 = vmul.f32 %v10248_v44, %v12331_v31 }
 0x9a5   :  { %v7920_v32 = vadd.f32 1.0, %v10250_v28 }
 0x9a6   :  { %v7925_v18 = vadd.f32 %v7924_v29, %v7923_v13 }
 0x9a7   :  { %10251 = vrcp.f32 %v7920_v32 }
 0x9a8   :  { %10253 = vtanh.f32 %v7925_v18  ;;  %7933 = vst.msk [vmem:[#allocation2 + $0x18] sm:$0xff] %vm24_vm0, %v7925_v18 }
 0x9b4   :  { %v10252_v59 = vpop.eup %10251 }
 0x9b5   :  { %v10254_v47 = vpop.eup %10253 }
 0x9b6   :  { %v7927_v48 = vmul.f32 %v10254_v47, %v10252_v59 }
 0x9b8   :  { %8460 = vst.msk [vmem:[%s12426_s5 + $0x38] sm:$0xff] %vm24_vm0, %v7927_v48  ;;  %7932 = vst.msk [vmem:[#allocation2 + $0x10] sm:$0xff] %vm24_vm0, %v7927_v48 }

</bundles_post_ra>
